<compile_context>
chip_gen: v7x
topology: tpu7x:2x2x1
jax: 0.10.0
libtpu: 0.0.40
codegen_flags: <defaults>
</compile_context>

<pallas_src>
import jax
import jax.numpy as jnp
from jax import lax
from jax.experimental import pallas as pl
from jax.experimental.pallas import tpu as pltpu


def _rup(x, m):
    return ((x + m - 1) // m) * m


# ---------------------------------------------------------------------------
# Fused encoder + greedy-decoder kernel.
# ---------------------------------------------------------------------------
def _make_seq2seq_kernel(sos_id):
    def kernel(enc_gi_ref, enc_whh_ref, enc_bhh_ref, dec_bout_ref,
               dec_gwx_hbm, dec_gwh_hbm, dec_wout_hbm,
               enc_out_ref, enc_h_ref, logp_ref, dec_h_ref,
               gwx_vmem, gwh_vmem, wout_vmem, dma_sem):
        S, B, threeHp = enc_gi_ref.shape
        Hp = threeHp // 3
        T = logp_ref.shape[0]
        Vp = logp_ref.shape[2]
        f32 = jnp.float32
        bf16 = jnp.bfloat16

        # Kick off decoder-weight HBM->VMEM DMAs at kernel entry; they complete
        # under the encoder recurrence instead of sitting on the critical path.
        cp_gwx = pltpu.make_async_copy(dec_gwx_hbm, gwx_vmem, dma_sem.at[0])
        cp_gwh = pltpu.make_async_copy(dec_gwh_hbm, gwh_vmem, dma_sem.at[1])
        cp_out = pltpu.make_async_copy(dec_wout_hbm, wout_vmem, dma_sem.at[2])
        cp_gwx.start()
        cp_gwh.start()
        cp_out.start()

        # ----- encoder recurrence: input gates (emb @ Wih + bih) precomputed
        # per token at prep time; one bf16 MXU matmul (h @ Whh) per step.
        enc_whh = enc_whh_ref[...]                                   # bf16
        enc_bhh = jnp.broadcast_to(enc_bhh_ref[...], (B, threeHp))   # f32, hoisted

        def enc_step(t, h):
            gi = enc_gi_ref[t]                                       # (B, 3Hp) f32
            gh = jnp.dot(h.astype(bf16), enc_whh,
                         preferred_element_type=f32) + enc_bhh
            r = jax.nn.sigmoid(gi[:, :Hp] + gh[:, :Hp])
            z = jax.nn.sigmoid(gi[:, Hp:2 * Hp] + gh[:, Hp:2 * Hp])
            n = jnp.tanh(gi[:, 2 * Hp:] + r * gh[:, 2 * Hp:])
            h_new = (1.0 - z) * n + z * h
            enc_out_ref[t] = h_new
            return h_new

        h_enc = lax.fori_loop(0, S, enc_step, jnp.zeros((B, Hp), f32),
                              unroll=True)
        enc_h_ref[...] = h_enc

        # Decoder weights are needed only from here on.
        cp_gwx.wait()
        cp_gwh.wait()
        cp_out.wait()

        gwx = gwx_vmem[...]                                          # bf16
        gwh = gwh_vmem[...]                                          # bf16
        wout = wout_vmem[...]                                        # bf16
        dec_bout = jnp.broadcast_to(dec_bout_ref[...], (B, Vp))      # f32, hoisted

        col_iota = lax.broadcasted_iota(jnp.int32, (B, Vp), 1)
        sos_onehot = (col_iota == sos_id).astype(bf16)

        # ----- greedy decoder: 3 bf16 MXU matmuls per step (x-gates, h-gates,
        # output projection).  GRU biases are folded into the one-hot rows of
        # gwx; the vocab-pad mask is folded into dec_bout (-1e30 columns).
        # Column layout of g: [r | z | i_n | h_n]  with n = tanh(i_n + r*h_n),
        # matching PyTorch GRU semantics (b_hn lives inside the r* term via the
        # h_n column of the selected one-hot row).
        def dec_step(t, carry):
            h, onehot = carry
            g = (jnp.dot(onehot, gwx, preferred_element_type=f32) +
                 jnp.dot(h.astype(bf16), gwh, preferred_element_type=f32))
            r = jax.nn.sigmoid(g[:, :Hp])
            z = jax.nn.sigmoid(g[:, Hp:2 * Hp])
            n = jnp.tanh(g[:, 2 * Hp:3 * Hp] + r * g[:, 3 * Hp:])
            h_new = (1.0 - z) * n + z * h
            logits = jnp.dot(h_new.astype(bf16), wout,
                             preferred_element_type=f32) + dec_bout
            mx = jnp.max(logits, axis=-1, keepdims=True)
            lse = jnp.log(jnp.sum(jnp.exp(logits - mx), axis=-1,
                                  keepdims=True)) + mx
            logp_ref[t] = logits - lse                               # log_softmax
            # greedy pick: first index attaining the max (== torch.topk(1)).
            idx = jnp.min(jnp.where(logits == mx, col_iota, Vp),
                          axis=-1, keepdims=True)
            next_onehot = (col_iota == idx).astype(bf16)
            return (h_new, next_onehot)

        h_dec, _ = lax.fori_loop(0, T, dec_step, (h_enc, sos_onehot),
                                 unroll=True)
        dec_h_ref[...] = h_dec

    return kernel


# ---------------------------------------------------------------------------
# pallas_call wrapper (single launch).
# ---------------------------------------------------------------------------
def run_seq2seq(enc_gi, enc_whh, enc_bhh, dec_bout, dec_gwx, dec_gwh, dec_wout,
                S, Bp, Hp, T, Vp_tgt, sos_id):
    kernel = _make_seq2seq_kernel(sos_id)
    return pl.pallas_call(
        kernel,
        grid=(1,),
        in_specs=[
            pl.BlockSpec((S, Bp, 3 * Hp), lambda i: (0, 0, 0)),   # enc_gi (VMEM)
            pl.BlockSpec((Hp, 3 * Hp), lambda i: (0, 0)),         # enc_whh (VMEM)
            pl.BlockSpec((1, 3 * Hp), lambda i: (0, 0)),          # enc_bhh (VMEM)
            pl.BlockSpec((1, Vp_tgt), lambda i: (0, 0)),          # dec_bout (VMEM)
            pl.BlockSpec(memory_space=pl.ANY),                    # dec_gwx (HBM)
            pl.BlockSpec(memory_space=pl.ANY),                    # dec_gwh (HBM)
            pl.BlockSpec(memory_space=pl.ANY),                    # dec_wout (HBM)
        ],
        out_specs=[
            pl.BlockSpec((S, Bp, Hp), lambda i: (0, 0, 0)),
            pl.BlockSpec((Bp, Hp), lambda i: (0, 0)),
            pl.BlockSpec((T, Bp, Vp_tgt), lambda i: (0, 0, 0)),
            pl.BlockSpec((Bp, Hp), lambda i: (0, 0)),
        ],
        out_shape=(
            jax.ShapeDtypeStruct((S, Bp, Hp), jnp.float32),       # encoder outputs
            jax.ShapeDtypeStruct((Bp, Hp), jnp.float32),          # encoder hidden
            jax.ShapeDtypeStruct((T, Bp, Vp_tgt), jnp.float32),   # decoder log-probs
            jax.ShapeDtypeStruct((Bp, Hp), jnp.float32),          # decoder hidden
        ),
        scratch_shapes=[
            pltpu.VMEM((Vp_tgt, 4 * Hp), jnp.bfloat16),           # dec x-gate weights
            pltpu.VMEM((Hp, 4 * Hp), jnp.bfloat16),               # dec h-gate weights
            pltpu.VMEM((Hp, Vp_tgt), jnp.bfloat16),               # dec output proj
            pltpu.SemaphoreType.DMA((3,)),
        ],
        compiler_params=pltpu.CompilerParams(
            dimension_semantics=("arbitrary",)),
    )(enc_gi, enc_whh, enc_bhh, dec_bout, dec_gwx, dec_gwh, dec_wout)


# ---------------------------------------------------------------------------
# Seq2seq forward (teacher_forcing_ratio = 0, target_variable = None)
# ---------------------------------------------------------------------------
def seq2seq_forward(params, input_tokens, target_variable=None,
                    teacher_forcing_ratio=0, max_len=8, sos_id=1):
    # TODO(synk): teacher-forcing path (ratio > 0 with target_variable) and
    # attention over encoder_outputs are not implemented; the reference forward
    # default is ratio=0 (greedy), which is what this kernel computes.
    B, S = input_tokens.shape
    H = params["enc_wih"].shape[0]
    V_tgt = params["dec_emb"].shape[0]
    T = max_len
    f32 = jnp.float32
    bf16 = jnp.bfloat16

    Hp = _rup(H, 128)
    Vp_tgt = _rup(V_tgt, 128)
    Bp = _rup(B, 8)

    def pad_gates(w, n, h_real, h_pad, r_pad):
        # (R, n*h_real) -> (r_pad, n*h_pad), padding each gate block separately.
        R = w.shape[0]
        w3 = w.astype(f32).reshape(R, n, h_real)
        out = jnp.zeros((r_pad, n, h_pad), f32).at[:R, :, :h_real].set(w3)
        return out.reshape(r_pad, n * h_pad)

    # ----- encoder: fold Embedding @ W_ih + b_ih into a per-token gate table
    # and gather it for the (static) source sequence in XLA -> no vocab-sized
    # one-hot matmul inside the kernel.
    enc_table = (params["enc_emb"].astype(f32) @ params["enc_wih"].astype(f32)
                 + params["enc_bih"].astype(f32))                 # (V_src, 3H)
    enc_table = enc_table.reshape(-1, 3, H)
    tok_p = jnp.zeros((Bp, S), jnp.int32).at[:B, :].set(
        input_tokens.astype(jnp.int32))
    gath = enc_table[tok_p]                                       # (Bp, S, 3, H)
    enc_gi = jnp.zeros((S, Bp, 3, Hp), f32).at[:, :, :, :H].set(
        jnp.transpose(gath, (1, 0, 2, 3))).reshape(S, Bp, 3 * Hp)

    enc_whh = pad_gates(params["enc_whh"], 3, H, Hp, Hp).astype(bf16)  # (Hp,3Hp)
    enc_bhh = pad_gates(params["enc_bhh"], 3, H, Hp, 1)                # (1,3Hp) f32

    # ----- decoder: fold embedding into W_ih, split fused gate matrix into an
    # x-block (one-hot rows, biases folded in) and an h-block.
    # Column layout [r | z | i_n | h_n]; padded rows/cols stay exactly zero.
    EW = (params["dec_emb"].astype(f32) @
          params["dec_wih"].astype(f32)).reshape(V_tgt, 3, H)
    Whh = params["dec_whh"].astype(f32).reshape(H, 3, H)
    bih = params["dec_bih"].astype(f32).reshape(3, H)
    bhh = params["dec_bhh"].astype(f32).reshape(3, H)

    gwx = jnp.zeros((Vp_tgt, 4, Hp), f32)
    gwx = gwx.at[:V_tgt, 0, :H].set(EW[:, 0] + bih[0] + bhh[0])
    gwx = gwx.at[:V_tgt, 1, :H].set(EW[:, 1] + bih[1] + bhh[1])
    gwx = gwx.at[:V_tgt, 2, :H].set(EW[:, 2] + bih[2])
    gwx = gwx.at[:V_tgt, 3, :H].set(jnp.broadcast_to(bhh[2], (V_tgt, H)))
    dec_gwx = gwx.reshape(Vp_tgt, 4 * Hp).astype(bf16)

    gwh = jnp.zeros((Hp, 4, Hp), f32)
    gwh = gwh.at[:H, 0, :H].set(Whh[:, 0])
    gwh = gwh.at[:H, 1, :H].set(Whh[:, 1])
    gwh = gwh.at[:H, 3, :H].set(Whh[:, 2])
    dec_gwh = gwh.reshape(Hp, 4 * Hp).astype(bf16)

    dec_wout = jnp.zeros((Hp, Vp_tgt), f32).at[:H, :V_tgt].set(
        params["dec_wout"].astype(f32)).astype(bf16)
    # -1e30 baked into padded vocab columns -> no per-step mask in the kernel.
    dec_bout = jnp.full((1, Vp_tgt), -1e30, f32).at[:, :V_tgt].set(
        params["dec_bout"].astype(f32))

    enc_out_tm, enc_h_p, logp_tm, dec_h_p = run_seq2seq(
        enc_gi, enc_whh, enc_bhh, dec_bout, dec_gwx, dec_gwh, dec_wout,
        S, Bp, Hp, T, Vp_tgt, sos_id)

    encoder_outputs = jnp.transpose(enc_out_tm[:, :B, :H], (1, 0, 2))     # (B,S,H)
    encoder_hidden = enc_h_p[:B, :H]                                      # (B,H)
    decoder_log_probs = jnp.transpose(logp_tm[:, :B, :V_tgt], (1, 0, 2))  # (B,T,V)
    decoder_hidden = dec_h_p[:B, :H]                                      # (B,H)
    return decoder_log_probs, decoder_hidden, encoder_outputs, encoder_hidden


# ---------------------------------------------------------------------------
def make_params(key, vocab=32, hidden=32):
    ks = jax.random.split(key, 11)
    s = 0.1
    f32 = jnp.float32
    return {
        # encoder: Embedding(V, H) + GRU(H, H)
        "enc_emb": (s * jax.random.normal(ks[0], (vocab, hidden))).astype(f32),
        "enc_wih": (s * jax.random.normal(ks[1], (hidden, 3 * hidden))).astype(f32),
        "enc_whh": (s * jax.random.normal(ks[2], (hidden, 3 * hidden))).astype(f32),
        "enc_bih": (s * jax.random.normal(ks[3], (1, 3 * hidden))).astype(f32),
        "enc_bhh": (s * jax.random.normal(ks[4], (1, 3 * hidden))).astype(f32),
        # decoder: Embedding(V, H) + GRU(H, H) + Linear(H, V)
        "dec_emb": (s * jax.random.normal(ks[5], (vocab, hidden))).astype(f32),
        "dec_wih": (s * jax.random.normal(ks[6], (hidden, 3 * hidden))).astype(f32),
        "dec_whh": (s * jax.random.normal(ks[7], (hidden, 3 * hidden))).astype(f32),
        "dec_bih": (s * jax.random.normal(ks[8], (1, 3 * hidden))).astype(f32),
        "dec_bhh": (s * jax.random.normal(ks[9], (1, 3 * hidden))).astype(f32),
        "dec_wout": (s * jax.random.normal(ks[10], (hidden, vocab))).astype(f32),
        "dec_bout": jnp.zeros((1, vocab), f32),
    }


if __name__ == "__main__":
    B, S, H, V, T = 2, 8, 32, 32, 8

    key = jax.random.PRNGKey(0)
    k_params, k_tokens = jax.random.split(key)
    params = make_params(k_params, vocab=V, hidden=H)
    input_tokens = jax.random.randint(k_tokens, (B, S), 0, V)

    logp, dec_h, enc_out, enc_h = seq2seq_forward(
        params, input_tokens, target_variable=None,
        teacher_forcing_ratio=0, max_len=T)
    jax.block_until_ready((logp, dec_h, enc_out, enc_h))

    assert logp.shape == (B, T, V)
    assert dec_h.shape == (B, H)
    assert enc_out.shape == (B, S, H)
    assert enc_h.shape == (B, H)
    print("KERNEL_OK")
</pallas_src>

<mosaic_0001>
module attributes {stable_mosaic.version = 11 : i64} {
  func.func @kernel(%arg0: i32, %arg1: memref<8x8x384xf32, #tpu.memory_space<vmem>>, %arg2: memref<128x384xbf16, #tpu.memory_space<vmem>>, %arg3: memref<1x384xf32, #tpu.memory_space<vmem>>, %arg4: memref<1x128xf32, #tpu.memory_space<vmem>>, %arg5: memref<128x512xbf16, #tpu.memory_space<any>>, %arg6: memref<128x512xbf16, #tpu.memory_space<any>>, %arg7: memref<128x128xbf16, #tpu.memory_space<any>>, %arg8: memref<8x8x128xf32, #tpu.memory_space<vmem>>, %arg9: memref<8x128xf32, #tpu.memory_space<vmem>>, %arg10: memref<8x8x128xf32, #tpu.memory_space<vmem>>, %arg11: memref<8x128xf32, #tpu.memory_space<vmem>>, %arg12: memref<128x512xbf16, #tpu.memory_space<vmem>>, %arg13: memref<128x512xbf16, #tpu.memory_space<vmem>>, %arg14: memref<128x128xbf16, #tpu.memory_space<vmem>>, %arg15: memref<3x!tpu.dma_semaphore, #tpu.memory_space<semaphore_mem>>) attributes {dimension_semantics = [#tpu.dimension_semantics<arbitrary>], iteration_bounds = array<i64: 1>, scalar_prefetch = 0 : i64, scratch_operands = 4 : i64, tpu.core_type = #tpu.core_type<tc>, window_params = [{pipeline_mode = #tpu.pipeline_mode<synchronous>, transform_indices = @transform_0, window_bounds = array<i64: 8, 8, 384>}, {pipeline_mode = #tpu.pipeline_mode<synchronous>, transform_indices = @transform_1, window_bounds = array<i64: 128, 384>}, {pipeline_mode = #tpu.pipeline_mode<synchronous>, transform_indices = @transform_2, window_bounds = array<i64: 1, 384>}, {pipeline_mode = #tpu.pipeline_mode<synchronous>, transform_indices = @transform_3, window_bounds = array<i64: 1, 128>}, {}, {}, {}, {pipeline_mode = #tpu.pipeline_mode<synchronous>, transform_indices = @transform_7, window_bounds = array<i64: 8, 8, 128>}, {pipeline_mode = #tpu.pipeline_mode<synchronous>, transform_indices = @transform_8, window_bounds = array<i64: 8, 128>}, {pipeline_mode = #tpu.pipeline_mode<synchronous>, transform_indices = @transform_9, window_bounds = array<i64: 8, 8, 128>}, {pipeline_mode = #tpu.pipeline_mode<synchronous>, transform_indices = @transform_10, window_bounds = array<i64: 8, 128>}]} {
    %c0_i32 = arith.constant 0 : i32
    %0 = tpu.memref_slice %arg15[%c0_i32] : memref<3x!tpu.dma_semaphore, #tpu.memory_space<semaphore_mem>> -> memref<1x!tpu.dma_semaphore, #tpu.memory_space<semaphore_mem>>
    %1 = tpu.memref_squeeze %0 : memref<1x!tpu.dma_semaphore, #tpu.memory_space<semaphore_mem>> -> memref<!tpu.dma_semaphore, #tpu.memory_space<semaphore_mem>>
    tpu.enqueue_dma source(%arg5 : memref<128x512xbf16, #tpu.memory_space<any>>) target(%arg12 : memref<128x512xbf16, #tpu.memory_space<vmem>>) target_semaphore(%1 : memref<!tpu.dma_semaphore, #tpu.memory_space<semaphore_mem>>)
    %c1_i32 = arith.constant 1 : i32
    %2 = tpu.memref_slice %arg15[%c1_i32] : memref<3x!tpu.dma_semaphore, #tpu.memory_space<semaphore_mem>> -> memref<1x!tpu.dma_semaphore, #tpu.memory_space<semaphore_mem>>
    %3 = tpu.memref_squeeze %2 : memref<1x!tpu.dma_semaphore, #tpu.memory_space<semaphore_mem>> -> memref<!tpu.dma_semaphore, #tpu.memory_space<semaphore_mem>>
    tpu.enqueue_dma source(%arg6 : memref<128x512xbf16, #tpu.memory_space<any>>) target(%arg13 : memref<128x512xbf16, #tpu.memory_space<vmem>>) target_semaphore(%3 : memref<!tpu.dma_semaphore, #tpu.memory_space<semaphore_mem>>)
    %c2_i32 = arith.constant 2 : i32
    %4 = tpu.memref_slice %arg15[%c2_i32] : memref<3x!tpu.dma_semaphore, #tpu.memory_space<semaphore_mem>> -> memref<1x!tpu.dma_semaphore, #tpu.memory_space<semaphore_mem>>
    %5 = tpu.memref_squeeze %4 : memref<1x!tpu.dma_semaphore, #tpu.memory_space<semaphore_mem>> -> memref<!tpu.dma_semaphore, #tpu.memory_space<semaphore_mem>>
    tpu.enqueue_dma source(%arg7 : memref<128x128xbf16, #tpu.memory_space<any>>) target(%arg14 : memref<128x128xbf16, #tpu.memory_space<vmem>>) target_semaphore(%5 : memref<!tpu.dma_semaphore, #tpu.memory_space<semaphore_mem>>)
    %c0 = arith.constant 0 : index
    %c0_0 = arith.constant 0 : index
    %6 = vector.load %arg2[%c0, %c0_0] : memref<128x384xbf16, #tpu.memory_space<vmem>>, vector<128x384xbf16>
    %c0_1 = arith.constant 0 : index
    %c0_2 = arith.constant 0 : index
    %7 = vector.load %arg3[%c0_1, %c0_2] : memref<1x384xf32, #tpu.memory_space<vmem>>, vector<1x384xf32>
    %8 = vector.shape_cast %7 : vector<1x384xf32> to vector<1x384xf32>
    %9 = vector.broadcast %8 : vector<1x384xf32> to vector<8x384xf32>
    %cst = arith.constant 0.000000e+00 : f32
    %10 = vector.broadcast %cst : f32 to vector<8x128xf32>
    %c0_i32_3 = arith.constant 0 : i32
    %11 = arith.index_cast %c0_i32_3 : i32 to index
    %c0_4 = arith.constant 0 : index
    %c0_5 = arith.constant 0 : index
    %12 = vector.load %arg1[%11, %c0_4, %c0_5] : memref<8x8x384xf32, #tpu.memory_space<vmem>>, vector<1x8x384xf32>
    %13 = vector.shape_cast %12 : vector<1x8x384xf32> to vector<8x384xf32>
    %14 = arith.truncf %10 : vector<8x128xf32> to vector<8x128xbf16>
    %cst_6 = arith.constant dense<0.000000e+00> : vector<8x384xf32>
    %15 = tpu.matmul %14, %6, %cst_6 {dimension_numbers = #tpu.dot_dimension_numbers<[1], [0], [0], [1], [0, 0, 1, 1], [], []>} : vector<8x128xbf16>, vector<128x384xbf16>, vector<8x384xf32> -> vector<8x384xf32>
    %16 = arith.addf %15, %9 : vector<8x384xf32>
    %17 = vector.extract_strided_slice %13 {offsets = [0, 0], sizes = [8, 128], strides = [1, 1]} : vector<8x384xf32> to vector<8x128xf32>
    %18 = vector.extract_strided_slice %16 {offsets = [0, 0], sizes = [8, 128], strides = [1, 1]} : vector<8x384xf32> to vector<8x128xf32>
    %19 = arith.addf %17, %18 : vector<8x128xf32>
    %20 = arith.negf %19 : vector<8x128xf32>
    %21 = math.exp %20 : vector<8x128xf32>
    %cst_7 = arith.constant 1.000000e+00 : f32
    %22 = vector.broadcast %cst_7 : f32 to vector<8x128xf32>
    %23 = arith.addf %22, %21 : vector<8x128xf32>
    %24 = arith.divf %22, %23 : vector<8x128xf32>
    %25 = vector.extract_strided_slice %13 {offsets = [0, 128], sizes = [8, 128], strides = [1, 1]} : vector<8x384xf32> to vector<8x128xf32>
    %26 = vector.extract_strided_slice %16 {offsets = [0, 128], sizes = [8, 128], strides = [1, 1]} : vector<8x384xf32> to vector<8x128xf32>
    %27 = arith.addf %25, %26 : vector<8x128xf32>
    %28 = arith.negf %27 : vector<8x128xf32>
    %29 = math.exp %28 : vector<8x128xf32>
    %cst_8 = arith.constant 1.000000e+00 : f32
    %30 = vector.broadcast %cst_8 : f32 to vector<8x128xf32>
    %31 = arith.addf %30, %29 : vector<8x128xf32>
    %32 = arith.divf %30, %31 : vector<8x128xf32>
    %33 = vector.extract_strided_slice %13 {offsets = [0, 256], sizes = [8, 128], strides = [1, 1]} : vector<8x384xf32> to vector<8x128xf32>
    %34 = vector.extract_strided_slice %16 {offsets = [0, 256], sizes = [8, 128], strides = [1, 1]} : vector<8x384xf32> to vector<8x128xf32>
    %35 = arith.mulf %24, %34 : vector<8x128xf32>
    %36 = arith.addf %33, %35 : vector<8x128xf32>
    %37 = math.tanh %36 : vector<8x128xf32>
    %cst_9 = arith.constant 1.000000e+00 : f32
    %38 = vector.broadcast %cst_9 : f32 to vector<8x128xf32>
    %39 = arith.subf %38, %32 : vector<8x128xf32>
    %40 = arith.mulf %39, %37 : vector<8x128xf32>
    %41 = arith.mulf %32, %10 : vector<8x128xf32>
    %42 = arith.addf %40, %41 : vector<8x128xf32>
    %43 = arith.index_cast %c0_i32_3 : i32 to index
    %c0_10 = arith.constant 0 : index
    %c0_11 = arith.constant 0 : index
    %44 = vector.load %arg8[%43, %c0_10, %c0_11] : memref<8x8x128xf32, #tpu.memory_space<vmem>>, vector<1x8x128xf32>
    %45 = vector.shape_cast %44 : vector<1x8x128xf32> to vector<8x128xf32>
    %46 = vector.shape_cast %42 : vector<8x128xf32> to vector<1x8x128xf32>
    tpu.vector_store %arg8[%43, %c0_10, %c0_11], %46 {strides = array<i32>} : memref<8x8x128xf32, #tpu.memory_space<vmem>>, vector<1x8x128xf32>,
    %c1_i32_12 = arith.constant 1 : i32
    %47 = arith.index_cast %c1_i32_12 : i32 to index
    %c0_13 = arith.constant 0 : index
    %c0_14 = arith.constant 0 : index
    %48 = vector.load %arg1[%47, %c0_13, %c0_14] : memref<8x8x384xf32, #tpu.memory_space<vmem>>, vector<1x8x384xf32>
    %49 = vector.shape_cast %48 : vector<1x8x384xf32> to vector<8x384xf32>
    %50 = arith.truncf %42 : vector<8x128xf32> to vector<8x128xbf16>
    %cst_15 = arith.constant dense<0.000000e+00> : vector<8x384xf32>
    %51 = tpu.matmul %50, %6, %cst_15 {dimension_numbers = #tpu.dot_dimension_numbers<[1], [0], [0], [1], [0, 0, 1, 1], [], []>} : vector<8x128xbf16>, vector<128x384xbf16>, vector<8x384xf32> -> vector<8x384xf32>
    %52 = arith.addf %51, %9 : vector<8x384xf32>
    %53 = vector.extract_strided_slice %49 {offsets = [0, 0], sizes = [8, 128], strides = [1, 1]} : vector<8x384xf32> to vector<8x128xf32>
    %54 = vector.extract_strided_slice %52 {offsets = [0, 0], sizes = [8, 128], strides = [1, 1]} : vector<8x384xf32> to vector<8x128xf32>
    %55 = arith.addf %53, %54 : vector<8x128xf32>
    %56 = arith.negf %55 : vector<8x128xf32>
    %57 = math.exp %56 : vector<8x128xf32>
    %cst_16 = arith.constant 1.000000e+00 : f32
    %58 = vector.broadcast %cst_16 : f32 to vector<8x128xf32>
    %59 = arith.addf %58, %57 : vector<8x128xf32>
    %60 = arith.divf %58, %59 : vector<8x128xf32>
    %61 = vector.extract_strided_slice %49 {offsets = [0, 128], sizes = [8, 128], strides = [1, 1]} : vector<8x384xf32> to vector<8x128xf32>
    %62 = vector.extract_strided_slice %52 {offsets = [0, 128], sizes = [8, 128], strides = [1, 1]} : vector<8x384xf32> to vector<8x128xf32>
    %63 = arith.addf %61, %62 : vector<8x128xf32>
    %64 = arith.negf %63 : vector<8x128xf32>
    %65 = math.exp %64 : vector<8x128xf32>
    %cst_17 = arith.constant 1.000000e+00 : f32
    %66 = vector.broadcast %cst_17 : f32 to vector<8x128xf32>
    %67 = arith.addf %66, %65 : vector<8x128xf32>
    %68 = arith.divf %66, %67 : vector<8x128xf32>
    %69 = vector.extract_strided_slice %49 {offsets = [0, 256], sizes = [8, 128], strides = [1, 1]} : vector<8x384xf32> to vector<8x128xf32>
    %70 = vector.extract_strided_slice %52 {offsets = [0, 256], sizes = [8, 128], strides = [1, 1]} : vector<8x384xf32> to vector<8x128xf32>
    %71 = arith.mulf %60, %70 : vector<8x128xf32>
    %72 = arith.addf %69, %71 : vector<8x128xf32>
    %73 = math.tanh %72 : vector<8x128xf32>
    %cst_18 = arith.constant 1.000000e+00 : f32
    %74 = vector.broadcast %cst_18 : f32 to vector<8x128xf32>
    %75 = arith.subf %74, %68 : vector<8x128xf32>
    %76 = arith.mulf %75, %73 : vector<8x128xf32>
    %77 = arith.mulf %68, %42 : vector<8x128xf32>
    %78 = arith.addf %76, %77 : vector<8x128xf32>
    %79 = arith.index_cast %c1_i32_12 : i32 to index
    %c0_19 = arith.constant 0 : index
    %c0_20 = arith.constant 0 : index
    %80 = vector.load %arg8[%79, %c0_19, %c0_20] : memref<8x8x128xf32, #tpu.memory_space<vmem>>, vector<1x8x128xf32>
    %81 = vector.shape_cast %80 : vector<1x8x128xf32> to vector<8x128xf32>
    %82 = vector.shape_cast %78 : vector<8x128xf32> to vector<1x8x128xf32>
    tpu.vector_store %arg8[%79, %c0_19, %c0_20], %82 {strides = array<i32>} : memref<8x8x128xf32, #tpu.memory_space<vmem>>, vector<1x8x128xf32>,
    %c2_i32_21 = arith.constant 2 : i32
    %83 = arith.index_cast %c2_i32_21 : i32 to index
    %c0_22 = arith.constant 0 : index
    %c0_23 = arith.constant 0 : index
    %84 = vector.load %arg1[%83, %c0_22, %c0_23] : memref<8x8x384xf32, #tpu.memory_space<vmem>>, vector<1x8x384xf32>
    %85 = vector.shape_cast %84 : vector<1x8x384xf32> to vector<8x384xf32>
    %86 = arith.truncf %78 : vector<8x128xf32> to vector<8x128xbf16>
    %cst_24 = arith.constant dense<0.000000e+00> : vector<8x384xf32>
    %87 = tpu.matmul %86, %6, %cst_24 {dimension_numbers = #tpu.dot_dimension_numbers<[1], [0], [0], [1], [0, 0, 1, 1], [], []>} : vector<8x128xbf16>, vector<128x384xbf16>, vector<8x384xf32> -> vector<8x384xf32>
    %88 = arith.addf %87, %9 : vector<8x384xf32>
    %89 = vector.extract_strided_slice %85 {offsets = [0, 0], sizes = [8, 128], strides = [1, 1]} : vector<8x384xf32> to vector<8x128xf32>
    %90 = vector.extract_strided_slice %88 {offsets = [0, 0], sizes = [8, 128], strides = [1, 1]} : vector<8x384xf32> to vector<8x128xf32>
    %91 = arith.addf %89, %90 : vector<8x128xf32>
    %92 = arith.negf %91 : vector<8x128xf32>
    %93 = math.exp %92 : vector<8x128xf32>
    %cst_25 = arith.constant 1.000000e+00 : f32
    %94 = vector.broadcast %cst_25 : f32 to vector<8x128xf32>
    %95 = arith.addf %94, %93 : vector<8x128xf32>
    %96 = arith.divf %94, %95 : vector<8x128xf32>
    %97 = vector.extract_strided_slice %85 {offsets = [0, 128], sizes = [8, 128], strides = [1, 1]} : vector<8x384xf32> to vector<8x128xf32>
    %98 = vector.extract_strided_slice %88 {offsets = [0, 128], sizes = [8, 128], strides = [1, 1]} : vector<8x384xf32> to vector<8x128xf32>
    %99 = arith.addf %97, %98 : vector<8x128xf32>
    %100 = arith.negf %99 : vector<8x128xf32>
    %101 = math.exp %100 : vector<8x128xf32>
    %cst_26 = arith.constant 1.000000e+00 : f32
    %102 = vector.broadcast %cst_26 : f32 to vector<8x128xf32>
    %103 = arith.addf %102, %101 : vector<8x128xf32>
    %104 = arith.divf %102, %103 : vector<8x128xf32>
    %105 = vector.extract_strided_slice %85 {offsets = [0, 256], sizes = [8, 128], strides = [1, 1]} : vector<8x384xf32> to vector<8x128xf32>
    %106 = vector.extract_strided_slice %88 {offsets = [0, 256], sizes = [8, 128], strides = [1, 1]} : vector<8x384xf32> to vector<8x128xf32>
    %107 = arith.mulf %96, %106 : vector<8x128xf32>
    %108 = arith.addf %105, %107 : vector<8x128xf32>
    %109 = math.tanh %108 : vector<8x128xf32>
    %cst_27 = arith.constant 1.000000e+00 : f32
    %110 = vector.broadcast %cst_27 : f32 to vector<8x128xf32>
    %111 = arith.subf %110, %104 : vector<8x128xf32>
    %112 = arith.mulf %111, %109 : vector<8x128xf32>
    %113 = arith.mulf %104, %78 : vector<8x128xf32>
    %114 = arith.addf %112, %113 : vector<8x128xf32>
    %115 = arith.index_cast %c2_i32_21 : i32 to index
    %c0_28 = arith.constant 0 : index
    %c0_29 = arith.constant 0 : index
    %116 = vector.load %arg8[%115, %c0_28, %c0_29] : memref<8x8x128xf32, #tpu.memory_space<vmem>>, vector<1x8x128xf32>
    %117 = vector.shape_cast %116 : vector<1x8x128xf32> to vector<8x128xf32>
    %118 = vector.shape_cast %114 : vector<8x128xf32> to vector<1x8x128xf32>
    tpu.vector_store %arg8[%115, %c0_28, %c0_29], %118 {strides = array<i32>} : memref<8x8x128xf32, #tpu.memory_space<vmem>>, vector<1x8x128xf32>,
    %c3_i32 = arith.constant 3 : i32
    %119 = arith.index_cast %c3_i32 : i32 to index
    %c0_30 = arith.constant 0 : index
    %c0_31 = arith.constant 0 : index
    %120 = vector.load %arg1[%119, %c0_30, %c0_31] : memref<8x8x384xf32, #tpu.memory_space<vmem>>, vector<1x8x384xf32>
    %121 = vector.shape_cast %120 : vector<1x8x384xf32> to vector<8x384xf32>
    %122 = arith.truncf %114 : vector<8x128xf32> to vector<8x128xbf16>
    %cst_32 = arith.constant dense<0.000000e+00> : vector<8x384xf32>
    %123 = tpu.matmul %122, %6, %cst_32 {dimension_numbers = #tpu.dot_dimension_numbers<[1], [0], [0], [1], [0, 0, 1, 1], [], []>} : vector<8x128xbf16>, vector<128x384xbf16>, vector<8x384xf32> -> vector<8x384xf32>
    %124 = arith.addf %123, %9 : vector<8x384xf32>
    %125 = vector.extract_strided_slice %121 {offsets = [0, 0], sizes = [8, 128], strides = [1, 1]} : vector<8x384xf32> to vector<8x128xf32>
    %126 = vector.extract_strided_slice %124 {offsets = [0, 0], sizes = [8, 128], strides = [1, 1]} : vector<8x384xf32> to vector<8x128xf32>
    %127 = arith.addf %125, %126 : vector<8x128xf32>
    %128 = arith.negf %127 : vector<8x128xf32>
    %129 = math.exp %128 : vector<8x128xf32>
    %cst_33 = arith.constant 1.000000e+00 : f32
    %130 = vector.broadcast %cst_33 : f32 to vector<8x128xf32>
    %131 = arith.addf %130, %129 : vector<8x128xf32>
    %132 = arith.divf %130, %131 : vector<8x128xf32>
    %133 = vector.extract_strided_slice %121 {offsets = [0, 128], sizes = [8, 128], strides = [1, 1]} : vector<8x384xf32> to vector<8x128xf32>
    %134 = vector.extract_strided_slice %124 {offsets = [0, 128], sizes = [8, 128], strides = [1, 1]} : vector<8x384xf32> to vector<8x128xf32>
    %135 = arith.addf %133, %134 : vector<8x128xf32>
    %136 = arith.negf %135 : vector<8x128xf32>
    %137 = math.exp %136 : vector<8x128xf32>
    %cst_34 = arith.constant 1.000000e+00 : f32
    %138 = vector.broadcast %cst_34 : f32 to vector<8x128xf32>
    %139 = arith.addf %138, %137 : vector<8x128xf32>
    %140 = arith.divf %138, %139 : vector<8x128xf32>
    %141 = vector.extract_strided_slice %121 {offsets = [0, 256], sizes = [8, 128], strides = [1, 1]} : vector<8x384xf32> to vector<8x128xf32>
    %142 = vector.extract_strided_slice %124 {offsets = [0, 256], sizes = [8, 128], strides = [1, 1]} : vector<8x384xf32> to vector<8x128xf32>
    %143 = arith.mulf %132, %142 : vector<8x128xf32>
    %144 = arith.addf %141, %143 : vector<8x128xf32>
    %145 = math.tanh %144 : vector<8x128xf32>
    %cst_35 = arith.constant 1.000000e+00 : f32
    %146 = vector.broadcast %cst_35 : f32 to vector<8x128xf32>
    %147 = arith.subf %146, %140 : vector<8x128xf32>
    %148 = arith.mulf %147, %145 : vector<8x128xf32>
    %149 = arith.mulf %140, %114 : vector<8x128xf32>
    %150 = arith.addf %148, %149 : vector<8x128xf32>
    %151 = arith.index_cast %c3_i32 : i32 to index
    %c0_36 = arith.constant 0 : index
    %c0_37 = arith.constant 0 : index
    %152 = vector.load %arg8[%151, %c0_36, %c0_37] : memref<8x8x128xf32, #tpu.memory_space<vmem>>, vector<1x8x128xf32>
    %153 = vector.shape_cast %152 : vector<1x8x128xf32> to vector<8x128xf32>
    %154 = vector.shape_cast %150 : vector<8x128xf32> to vector<1x8x128xf32>
    tpu.vector_store %arg8[%151, %c0_36, %c0_37], %154 {strides = array<i32>} : memref<8x8x128xf32, #tpu.memory_space<vmem>>, vector<1x8x128xf32>,
    %c4_i32 = arith.constant 4 : i32
    %155 = arith.index_cast %c4_i32 : i32 to index
    %c0_38 = arith.constant 0 : index
    %c0_39 = arith.constant 0 : index
    %156 = vector.load %arg1[%155, %c0_38, %c0_39] : memref<8x8x384xf32, #tpu.memory_space<vmem>>, vector<1x8x384xf32>
    %157 = vector.shape_cast %156 : vector<1x8x384xf32> to vector<8x384xf32>
    %158 = arith.truncf %150 : vector<8x128xf32> to vector<8x128xbf16>
    %cst_40 = arith.constant dense<0.000000e+00> : vector<8x384xf32>
    %159 = tpu.matmul %158, %6, %cst_40 {dimension_numbers = #tpu.dot_dimension_numbers<[1], [0], [0], [1], [0, 0, 1, 1], [], []>} : vector<8x128xbf16>, vector<128x384xbf16>, vector<8x384xf32> -> vector<8x384xf32>
    %160 = arith.addf %159, %9 : vector<8x384xf32>
    %161 = vector.extract_strided_slice %157 {offsets = [0, 0], sizes = [8, 128], strides = [1, 1]} : vector<8x384xf32> to vector<8x128xf32>
    %162 = vector.extract_strided_slice %160 {offsets = [0, 0], sizes = [8, 128], strides = [1, 1]} : vector<8x384xf32> to vector<8x128xf32>
    %163 = arith.addf %161, %162 : vector<8x128xf32>
    %164 = arith.negf %163 : vector<8x128xf32>
    %165 = math.exp %164 : vector<8x128xf32>
    %cst_41 = arith.constant 1.000000e+00 : f32
    %166 = vector.broadcast %cst_41 : f32 to vector<8x128xf32>
    %167 = arith.addf %166, %165 : vector<8x128xf32>
    %168 = arith.divf %166, %167 : vector<8x128xf32>
    %169 = vector.extract_strided_slice %157 {offsets = [0, 128], sizes = [8, 128], strides = [1, 1]} : vector<8x384xf32> to vector<8x128xf32>
    %170 = vector.extract_strided_slice %160 {offsets = [0, 128], sizes = [8, 128], strides = [1, 1]} : vector<8x384xf32> to vector<8x128xf32>
    %171 = arith.addf %169, %170 : vector<8x128xf32>
    %172 = arith.negf %171 : vector<8x128xf32>
    %173 = math.exp %172 : vector<8x128xf32>
    %cst_42 = arith.constant 1.000000e+00 : f32
    %174 = vector.broadcast %cst_42 : f32 to vector<8x128xf32>
    %175 = arith.addf %174, %173 : vector<8x128xf32>
    %176 = arith.divf %174, %175 : vector<8x128xf32>
    %177 = vector.extract_strided_slice %157 {offsets = [0, 256], sizes = [8, 128], strides = [1, 1]} : vector<8x384xf32> to vector<8x128xf32>
    %178 = vector.extract_strided_slice %160 {offsets = [0, 256], sizes = [8, 128], strides = [1, 1]} : vector<8x384xf32> to vector<8x128xf32>
    %179 = arith.mulf %168, %178 : vector<8x128xf32>
    %180 = arith.addf %177, %179 : vector<8x128xf32>
    %181 = math.tanh %180 : vector<8x128xf32>
    %cst_43 = arith.constant 1.000000e+00 : f32
    %182 = vector.broadcast %cst_43 : f32 to vector<8x128xf32>
    %183 = arith.subf %182, %176 : vector<8x128xf32>
    %184 = arith.mulf %183, %181 : vector<8x128xf32>
    %185 = arith.mulf %176, %150 : vector<8x128xf32>
    %186 = arith.addf %184, %185 : vector<8x128xf32>
    %187 = arith.index_cast %c4_i32 : i32 to index
    %c0_44 = arith.constant 0 : index
    %c0_45 = arith.constant 0 : index
    %188 = vector.load %arg8[%187, %c0_44, %c0_45] : memref<8x8x128xf32, #tpu.memory_space<vmem>>, vector<1x8x128xf32>
    %189 = vector.shape_cast %188 : vector<1x8x128xf32> to vector<8x128xf32>
    %190 = vector.shape_cast %186 : vector<8x128xf32> to vector<1x8x128xf32>
    tpu.vector_store %arg8[%187, %c0_44, %c0_45], %190 {strides = array<i32>} : memref<8x8x128xf32, #tpu.memory_space<vmem>>, vector<1x8x128xf32>,
    %c5_i32 = arith.constant 5 : i32
    %191 = arith.index_cast %c5_i32 : i32 to index
    %c0_46 = arith.constant 0 : index
    %c0_47 = arith.constant 0 : index
    %192 = vector.load %arg1[%191, %c0_46, %c0_47] : memref<8x8x384xf32, #tpu.memory_space<vmem>>, vector<1x8x384xf32>
    %193 = vector.shape_cast %192 : vector<1x8x384xf32> to vector<8x384xf32>
    %194 = arith.truncf %186 : vector<8x128xf32> to vector<8x128xbf16>
    %cst_48 = arith.constant dense<0.000000e+00> : vector<8x384xf32>
    %195 = tpu.matmul %194, %6, %cst_48 {dimension_numbers = #tpu.dot_dimension_numbers<[1], [0], [0], [1], [0, 0, 1, 1], [], []>} : vector<8x128xbf16>, vector<128x384xbf16>, vector<8x384xf32> -> vector<8x384xf32>
    %196 = arith.addf %195, %9 : vector<8x384xf32>
    %197 = vector.extract_strided_slice %193 {offsets = [0, 0], sizes = [8, 128], strides = [1, 1]} : vector<8x384xf32> to vector<8x128xf32>
    %198 = vector.extract_strided_slice %196 {offsets = [0, 0], sizes = [8, 128], strides = [1, 1]} : vector<8x384xf32> to vector<8x128xf32>
    %199 = arith.addf %197, %198 : vector<8x128xf32>
    %200 = arith.negf %199 : vector<8x128xf32>
    %201 = math.exp %200 : vector<8x128xf32>
    %cst_49 = arith.constant 1.000000e+00 : f32
    %202 = vector.broadcast %cst_49 : f32 to vector<8x128xf32>
    %203 = arith.addf %202, %201 : vector<8x128xf32>
    %204 = arith.divf %202, %203 : vector<8x128xf32>
    %205 = vector.extract_strided_slice %193 {offsets = [0, 128], sizes = [8, 128], strides = [1, 1]} : vector<8x384xf32> to vector<8x128xf32>
    %206 = vector.extract_strided_slice %196 {offsets = [0, 128], sizes = [8, 128], strides = [1, 1]} : vector<8x384xf32> to vector<8x128xf32>
    %207 = arith.addf %205, %206 : vector<8x128xf32>
    %208 = arith.negf %207 : vector<8x128xf32>
    %209 = math.exp %208 : vector<8x128xf32>
    %cst_50 = arith.constant 1.000000e+00 : f32
    %210 = vector.broadcast %cst_50 : f32 to vector<8x128xf32>
    %211 = arith.addf %210, %209 : vector<8x128xf32>
    %212 = arith.divf %210, %211 : vector<8x128xf32>
    %213 = vector.extract_strided_slice %193 {offsets = [0, 256], sizes = [8, 128], strides = [1, 1]} : vector<8x384xf32> to vector<8x128xf32>
    %214 = vector.extract_strided_slice %196 {offsets = [0, 256], sizes = [8, 128], strides = [1, 1]} : vector<8x384xf32> to vector<8x128xf32>
    %215 = arith.mulf %204, %214 : vector<8x128xf32>
    %216 = arith.addf %213, %215 : vector<8x128xf32>
    %217 = math.tanh %216 : vector<8x128xf32>
    %cst_51 = arith.constant 1.000000e+00 : f32
    %218 = vector.broadcast %cst_51 : f32 to vector<8x128xf32>
    %219 = arith.subf %218, %212 : vector<8x128xf32>
    %220 = arith.mulf %219, %217 : vector<8x128xf32>
    %221 = arith.mulf %212, %186 : vector<8x128xf32>
    %222 = arith.addf %220, %221 : vector<8x128xf32>
    %223 = arith.index_cast %c5_i32 : i32 to index
    %c0_52 = arith.constant 0 : index
    %c0_53 = arith.constant 0 : index
    %224 = vector.load %arg8[%223, %c0_52, %c0_53] : memref<8x8x128xf32, #tpu.memory_space<vmem>>, vector<1x8x128xf32>
    %225 = vector.shape_cast %224 : vector<1x8x128xf32> to vector<8x128xf32>
    %226 = vector.shape_cast %222 : vector<8x128xf32> to vector<1x8x128xf32>
    tpu.vector_store %arg8[%223, %c0_52, %c0_53], %226 {strides = array<i32>} : memref<8x8x128xf32, #tpu.memory_space<vmem>>, vector<1x8x128xf32>,
    %c6_i32 = arith.constant 6 : i32
    %227 = arith.index_cast %c6_i32 : i32 to index
    %c0_54 = arith.constant 0 : index
    %c0_55 = arith.constant 0 : index
    %228 = vector.load %arg1[%227, %c0_54, %c0_55] : memref<8x8x384xf32, #tpu.memory_space<vmem>>, vector<1x8x384xf32>
    %229 = vector.shape_cast %228 : vector<1x8x384xf32> to vector<8x384xf32>
    %230 = arith.truncf %222 : vector<8x128xf32> to vector<8x128xbf16>
    %cst_56 = arith.constant dense<0.000000e+00> : vector<8x384xf32>
    %231 = tpu.matmul %230, %6, %cst_56 {dimension_numbers = #tpu.dot_dimension_numbers<[1], [0], [0], [1], [0, 0, 1, 1], [], []>} : vector<8x128xbf16>, vector<128x384xbf16>, vector<8x384xf32> -> vector<8x384xf32>
    %232 = arith.addf %231, %9 : vector<8x384xf32>
    %233 = vector.extract_strided_slice %229 {offsets = [0, 0], sizes = [8, 128], strides = [1, 1]} : vector<8x384xf32> to vector<8x128xf32>
    %234 = vector.extract_strided_slice %232 {offsets = [0, 0], sizes = [8, 128], strides = [1, 1]} : vector<8x384xf32> to vector<8x128xf32>
    %235 = arith.addf %233, %234 : vector<8x128xf32>
    %236 = arith.negf %235 : vector<8x128xf32>
    %237 = math.exp %236 : vector<8x128xf32>
    %cst_57 = arith.constant 1.000000e+00 : f32
    %238 = vector.broadcast %cst_57 : f32 to vector<8x128xf32>
    %239 = arith.addf %238, %237 : vector<8x128xf32>
    %240 = arith.divf %238, %239 : vector<8x128xf32>
    %241 = vector.extract_strided_slice %229 {offsets = [0, 128], sizes = [8, 128], strides = [1, 1]} : vector<8x384xf32> to vector<8x128xf32>
    %242 = vector.extract_strided_slice %232 {offsets = [0, 128], sizes = [8, 128], strides = [1, 1]} : vector<8x384xf32> to vector<8x128xf32>
    %243 = arith.addf %241, %242 : vector<8x128xf32>
    %244 = arith.negf %243 : vector<8x128xf32>
    %245 = math.exp %244 : vector<8x128xf32>
    %cst_58 = arith.constant 1.000000e+00 : f32
    %246 = vector.broadcast %cst_58 : f32 to vector<8x128xf32>
    %247 = arith.addf %246, %245 : vector<8x128xf32>
    %248 = arith.divf %246, %247 : vector<8x128xf32>
    %249 = vector.extract_strided_slice %229 {offsets = [0, 256], sizes = [8, 128], strides = [1, 1]} : vector<8x384xf32> to vector<8x128xf32>
    %250 = vector.extract_strided_slice %232 {offsets = [0, 256], sizes = [8, 128], strides = [1, 1]} : vector<8x384xf32> to vector<8x128xf32>
    %251 = arith.mulf %240, %250 : vector<8x128xf32>
    %252 = arith.addf %249, %251 : vector<8x128xf32>
    %253 = math.tanh %252 : vector<8x128xf32>
    %cst_59 = arith.constant 1.000000e+00 : f32
    %254 = vector.broadcast %cst_59 : f32 to vector<8x128xf32>
    %255 = arith.subf %254, %248 : vector<8x128xf32>
    %256 = arith.mulf %255, %253 : vector<8x128xf32>
    %257 = arith.mulf %248, %222 : vector<8x128xf32>
    %258 = arith.addf %256, %257 : vector<8x128xf32>
    %259 = arith.index_cast %c6_i32 : i32 to index
    %c0_60 = arith.constant 0 : index
    %c0_61 = arith.constant 0 : index
    %260 = vector.load %arg8[%259, %c0_60, %c0_61] : memref<8x8x128xf32, #tpu.memory_space<vmem>>, vector<1x8x128xf32>
    %261 = vector.shape_cast %260 : vector<1x8x128xf32> to vector<8x128xf32>
    %262 = vector.shape_cast %258 : vector<8x128xf32> to vector<1x8x128xf32>
    tpu.vector_store %arg8[%259, %c0_60, %c0_61], %262 {strides = array<i32>} : memref<8x8x128xf32, #tpu.memory_space<vmem>>, vector<1x8x128xf32>,
    %c7_i32 = arith.constant 7 : i32
    %263 = arith.index_cast %c7_i32 : i32 to index
    %c0_62 = arith.constant 0 : index
    %c0_63 = arith.constant 0 : index
    %264 = vector.load %arg1[%263, %c0_62, %c0_63] : memref<8x8x384xf32, #tpu.memory_space<vmem>>, vector<1x8x384xf32>
    %265 = vector.shape_cast %264 : vector<1x8x384xf32> to vector<8x384xf32>
    %266 = arith.truncf %258 : vector<8x128xf32> to vector<8x128xbf16>
    %cst_64 = arith.constant dense<0.000000e+00> : vector<8x384xf32>
    %267 = tpu.matmul %266, %6, %cst_64 {dimension_numbers = #tpu.dot_dimension_numbers<[1], [0], [0], [1], [0, 0, 1, 1], [], []>} : vector<8x128xbf16>, vector<128x384xbf16>, vector<8x384xf32> -> vector<8x384xf32>
    %268 = arith.addf %267, %9 : vector<8x384xf32>
    %269 = vector.extract_strided_slice %265 {offsets = [0, 0], sizes = [8, 128], strides = [1, 1]} : vector<8x384xf32> to vector<8x128xf32>
    %270 = vector.extract_strided_slice %268 {offsets = [0, 0], sizes = [8, 128], strides = [1, 1]} : vector<8x384xf32> to vector<8x128xf32>
    %271 = arith.addf %269, %270 : vector<8x128xf32>
    %272 = arith.negf %271 : vector<8x128xf32>
    %273 = math.exp %272 : vector<8x128xf32>
    %cst_65 = arith.constant 1.000000e+00 : f32
    %274 = vector.broadcast %cst_65 : f32 to vector<8x128xf32>
    %275 = arith.addf %274, %273 : vector<8x128xf32>
    %276 = arith.divf %274, %275 : vector<8x128xf32>
    %277 = vector.extract_strided_slice %265 {offsets = [0, 128], sizes = [8, 128], strides = [1, 1]} : vector<8x384xf32> to vector<8x128xf32>
    %278 = vector.extract_strided_slice %268 {offsets = [0, 128], sizes = [8, 128], strides = [1, 1]} : vector<8x384xf32> to vector<8x128xf32>
    %279 = arith.addf %277, %278 : vector<8x128xf32>
    %280 = arith.negf %279 : vector<8x128xf32>
    %281 = math.exp %280 : vector<8x128xf32>
    %cst_66 = arith.constant 1.000000e+00 : f32
    %282 = vector.broadcast %cst_66 : f32 to vector<8x128xf32>
    %283 = arith.addf %282, %281 : vector<8x128xf32>
    %284 = arith.divf %282, %283 : vector<8x128xf32>
    %285 = vector.extract_strided_slice %265 {offsets = [0, 256], sizes = [8, 128], strides = [1, 1]} : vector<8x384xf32> to vector<8x128xf32>
    %286 = vector.extract_strided_slice %268 {offsets = [0, 256], sizes = [8, 128], strides = [1, 1]} : vector<8x384xf32> to vector<8x128xf32>
    %287 = arith.mulf %276, %286 : vector<8x128xf32>
    %288 = arith.addf %285, %287 : vector<8x128xf32>
    %289 = math.tanh %288 : vector<8x128xf32>
    %cst_67 = arith.constant 1.000000e+00 : f32
    %290 = vector.broadcast %cst_67 : f32 to vector<8x128xf32>
    %291 = arith.subf %290, %284 : vector<8x128xf32>
    %292 = arith.mulf %291, %289 : vector<8x128xf32>
    %293 = arith.mulf %284, %258 : vector<8x128xf32>
    %294 = arith.addf %292, %293 : vector<8x128xf32>
    %295 = arith.index_cast %c7_i32 : i32 to index
    %c0_68 = arith.constant 0 : index
    %c0_69 = arith.constant 0 : index
    %296 = vector.load %arg8[%295, %c0_68, %c0_69] : memref<8x8x128xf32, #tpu.memory_space<vmem>>, vector<1x8x128xf32>
    %297 = vector.shape_cast %296 : vector<1x8x128xf32> to vector<8x128xf32>
    %298 = vector.shape_cast %294 : vector<8x128xf32> to vector<1x8x128xf32>
    tpu.vector_store %arg8[%295, %c0_68, %c0_69], %298 {strides = array<i32>} : memref<8x8x128xf32, #tpu.memory_space<vmem>>, vector<1x8x128xf32>,
    %c8_i32 = arith.constant 8 : i32
    %c0_70 = arith.constant 0 : index
    %c0_71 = arith.constant 0 : index
    %299 = vector.load %arg9[%c0_70, %c0_71] : memref<8x128xf32, #tpu.memory_space<vmem>>, vector<8x128xf32>
    tpu.vector_store %arg9[%c0_70, %c0_71], %294 {strides = array<i32>} : memref<8x128xf32, #tpu.memory_space<vmem>>, vector<8x128xf32>,
    %c0_i32_72 = arith.constant 0 : i32
    %300 = tpu.memref_slice %arg15[%c0_i32_72] : memref<3x!tpu.dma_semaphore, #tpu.memory_space<semaphore_mem>> -> memref<1x!tpu.dma_semaphore, #tpu.memory_space<semaphore_mem>>
    %301 = tpu.memref_squeeze %300 : memref<1x!tpu.dma_semaphore, #tpu.memory_space<semaphore_mem>> -> memref<!tpu.dma_semaphore, #tpu.memory_space<semaphore_mem>>
    tpu.wait_dma2 semaphore(%301 : memref<!tpu.dma_semaphore, #tpu.memory_space<semaphore_mem>>) src(%arg5 : memref<128x512xbf16, #tpu.memory_space<any>>) dst(%arg12 : memref<128x512xbf16, #tpu.memory_space<vmem>>)
    %c1_i32_73 = arith.constant 1 : i32
    %302 = tpu.memref_slice %arg15[%c1_i32_73] : memref<3x!tpu.dma_semaphore, #tpu.memory_space<semaphore_mem>> -> memref<1x!tpu.dma_semaphore, #tpu.memory_space<semaphore_mem>>
    %303 = tpu.memref_squeeze %302 : memref<1x!tpu.dma_semaphore, #tpu.memory_space<semaphore_mem>> -> memref<!tpu.dma_semaphore, #tpu.memory_space<semaphore_mem>>
    tpu.wait_dma2 semaphore(%303 : memref<!tpu.dma_semaphore, #tpu.memory_space<semaphore_mem>>) src(%arg6 : memref<128x512xbf16, #tpu.memory_space<any>>) dst(%arg13 : memref<128x512xbf16, #tpu.memory_space<vmem>>)
    %c2_i32_74 = arith.constant 2 : i32
    %304 = tpu.memref_slice %arg15[%c2_i32_74] : memref<3x!tpu.dma_semaphore, #tpu.memory_space<semaphore_mem>> -> memref<1x!tpu.dma_semaphore, #tpu.memory_space<semaphore_mem>>
    %305 = tpu.memref_squeeze %304 : memref<1x!tpu.dma_semaphore, #tpu.memory_space<semaphore_mem>> -> memref<!tpu.dma_semaphore, #tpu.memory_space<semaphore_mem>>
    tpu.wait_dma2 semaphore(%305 : memref<!tpu.dma_semaphore, #tpu.memory_space<semaphore_mem>>) src(%arg7 : memref<128x128xbf16, #tpu.memory_space<any>>) dst(%arg14 : memref<128x128xbf16, #tpu.memory_space<vmem>>)
    %c0_75 = arith.constant 0 : index
    %c0_76 = arith.constant 0 : index
    %306 = vector.load %arg12[%c0_75, %c0_76] : memref<128x512xbf16, #tpu.memory_space<vmem>>, vector<128x512xbf16>
    %c0_77 = arith.constant 0 : index
    %c0_78 = arith.constant 0 : index
    %307 = vector.load %arg13[%c0_77, %c0_78] : memref<128x512xbf16, #tpu.memory_space<vmem>>, vector<128x512xbf16>
    %c0_79 = arith.constant 0 : index
    %c0_80 = arith.constant 0 : index
    %308 = vector.load %arg14[%c0_79, %c0_80] : memref<128x128xbf16, #tpu.memory_space<vmem>>, vector<128x128xbf16>
    %c0_81 = arith.constant 0 : index
    %c0_82 = arith.constant 0 : index
    %309 = vector.load %arg4[%c0_81, %c0_82] : memref<1x128xf32, #tpu.memory_space<vmem>>, vector<1x128xf32>
    %310 = vector.shape_cast %309 : vector<1x128xf32> to vector<1x128xf32>
    %311 = vector.broadcast %310 : vector<1x128xf32> to vector<8x128xf32>
    %312 = tpu.iota {dimensions = array<i32: 1>} : vector<8x128xi32>
    %c1_i32_83 = arith.constant 1 : i32
    %313 = vector.broadcast %c1_i32_83 : i32 to vector<8x128xi32>
    %314 = arith.cmpi eq, %312, %313 : vector<8x128xi32>
    %315 = arith.extui %314 : vector<8x128xi1> to vector<8x128xi32>
    %316 = arith.sitofp %315 : vector<8x128xi32> to vector<8x128xf32>
    %317 = arith.truncf %316 : vector<8x128xf32> to vector<8x128xbf16>
    %c0_i32_84 = arith.constant 0 : i32
    %cst_85 = arith.constant dense<0.000000e+00> : vector<8x512xf32>
    %318 = tpu.matmul %317, %306, %cst_85 {dimension_numbers = #tpu.dot_dimension_numbers<[1], [0], [0], [1], [0, 0, 1, 1], [], []>} : vector<8x128xbf16>, vector<128x512xbf16>, vector<8x512xf32> -> vector<8x512xf32>
    %319 = arith.truncf %294 : vector<8x128xf32> to vector<8x128xbf16>
    %cst_86 = arith.constant dense<0.000000e+00> : vector<8x512xf32>
    %320 = tpu.matmul %319, %307, %cst_86 {dimension_numbers = #tpu.dot_dimension_numbers<[1], [0], [0], [1], [0, 0, 1, 1], [], []>} : vector<8x128xbf16>, vector<128x512xbf16>, vector<8x512xf32> -> vector<8x512xf32>
    %321 = arith.addf %318, %320 : vector<8x512xf32>
    %322 = vector.extract_strided_slice %321 {offsets = [0, 0], sizes = [8, 128], strides = [1, 1]} : vector<8x512xf32> to vector<8x128xf32>
    %323 = arith.negf %322 : vector<8x128xf32>
    %324 = math.exp %323 : vector<8x128xf32>
    %cst_87 = arith.constant 1.000000e+00 : f32
    %325 = vector.broadcast %cst_87 : f32 to vector<8x128xf32>
    %326 = arith.addf %325, %324 : vector<8x128xf32>
    %327 = arith.divf %325, %326 : vector<8x128xf32>
    %328 = vector.extract_strided_slice %321 {offsets = [0, 128], sizes = [8, 128], strides = [1, 1]} : vector<8x512xf32> to vector<8x128xf32>
    %329 = arith.negf %328 : vector<8x128xf32>
    %330 = math.exp %329 : vector<8x128xf32>
    %cst_88 = arith.constant 1.000000e+00 : f32
    %331 = vector.broadcast %cst_88 : f32 to vector<8x128xf32>
    %332 = arith.addf %331, %330 : vector<8x128xf32>
    %333 = arith.divf %331, %332 : vector<8x128xf32>
    %334 = vector.extract_strided_slice %321 {offsets = [0, 256], sizes = [8, 128], strides = [1, 1]} : vector<8x512xf32> to vector<8x128xf32>
    %335 = vector.extract_strided_slice %321 {offsets = [0, 384], sizes = [8, 128], strides = [1, 1]} : vector<8x512xf32> to vector<8x128xf32>
    %336 = arith.mulf %327, %335 : vector<8x128xf32>
    %337 = arith.addf %334, %336 : vector<8x128xf32>
    %338 = math.tanh %337 : vector<8x128xf32>
    %cst_89 = arith.constant 1.000000e+00 : f32
    %339 = vector.broadcast %cst_89 : f32 to vector<8x128xf32>
    %340 = arith.subf %339, %333 : vector<8x128xf32>
    %341 = arith.mulf %340, %338 : vector<8x128xf32>
    %342 = arith.mulf %333, %294 : vector<8x128xf32>
    %343 = arith.addf %341, %342 : vector<8x128xf32>
    %344 = arith.truncf %343 : vector<8x128xf32> to vector<8x128xbf16>
    %cst_90 = arith.constant dense<0.000000e+00> : vector<8x128xf32>
    %345 = tpu.matmul %344, %308, %cst_90 {dimension_numbers = #tpu.dot_dimension_numbers<[1], [0], [0], [1], [0, 0, 1, 1], [], []>} : vector<8x128xbf16>, vector<128x128xbf16>, vector<8x128xf32> -> vector<8x128xf32>
    %346 = arith.addf %345, %311 : vector<8x128xf32>
    %cst_91 = arith.constant dense<0xFF800000> : vector<8xf32>
    %347 = vector.multi_reduction <maximumf>, %346, %cst_91 [1] : vector<8x128xf32> to vector<8xf32>
    %348 = vector.shape_cast %347 : vector<8xf32> to vector<8x1xf32>
    %349 = vector.broadcast %348 : vector<8x1xf32> to vector<8x128xf32>
    %350 = arith.subf %346, %349 : vector<8x128xf32>
    %351 = math.exp %350 : vector<8x128xf32>
    %cst_92 = arith.constant dense<0.000000e+00> : vector<8xf32>
    %352 = vector.multi_reduction <add>, %351, %cst_92 [1] : vector<8x128xf32> to vector<8xf32>
    %353 = vector.shape_cast %352 : vector<8xf32> to vector<8x1xf32>
    %354 = math.log %353 : vector<8x1xf32>
    %355 = arith.addf %354, %348 : vector<8x1xf32>
    %356 = vector.broadcast %355 : vector<8x1xf32> to vector<8x128xf32>
    %357 = arith.subf %346, %356 : vector<8x128xf32>
    %358 = arith.index_cast %c0_i32_84 : i32 to index
    %c0_93 = arith.constant 0 : index
    %c0_94 = arith.constant 0 : index
    %359 = vector.load %arg10[%358, %c0_93, %c0_94] : memref<8x8x128xf32, #tpu.memory_space<vmem>>, vector<1x8x128xf32>
    %360 = vector.shape_cast %359 : vector<1x8x128xf32> to vector<8x128xf32>
    %361 = vector.shape_cast %357 : vector<8x128xf32> to vector<1x8x128xf32>
    tpu.vector_store %arg10[%358, %c0_93, %c0_94], %361 {strides = array<i32>} : memref<8x8x128xf32, #tpu.memory_space<vmem>>, vector<1x8x128xf32>,
    %362 = vector.broadcast %348 : vector<8x1xf32> to vector<8x128xf32>
    %363 = arith.cmpf oeq, %346, %362 : vector<8x128xf32>
    %c128_i32 = arith.constant 128 : i32
    %364 = vector.broadcast %c128_i32 : i32 to vector<8x128xi32>
    %365 = arith.select %363, %312, %364 : vector<8x128xi1>, vector<8x128xi32>
    %cst_95 = arith.constant dense<2147483647> : vector<8xi32>
    %366 = vector.multi_reduction <minsi>, %365, %cst_95 [1] : vector<8x128xi32> to vector<8xi32>
    %367 = vector.shape_cast %366 : vector<8xi32> to vector<8x1xi32>
    %368 = vector.broadcast %367 : vector<8x1xi32> to vector<8x128xi32>
    %369 = arith.cmpi eq, %312, %368 : vector<8x128xi32>
    %370 = arith.extui %369 : vector<8x128xi1> to vector<8x128xi32>
    %371 = arith.sitofp %370 : vector<8x128xi32> to vector<8x128xf32>
    %372 = arith.truncf %371 : vector<8x128xf32> to vector<8x128xbf16>
    %c1_i32_96 = arith.constant 1 : i32
    %cst_97 = arith.constant dense<0.000000e+00> : vector<8x512xf32>
    %373 = tpu.matmul %372, %306, %cst_97 {dimension_numbers = #tpu.dot_dimension_numbers<[1], [0], [0], [1], [0, 0, 1, 1], [], []>} : vector<8x128xbf16>, vector<128x512xbf16>, vector<8x512xf32> -> vector<8x512xf32>
    %374 = arith.truncf %343 : vector<8x128xf32> to vector<8x128xbf16>
    %cst_98 = arith.constant dense<0.000000e+00> : vector<8x512xf32>
    %375 = tpu.matmul %374, %307, %cst_98 {dimension_numbers = #tpu.dot_dimension_numbers<[1], [0], [0], [1], [0, 0, 1, 1], [], []>} : vector<8x128xbf16>, vector<128x512xbf16>, vector<8x512xf32> -> vector<8x512xf32>
    %376 = arith.addf %373, %375 : vector<8x512xf32>
    %377 = vector.extract_strided_slice %376 {offsets = [0, 0], sizes = [8, 128], strides = [1, 1]} : vector<8x512xf32> to vector<8x128xf32>
    %378 = arith.negf %377 : vector<8x128xf32>
    %379 = math.exp %378 : vector<8x128xf32>
    %cst_99 = arith.constant 1.000000e+00 : f32
    %380 = vector.broadcast %cst_99 : f32 to vector<8x128xf32>
    %381 = arith.addf %380, %379 : vector<8x128xf32>
    %382 = arith.divf %380, %381 : vector<8x128xf32>
    %383 = vector.extract_strided_slice %376 {offsets = [0, 128], sizes = [8, 128], strides = [1, 1]} : vector<8x512xf32> to vector<8x128xf32>
    %384 = arith.negf %383 : vector<8x128xf32>
    %385 = math.exp %384 : vector<8x128xf32>
    %cst_100 = arith.constant 1.000000e+00 : f32
    %386 = vector.broadcast %cst_100 : f32 to vector<8x128xf32>
    %387 = arith.addf %386, %385 : vector<8x128xf32>
    %388 = arith.divf %386, %387 : vector<8x128xf32>
    %389 = vector.extract_strided_slice %376 {offsets = [0, 256], sizes = [8, 128], strides = [1, 1]} : vector<8x512xf32> to vector<8x128xf32>
    %390 = vector.extract_strided_slice %376 {offsets = [0, 384], sizes = [8, 128], strides = [1, 1]} : vector<8x512xf32> to vector<8x128xf32>
    %391 = arith.mulf %382, %390 : vector<8x128xf32>
    %392 = arith.addf %389, %391 : vector<8x128xf32>
    %393 = math.tanh %392 : vector<8x128xf32>
    %cst_101 = arith.constant 1.000000e+00 : f32
    %394 = vector.broadcast %cst_101 : f32 to vector<8x128xf32>
    %395 = arith.subf %394, %388 : vector<8x128xf32>
    %396 = arith.mulf %395, %393 : vector<8x128xf32>
    %397 = arith.mulf %388, %343 : vector<8x128xf32>
    %398 = arith.addf %396, %397 : vector<8x128xf32>
    %399 = arith.truncf %398 : vector<8x128xf32> to vector<8x128xbf16>
    %cst_102 = arith.constant dense<0.000000e+00> : vector<8x128xf32>
    %400 = tpu.matmul %399, %308, %cst_102 {dimension_numbers = #tpu.dot_dimension_numbers<[1], [0], [0], [1], [0, 0, 1, 1], [], []>} : vector<8x128xbf16>, vector<128x128xbf16>, vector<8x128xf32> -> vector<8x128xf32>
    %401 = arith.addf %400, %311 : vector<8x128xf32>
    %cst_103 = arith.constant dense<0xFF800000> : vector<8xf32>
    %402 = vector.multi_reduction <maximumf>, %401, %cst_103 [1] : vector<8x128xf32> to vector<8xf32>
    %403 = vector.shape_cast %402 : vector<8xf32> to vector<8x1xf32>
    %404 = vector.broadcast %403 : vector<8x1xf32> to vector<8x128xf32>
    %405 = arith.subf %401, %404 : vector<8x128xf32>
    %406 = math.exp %405 : vector<8x128xf32>
    %cst_104 = arith.constant dense<0.000000e+00> : vector<8xf32>
    %407 = vector.multi_reduction <add>, %406, %cst_104 [1] : vector<8x128xf32> to vector<8xf32>
    %408 = vector.shape_cast %407 : vector<8xf32> to vector<8x1xf32>
    %409 = math.log %408 : vector<8x1xf32>
    %410 = arith.addf %409, %403 : vector<8x1xf32>
    %411 = vector.broadcast %410 : vector<8x1xf32> to vector<8x128xf32>
    %412 = arith.subf %401, %411 : vector<8x128xf32>
    %413 = arith.index_cast %c1_i32_96 : i32 to index
    %c0_105 = arith.constant 0 : index
    %c0_106 = arith.constant 0 : index
    %414 = vector.load %arg10[%413, %c0_105, %c0_106] : memref<8x8x128xf32, #tpu.memory_space<vmem>>, vector<1x8x128xf32>
    %415 = vector.shape_cast %414 : vector<1x8x128xf32> to vector<8x128xf32>
    %416 = vector.shape_cast %412 : vector<8x128xf32> to vector<1x8x128xf32>
    tpu.vector_store %arg10[%413, %c0_105, %c0_106], %416 {strides = array<i32>} : memref<8x8x128xf32, #tpu.memory_space<vmem>>, vector<1x8x128xf32>,
    %417 = vector.broadcast %403 : vector<8x1xf32> to vector<8x128xf32>
    %418 = arith.cmpf oeq, %401, %417 : vector<8x128xf32>
    %c128_i32_107 = arith.constant 128 : i32
    %419 = vector.broadcast %c128_i32_107 : i32 to vector<8x128xi32>
    %420 = arith.select %418, %312, %419 : vector<8x128xi1>, vector<8x128xi32>
    %cst_108 = arith.constant dense<2147483647> : vector<8xi32>
    %421 = vector.multi_reduction <minsi>, %420, %cst_108 [1] : vector<8x128xi32> to vector<8xi32>
    %422 = vector.shape_cast %421 : vector<8xi32> to vector<8x1xi32>
    %423 = vector.broadcast %422 : vector<8x1xi32> to vector<8x128xi32>
    %424 = arith.cmpi eq, %312, %423 : vector<8x128xi32>
    %425 = arith.extui %424 : vector<8x128xi1> to vector<8x128xi32>
    %426 = arith.sitofp %425 : vector<8x128xi32> to vector<8x128xf32>
    %427 = arith.truncf %426 : vector<8x128xf32> to vector<8x128xbf16>
    %c2_i32_109 = arith.constant 2 : i32
    %cst_110 = arith.constant dense<0.000000e+00> : vector<8x512xf32>
    %428 = tpu.matmul %427, %306, %cst_110 {dimension_numbers = #tpu.dot_dimension_numbers<[1], [0], [0], [1], [0, 0, 1, 1], [], []>} : vector<8x128xbf16>, vector<128x512xbf16>, vector<8x512xf32> -> vector<8x512xf32>
    %429 = arith.truncf %398 : vector<8x128xf32> to vector<8x128xbf16>
    %cst_111 = arith.constant dense<0.000000e+00> : vector<8x512xf32>
    %430 = tpu.matmul %429, %307, %cst_111 {dimension_numbers = #tpu.dot_dimension_numbers<[1], [0], [0], [1], [0, 0, 1, 1], [], []>} : vector<8x128xbf16>, vector<128x512xbf16>, vector<8x512xf32> -> vector<8x512xf32>
    %431 = arith.addf %428, %430 : vector<8x512xf32>
    %432 = vector.extract_strided_slice %431 {offsets = [0, 0], sizes = [8, 128], strides = [1, 1]} : vector<8x512xf32> to vector<8x128xf32>
    %433 = arith.negf %432 : vector<8x128xf32>
    %434 = math.exp %433 : vector<8x128xf32>
    %cst_112 = arith.constant 1.000000e+00 : f32
    %435 = vector.broadcast %cst_112 : f32 to vector<8x128xf32>
    %436 = arith.addf %435, %434 : vector<8x128xf32>
    %437 = arith.divf %435, %436 : vector<8x128xf32>
    %438 = vector.extract_strided_slice %431 {offsets = [0, 128], sizes = [8, 128], strides = [1, 1]} : vector<8x512xf32> to vector<8x128xf32>
    %439 = arith.negf %438 : vector<8x128xf32>
    %440 = math.exp %439 : vector<8x128xf32>
    %cst_113 = arith.constant 1.000000e+00 : f32
    %441 = vector.broadcast %cst_113 : f32 to vector<8x128xf32>
    %442 = arith.addf %441, %440 : vector<8x128xf32>
    %443 = arith.divf %441, %442 : vector<8x128xf32>
    %444 = vector.extract_strided_slice %431 {offsets = [0, 256], sizes = [8, 128], strides = [1, 1]} : vector<8x512xf32> to vector<8x128xf32>
    %445 = vector.extract_strided_slice %431 {offsets = [0, 384], sizes = [8, 128], strides = [1, 1]} : vector<8x512xf32> to vector<8x128xf32>
    %446 = arith.mulf %437, %445 : vector<8x128xf32>
    %447 = arith.addf %444, %446 : vector<8x128xf32>
    %448 = math.tanh %447 : vector<8x128xf32>
    %cst_114 = arith.constant 1.000000e+00 : f32
    %449 = vector.broadcast %cst_114 : f32 to vector<8x128xf32>
    %450 = arith.subf %449, %443 : vector<8x128xf32>
    %451 = arith.mulf %450, %448 : vector<8x128xf32>
    %452 = arith.mulf %443, %398 : vector<8x128xf32>
    %453 = arith.addf %451, %452 : vector<8x128xf32>
    %454 = arith.truncf %453 : vector<8x128xf32> to vector<8x128xbf16>
    %cst_115 = arith.constant dense<0.000000e+00> : vector<8x128xf32>
    %455 = tpu.matmul %454, %308, %cst_115 {dimension_numbers = #tpu.dot_dimension_numbers<[1], [0], [0], [1], [0, 0, 1, 1], [], []>} : vector<8x128xbf16>, vector<128x128xbf16>, vector<8x128xf32> -> vector<8x128xf32>
    %456 = arith.addf %455, %311 : vector<8x128xf32>
    %cst_116 = arith.constant dense<0xFF800000> : vector<8xf32>
    %457 = vector.multi_reduction <maximumf>, %456, %cst_116 [1] : vector<8x128xf32> to vector<8xf32>
    %458 = vector.shape_cast %457 : vector<8xf32> to vector<8x1xf32>
    %459 = vector.broadcast %458 : vector<8x1xf32> to vector<8x128xf32>
    %460 = arith.subf %456, %459 : vector<8x128xf32>
    %461 = math.exp %460 : vector<8x128xf32>
    %cst_117 = arith.constant dense<0.000000e+00> : vector<8xf32>
    %462 = vector.multi_reduction <add>, %461, %cst_117 [1] : vector<8x128xf32> to vector<8xf32>
    %463 = vector.shape_cast %462 : vector<8xf32> to vector<8x1xf32>
    %464 = math.log %463 : vector<8x1xf32>
    %465 = arith.addf %464, %458 : vector<8x1xf32>
    %466 = vector.broadcast %465 : vector<8x1xf32> to vector<8x128xf32>
    %467 = arith.subf %456, %466 : vector<8x128xf32>
    %468 = arith.index_cast %c2_i32_109 : i32 to index
    %c0_118 = arith.constant 0 : index
    %c0_119 = arith.constant 0 : index
    %469 = vector.load %arg10[%468, %c0_118, %c0_119] : memref<8x8x128xf32, #tpu.memory_space<vmem>>, vector<1x8x128xf32>
    %470 = vector.shape_cast %469 : vector<1x8x128xf32> to vector<8x128xf32>
    %471 = vector.shape_cast %467 : vector<8x128xf32> to vector<1x8x128xf32>
    tpu.vector_store %arg10[%468, %c0_118, %c0_119], %471 {strides = array<i32>} : memref<8x8x128xf32, #tpu.memory_space<vmem>>, vector<1x8x128xf32>,
    %472 = vector.broadcast %458 : vector<8x1xf32> to vector<8x128xf32>
    %473 = arith.cmpf oeq, %456, %472 : vector<8x128xf32>
    %c128_i32_120 = arith.constant 128 : i32
    %474 = vector.broadcast %c128_i32_120 : i32 to vector<8x128xi32>
    %475 = arith.select %473, %312, %474 : vector<8x128xi1>, vector<8x128xi32>
    %cst_121 = arith.constant dense<2147483647> : vector<8xi32>
    %476 = vector.multi_reduction <minsi>, %475, %cst_121 [1] : vector<8x128xi32> to vector<8xi32>
    %477 = vector.shape_cast %476 : vector<8xi32> to vector<8x1xi32>
    %478 = vector.broadcast %477 : vector<8x1xi32> to vector<8x128xi32>
    %479 = arith.cmpi eq, %312, %478 : vector<8x128xi32>
    %480 = arith.extui %479 : vector<8x128xi1> to vector<8x128xi32>
    %481 = arith.sitofp %480 : vector<8x128xi32> to vector<8x128xf32>
    %482 = arith.truncf %481 : vector<8x128xf32> to vector<8x128xbf16>
    %c3_i32_122 = arith.constant 3 : i32
    %cst_123 = arith.constant dense<0.000000e+00> : vector<8x512xf32>
    %483 = tpu.matmul %482, %306, %cst_123 {dimension_numbers = #tpu.dot_dimension_numbers<[1], [0], [0], [1], [0, 0, 1, 1], [], []>} : vector<8x128xbf16>, vector<128x512xbf16>, vector<8x512xf32> -> vector<8x512xf32>
    %484 = arith.truncf %453 : vector<8x128xf32> to vector<8x128xbf16>
    %cst_124 = arith.constant dense<0.000000e+00> : vector<8x512xf32>
    %485 = tpu.matmul %484, %307, %cst_124 {dimension_numbers = #tpu.dot_dimension_numbers<[1], [0], [0], [1], [0, 0, 1, 1], [], []>} : vector<8x128xbf16>, vector<128x512xbf16>, vector<8x512xf32> -> vector<8x512xf32>
    %486 = arith.addf %483, %485 : vector<8x512xf32>
    %487 = vector.extract_strided_slice %486 {offsets = [0, 0], sizes = [8, 128], strides = [1, 1]} : vector<8x512xf32> to vector<8x128xf32>
    %488 = arith.negf %487 : vector<8x128xf32>
    %489 = math.exp %488 : vector<8x128xf32>
    %cst_125 = arith.constant 1.000000e+00 : f32
    %490 = vector.broadcast %cst_125 : f32 to vector<8x128xf32>
    %491 = arith.addf %490, %489 : vector<8x128xf32>
    %492 = arith.divf %490, %491 : vector<8x128xf32>
    %493 = vector.extract_strided_slice %486 {offsets = [0, 128], sizes = [8, 128], strides = [1, 1]} : vector<8x512xf32> to vector<8x128xf32>
    %494 = arith.negf %493 : vector<8x128xf32>
    %495 = math.exp %494 : vector<8x128xf32>
    %cst_126 = arith.constant 1.000000e+00 : f32
    %496 = vector.broadcast %cst_126 : f32 to vector<8x128xf32>
    %497 = arith.addf %496, %495 : vector<8x128xf32>
    %498 = arith.divf %496, %497 : vector<8x128xf32>
    %499 = vector.extract_strided_slice %486 {offsets = [0, 256], sizes = [8, 128], strides = [1, 1]} : vector<8x512xf32> to vector<8x128xf32>
    %500 = vector.extract_strided_slice %486 {offsets = [0, 384], sizes = [8, 128], strides = [1, 1]} : vector<8x512xf32> to vector<8x128xf32>
    %501 = arith.mulf %492, %500 : vector<8x128xf32>
    %502 = arith.addf %499, %501 : vector<8x128xf32>
    %503 = math.tanh %502 : vector<8x128xf32>
    %cst_127 = arith.constant 1.000000e+00 : f32
    %504 = vector.broadcast %cst_127 : f32 to vector<8x128xf32>
    %505 = arith.subf %504, %498 : vector<8x128xf32>
    %506 = arith.mulf %505, %503 : vector<8x128xf32>
    %507 = arith.mulf %498, %453 : vector<8x128xf32>
    %508 = arith.addf %506, %507 : vector<8x128xf32>
    %509 = arith.truncf %508 : vector<8x128xf32> to vector<8x128xbf16>
    %cst_128 = arith.constant dense<0.000000e+00> : vector<8x128xf32>
    %510 = tpu.matmul %509, %308, %cst_128 {dimension_numbers = #tpu.dot_dimension_numbers<[1], [0], [0], [1], [0, 0, 1, 1], [], []>} : vector<8x128xbf16>, vector<128x128xbf16>, vector<8x128xf32> -> vector<8x128xf32>
    %511 = arith.addf %510, %311 : vector<8x128xf32>
    %cst_129 = arith.constant dense<0xFF800000> : vector<8xf32>
    %512 = vector.multi_reduction <maximumf>, %511, %cst_129 [1] : vector<8x128xf32> to vector<8xf32>
    %513 = vector.shape_cast %512 : vector<8xf32> to vector<8x1xf32>
    %514 = vector.broadcast %513 : vector<8x1xf32> to vector<8x128xf32>
    %515 = arith.subf %511, %514 : vector<8x128xf32>
    %516 = math.exp %515 : vector<8x128xf32>
    %cst_130 = arith.constant dense<0.000000e+00> : vector<8xf32>
    %517 = vector.multi_reduction <add>, %516, %cst_130 [1] : vector<8x128xf32> to vector<8xf32>
    %518 = vector.shape_cast %517 : vector<8xf32> to vector<8x1xf32>
    %519 = math.log %518 : vector<8x1xf32>
    %520 = arith.addf %519, %513 : vector<8x1xf32>
    %521 = vector.broadcast %520 : vector<8x1xf32> to vector<8x128xf32>
    %522 = arith.subf %511, %521 : vector<8x128xf32>
    %523 = arith.index_cast %c3_i32_122 : i32 to index
    %c0_131 = arith.constant 0 : index
    %c0_132 = arith.constant 0 : index
    %524 = vector.load %arg10[%523, %c0_131, %c0_132] : memref<8x8x128xf32, #tpu.memory_space<vmem>>, vector<1x8x128xf32>
    %525 = vector.shape_cast %524 : vector<1x8x128xf32> to vector<8x128xf32>
    %526 = vector.shape_cast %522 : vector<8x128xf32> to vector<1x8x128xf32>
    tpu.vector_store %arg10[%523, %c0_131, %c0_132], %526 {strides = array<i32>} : memref<8x8x128xf32, #tpu.memory_space<vmem>>, vector<1x8x128xf32>,
    %527 = vector.broadcast %513 : vector<8x1xf32> to vector<8x128xf32>
    %528 = arith.cmpf oeq, %511, %527 : vector<8x128xf32>
    %c128_i32_133 = arith.constant 128 : i32
    %529 = vector.broadcast %c128_i32_133 : i32 to vector<8x128xi32>
    %530 = arith.select %528, %312, %529 : vector<8x128xi1>, vector<8x128xi32>
    %cst_134 = arith.constant dense<2147483647> : vector<8xi32>
    %531 = vector.multi_reduction <minsi>, %530, %cst_134 [1] : vector<8x128xi32> to vector<8xi32>
    %532 = vector.shape_cast %531 : vector<8xi32> to vector<8x1xi32>
    %533 = vector.broadcast %532 : vector<8x1xi32> to vector<8x128xi32>
    %534 = arith.cmpi eq, %312, %533 : vector<8x128xi32>
    %535 = arith.extui %534 : vector<8x128xi1> to vector<8x128xi32>
    %536 = arith.sitofp %535 : vector<8x128xi32> to vector<8x128xf32>
    %537 = arith.truncf %536 : vector<8x128xf32> to vector<8x128xbf16>
    %c4_i32_135 = arith.constant 4 : i32
    %cst_136 = arith.constant dense<0.000000e+00> : vector<8x512xf32>
    %538 = tpu.matmul %537, %306, %cst_136 {dimension_numbers = #tpu.dot_dimension_numbers<[1], [0], [0], [1], [0, 0, 1, 1], [], []>} : vector<8x128xbf16>, vector<128x512xbf16>, vector<8x512xf32> -> vector<8x512xf32>
    %539 = arith.truncf %508 : vector<8x128xf32> to vector<8x128xbf16>
    %cst_137 = arith.constant dense<0.000000e+00> : vector<8x512xf32>
    %540 = tpu.matmul %539, %307, %cst_137 {dimension_numbers = #tpu.dot_dimension_numbers<[1], [0], [0], [1], [0, 0, 1, 1], [], []>} : vector<8x128xbf16>, vector<128x512xbf16>, vector<8x512xf32> -> vector<8x512xf32>
    %541 = arith.addf %538, %540 : vector<8x512xf32>
    %542 = vector.extract_strided_slice %541 {offsets = [0, 0], sizes = [8, 128], strides = [1, 1]} : vector<8x512xf32> to vector<8x128xf32>
    %543 = arith.negf %542 : vector<8x128xf32>
    %544 = math.exp %543 : vector<8x128xf32>
    %cst_138 = arith.constant 1.000000e+00 : f32
    %545 = vector.broadcast %cst_138 : f32 to vector<8x128xf32>
    %546 = arith.addf %545, %544 : vector<8x128xf32>
    %547 = arith.divf %545, %546 : vector<8x128xf32>
    %548 = vector.extract_strided_slice %541 {offsets = [0, 128], sizes = [8, 128], strides = [1, 1]} : vector<8x512xf32> to vector<8x128xf32>
    %549 = arith.negf %548 : vector<8x128xf32>
    %550 = math.exp %549 : vector<8x128xf32>
    %cst_139 = arith.constant 1.000000e+00 : f32
    %551 = vector.broadcast %cst_139 : f32 to vector<8x128xf32>
    %552 = arith.addf %551, %550 : vector<8x128xf32>
    %553 = arith.divf %551, %552 : vector<8x128xf32>
    %554 = vector.extract_strided_slice %541 {offsets = [0, 256], sizes = [8, 128], strides = [1, 1]} : vector<8x512xf32> to vector<8x128xf32>
    %555 = vector.extract_strided_slice %541 {offsets = [0, 384], sizes = [8, 128], strides = [1, 1]} : vector<8x512xf32> to vector<8x128xf32>
    %556 = arith.mulf %547, %555 : vector<8x128xf32>
    %557 = arith.addf %554, %556 : vector<8x128xf32>
    %558 = math.tanh %557 : vector<8x128xf32>
    %cst_140 = arith.constant 1.000000e+00 : f32
    %559 = vector.broadcast %cst_140 : f32 to vector<8x128xf32>
    %560 = arith.subf %559, %553 : vector<8x128xf32>
    %561 = arith.mulf %560, %558 : vector<8x128xf32>
    %562 = arith.mulf %553, %508 : vector<8x128xf32>
    %563 = arith.addf %561, %562 : vector<8x128xf32>
    %564 = arith.truncf %563 : vector<8x128xf32> to vector<8x128xbf16>
    %cst_141 = arith.constant dense<0.000000e+00> : vector<8x128xf32>
    %565 = tpu.matmul %564, %308, %cst_141 {dimension_numbers = #tpu.dot_dimension_numbers<[1], [0], [0], [1], [0, 0, 1, 1], [], []>} : vector<8x128xbf16>, vector<128x128xbf16>, vector<8x128xf32> -> vector<8x128xf32>
    %566 = arith.addf %565, %311 : vector<8x128xf32>
    %cst_142 = arith.constant dense<0xFF800000> : vector<8xf32>
    %567 = vector.multi_reduction <maximumf>, %566, %cst_142 [1] : vector<8x128xf32> to vector<8xf32>
    %568 = vector.shape_cast %567 : vector<8xf32> to vector<8x1xf32>
    %569 = vector.broadcast %568 : vector<8x1xf32> to vector<8x128xf32>
    %570 = arith.subf %566, %569 : vector<8x128xf32>
    %571 = math.exp %570 : vector<8x128xf32>
    %cst_143 = arith.constant dense<0.000000e+00> : vector<8xf32>
    %572 = vector.multi_reduction <add>, %571, %cst_143 [1] : vector<8x128xf32> to vector<8xf32>
    %573 = vector.shape_cast %572 : vector<8xf32> to vector<8x1xf32>
    %574 = math.log %573 : vector<8x1xf32>
    %575 = arith.addf %574, %568 : vector<8x1xf32>
    %576 = vector.broadcast %575 : vector<8x1xf32> to vector<8x128xf32>
    %577 = arith.subf %566, %576 : vector<8x128xf32>
    %578 = arith.index_cast %c4_i32_135 : i32 to index
    %c0_144 = arith.constant 0 : index
    %c0_145 = arith.constant 0 : index
    %579 = vector.load %arg10[%578, %c0_144, %c0_145] : memref<8x8x128xf32, #tpu.memory_space<vmem>>, vector<1x8x128xf32>
    %580 = vector.shape_cast %579 : vector<1x8x128xf32> to vector<8x128xf32>
    %581 = vector.shape_cast %577 : vector<8x128xf32> to vector<1x8x128xf32>
    tpu.vector_store %arg10[%578, %c0_144, %c0_145], %581 {strides = array<i32>} : memref<8x8x128xf32, #tpu.memory_space<vmem>>, vector<1x8x128xf32>,
    %582 = vector.broadcast %568 : vector<8x1xf32> to vector<8x128xf32>
    %583 = arith.cmpf oeq, %566, %582 : vector<8x128xf32>
    %c128_i32_146 = arith.constant 128 : i32
    %584 = vector.broadcast %c128_i32_146 : i32 to vector<8x128xi32>
    %585 = arith.select %583, %312, %584 : vector<8x128xi1>, vector<8x128xi32>
    %cst_147 = arith.constant dense<2147483647> : vector<8xi32>
    %586 = vector.multi_reduction <minsi>, %585, %cst_147 [1] : vector<8x128xi32> to vector<8xi32>
    %587 = vector.shape_cast %586 : vector<8xi32> to vector<8x1xi32>
    %588 = vector.broadcast %587 : vector<8x1xi32> to vector<8x128xi32>
    %589 = arith.cmpi eq, %312, %588 : vector<8x128xi32>
    %590 = arith.extui %589 : vector<8x128xi1> to vector<8x128xi32>
    %591 = arith.sitofp %590 : vector<8x128xi32> to vector<8x128xf32>
    %592 = arith.truncf %591 : vector<8x128xf32> to vector<8x128xbf16>
    %c5_i32_148 = arith.constant 5 : i32
    %cst_149 = arith.constant dense<0.000000e+00> : vector<8x512xf32>
    %593 = tpu.matmul %592, %306, %cst_149 {dimension_numbers = #tpu.dot_dimension_numbers<[1], [0], [0], [1], [0, 0, 1, 1], [], []>} : vector<8x128xbf16>, vector<128x512xbf16>, vector<8x512xf32> -> vector<8x512xf32>
    %594 = arith.truncf %563 : vector<8x128xf32> to vector<8x128xbf16>
    %cst_150 = arith.constant dense<0.000000e+00> : vector<8x512xf32>
    %595 = tpu.matmul %594, %307, %cst_150 {dimension_numbers = #tpu.dot_dimension_numbers<[1], [0], [0], [1], [0, 0, 1, 1], [], []>} : vector<8x128xbf16>, vector<128x512xbf16>, vector<8x512xf32> -> vector<8x512xf32>
    %596 = arith.addf %593, %595 : vector<8x512xf32>
    %597 = vector.extract_strided_slice %596 {offsets = [0, 0], sizes = [8, 128], strides = [1, 1]} : vector<8x512xf32> to vector<8x128xf32>
    %598 = arith.negf %597 : vector<8x128xf32>
    %599 = math.exp %598 : vector<8x128xf32>
    %cst_151 = arith.constant 1.000000e+00 : f32
    %600 = vector.broadcast %cst_151 : f32 to vector<8x128xf32>
    %601 = arith.addf %600, %599 : vector<8x128xf32>
    %602 = arith.divf %600, %601 : vector<8x128xf32>
    %603 = vector.extract_strided_slice %596 {offsets = [0, 128], sizes = [8, 128], strides = [1, 1]} : vector<8x512xf32> to vector<8x128xf32>
    %604 = arith.negf %603 : vector<8x128xf32>
    %605 = math.exp %604 : vector<8x128xf32>
    %cst_152 = arith.constant 1.000000e+00 : f32
    %606 = vector.broadcast %cst_152 : f32 to vector<8x128xf32>
    %607 = arith.addf %606, %605 : vector<8x128xf32>
    %608 = arith.divf %606, %607 : vector<8x128xf32>
    %609 = vector.extract_strided_slice %596 {offsets = [0, 256], sizes = [8, 128], strides = [1, 1]} : vector<8x512xf32> to vector<8x128xf32>
    %610 = vector.extract_strided_slice %596 {offsets = [0, 384], sizes = [8, 128], strides = [1, 1]} : vector<8x512xf32> to vector<8x128xf32>
    %611 = arith.mulf %602, %610 : vector<8x128xf32>
    %612 = arith.addf %609, %611 : vector<8x128xf32>
    %613 = math.tanh %612 : vector<8x128xf32>
    %cst_153 = arith.constant 1.000000e+00 : f32
    %614 = vector.broadcast %cst_153 : f32 to vector<8x128xf32>
    %615 = arith.subf %614, %608 : vector<8x128xf32>
    %616 = arith.mulf %615, %613 : vector<8x128xf32>
    %617 = arith.mulf %608, %563 : vector<8x128xf32>
    %618 = arith.addf %616, %617 : vector<8x128xf32>
    %619 = arith.truncf %618 : vector<8x128xf32> to vector<8x128xbf16>
    %cst_154 = arith.constant dense<0.000000e+00> : vector<8x128xf32>
    %620 = tpu.matmul %619, %308, %cst_154 {dimension_numbers = #tpu.dot_dimension_numbers<[1], [0], [0], [1], [0, 0, 1, 1], [], []>} : vector<8x128xbf16>, vector<128x128xbf16>, vector<8x128xf32> -> vector<8x128xf32>
    %621 = arith.addf %620, %311 : vector<8x128xf32>
    %cst_155 = arith.constant dense<0xFF800000> : vector<8xf32>
    %622 = vector.multi_reduction <maximumf>, %621, %cst_155 [1] : vector<8x128xf32> to vector<8xf32>
    %623 = vector.shape_cast %622 : vector<8xf32> to vector<8x1xf32>
    %624 = vector.broadcast %623 : vector<8x1xf32> to vector<8x128xf32>
    %625 = arith.subf %621, %624 : vector<8x128xf32>
    %626 = math.exp %625 : vector<8x128xf32>
    %cst_156 = arith.constant dense<0.000000e+00> : vector<8xf32>
    %627 = vector.multi_reduction <add>, %626, %cst_156 [1] : vector<8x128xf32> to vector<8xf32>
    %628 = vector.shape_cast %627 : vector<8xf32> to vector<8x1xf32>
    %629 = math.log %628 : vector<8x1xf32>
    %630 = arith.addf %629, %623 : vector<8x1xf32>
    %631 = vector.broadcast %630 : vector<8x1xf32> to vector<8x128xf32>
    %632 = arith.subf %621, %631 : vector<8x128xf32>
    %633 = arith.index_cast %c5_i32_148 : i32 to index
    %c0_157 = arith.constant 0 : index
    %c0_158 = arith.constant 0 : index
    %634 = vector.load %arg10[%633, %c0_157, %c0_158] : memref<8x8x128xf32, #tpu.memory_space<vmem>>, vector<1x8x128xf32>
    %635 = vector.shape_cast %634 : vector<1x8x128xf32> to vector<8x128xf32>
    %636 = vector.shape_cast %632 : vector<8x128xf32> to vector<1x8x128xf32>
    tpu.vector_store %arg10[%633, %c0_157, %c0_158], %636 {strides = array<i32>} : memref<8x8x128xf32, #tpu.memory_space<vmem>>, vector<1x8x128xf32>,
    %637 = vector.broadcast %623 : vector<8x1xf32> to vector<8x128xf32>
    %638 = arith.cmpf oeq, %621, %637 : vector<8x128xf32>
    %c128_i32_159 = arith.constant 128 : i32
    %639 = vector.broadcast %c128_i32_159 : i32 to vector<8x128xi32>
    %640 = arith.select %638, %312, %639 : vector<8x128xi1>, vector<8x128xi32>
    %cst_160 = arith.constant dense<2147483647> : vector<8xi32>
    %641 = vector.multi_reduction <minsi>, %640, %cst_160 [1] : vector<8x128xi32> to vector<8xi32>
    %642 = vector.shape_cast %641 : vector<8xi32> to vector<8x1xi32>
    %643 = vector.broadcast %642 : vector<8x1xi32> to vector<8x128xi32>
    %644 = arith.cmpi eq, %312, %643 : vector<8x128xi32>
    %645 = arith.extui %644 : vector<8x128xi1> to vector<8x128xi32>
    %646 = arith.sitofp %645 : vector<8x128xi32> to vector<8x128xf32>
    %647 = arith.truncf %646 : vector<8x128xf32> to vector<8x128xbf16>
    %c6_i32_161 = arith.constant 6 : i32
    %cst_162 = arith.constant dense<0.000000e+00> : vector<8x512xf32>
    %648 = tpu.matmul %647, %306, %cst_162 {dimension_numbers = #tpu.dot_dimension_numbers<[1], [0], [0], [1], [0, 0, 1, 1], [], []>} : vector<8x128xbf16>, vector<128x512xbf16>, vector<8x512xf32> -> vector<8x512xf32>
    %649 = arith.truncf %618 : vector<8x128xf32> to vector<8x128xbf16>
    %cst_163 = arith.constant dense<0.000000e+00> : vector<8x512xf32>
    %650 = tpu.matmul %649, %307, %cst_163 {dimension_numbers = #tpu.dot_dimension_numbers<[1], [0], [0], [1], [0, 0, 1, 1], [], []>} : vector<8x128xbf16>, vector<128x512xbf16>, vector<8x512xf32> -> vector<8x512xf32>
    %651 = arith.addf %648, %650 : vector<8x512xf32>
    %652 = vector.extract_strided_slice %651 {offsets = [0, 0], sizes = [8, 128], strides = [1, 1]} : vector<8x512xf32> to vector<8x128xf32>
    %653 = arith.negf %652 : vector<8x128xf32>
    %654 = math.exp %653 : vector<8x128xf32>
    %cst_164 = arith.constant 1.000000e+00 : f32
    %655 = vector.broadcast %cst_164 : f32 to vector<8x128xf32>
    %656 = arith.addf %655, %654 : vector<8x128xf32>
    %657 = arith.divf %655, %656 : vector<8x128xf32>
    %658 = vector.extract_strided_slice %651 {offsets = [0, 128], sizes = [8, 128], strides = [1, 1]} : vector<8x512xf32> to vector<8x128xf32>
    %659 = arith.negf %658 : vector<8x128xf32>
    %660 = math.exp %659 : vector<8x128xf32>
    %cst_165 = arith.constant 1.000000e+00 : f32
    %661 = vector.broadcast %cst_165 : f32 to vector<8x128xf32>
    %662 = arith.addf %661, %660 : vector<8x128xf32>
    %663 = arith.divf %661, %662 : vector<8x128xf32>
    %664 = vector.extract_strided_slice %651 {offsets = [0, 256], sizes = [8, 128], strides = [1, 1]} : vector<8x512xf32> to vector<8x128xf32>
    %665 = vector.extract_strided_slice %651 {offsets = [0, 384], sizes = [8, 128], strides = [1, 1]} : vector<8x512xf32> to vector<8x128xf32>
    %666 = arith.mulf %657, %665 : vector<8x128xf32>
    %667 = arith.addf %664, %666 : vector<8x128xf32>
    %668 = math.tanh %667 : vector<8x128xf32>
    %cst_166 = arith.constant 1.000000e+00 : f32
    %669 = vector.broadcast %cst_166 : f32 to vector<8x128xf32>
    %670 = arith.subf %669, %663 : vector<8x128xf32>
    %671 = arith.mulf %670, %668 : vector<8x128xf32>
    %672 = arith.mulf %663, %618 : vector<8x128xf32>
    %673 = arith.addf %671, %672 : vector<8x128xf32>
    %674 = arith.truncf %673 : vector<8x128xf32> to vector<8x128xbf16>
    %cst_167 = arith.constant dense<0.000000e+00> : vector<8x128xf32>
    %675 = tpu.matmul %674, %308, %cst_167 {dimension_numbers = #tpu.dot_dimension_numbers<[1], [0], [0], [1], [0, 0, 1, 1], [], []>} : vector<8x128xbf16>, vector<128x128xbf16>, vector<8x128xf32> -> vector<8x128xf32>
    %676 = arith.addf %675, %311 : vector<8x128xf32>
    %cst_168 = arith.constant dense<0xFF800000> : vector<8xf32>
    %677 = vector.multi_reduction <maximumf>, %676, %cst_168 [1] : vector<8x128xf32> to vector<8xf32>
    %678 = vector.shape_cast %677 : vector<8xf32> to vector<8x1xf32>
    %679 = vector.broadcast %678 : vector<8x1xf32> to vector<8x128xf32>
    %680 = arith.subf %676, %679 : vector<8x128xf32>
    %681 = math.exp %680 : vector<8x128xf32>
    %cst_169 = arith.constant dense<0.000000e+00> : vector<8xf32>
    %682 = vector.multi_reduction <add>, %681, %cst_169 [1] : vector<8x128xf32> to vector<8xf32>
    %683 = vector.shape_cast %682 : vector<8xf32> to vector<8x1xf32>
    %684 = math.log %683 : vector<8x1xf32>
    %685 = arith.addf %684, %678 : vector<8x1xf32>
    %686 = vector.broadcast %685 : vector<8x1xf32> to vector<8x128xf32>
    %687 = arith.subf %676, %686 : vector<8x128xf32>
    %688 = arith.index_cast %c6_i32_161 : i32 to index
    %c0_170 = arith.constant 0 : index
    %c0_171 = arith.constant 0 : index
    %689 = vector.load %arg10[%688, %c0_170, %c0_171] : memref<8x8x128xf32, #tpu.memory_space<vmem>>, vector<1x8x128xf32>
    %690 = vector.shape_cast %689 : vector<1x8x128xf32> to vector<8x128xf32>
    %691 = vector.shape_cast %687 : vector<8x128xf32> to vector<1x8x128xf32>
    tpu.vector_store %arg10[%688, %c0_170, %c0_171], %691 {strides = array<i32>} : memref<8x8x128xf32, #tpu.memory_space<vmem>>, vector<1x8x128xf32>,
    %692 = vector.broadcast %678 : vector<8x1xf32> to vector<8x128xf32>
    %693 = arith.cmpf oeq, %676, %692 : vector<8x128xf32>
    %c128_i32_172 = arith.constant 128 : i32
    %694 = vector.broadcast %c128_i32_172 : i32 to vector<8x128xi32>
    %695 = arith.select %693, %312, %694 : vector<8x128xi1>, vector<8x128xi32>
    %cst_173 = arith.constant dense<2147483647> : vector<8xi32>
    %696 = vector.multi_reduction <minsi>, %695, %cst_173 [1] : vector<8x128xi32> to vector<8xi32>
    %697 = vector.shape_cast %696 : vector<8xi32> to vector<8x1xi32>
    %698 = vector.broadcast %697 : vector<8x1xi32> to vector<8x128xi32>
    %699 = arith.cmpi eq, %312, %698 : vector<8x128xi32>
    %700 = arith.extui %699 : vector<8x128xi1> to vector<8x128xi32>
    %701 = arith.sitofp %700 : vector<8x128xi32> to vector<8x128xf32>
    %702 = arith.truncf %701 : vector<8x128xf32> to vector<8x128xbf16>
    %c7_i32_174 = arith.constant 7 : i32
    %cst_175 = arith.constant dense<0.000000e+00> : vector<8x512xf32>
    %703 = tpu.matmul %702, %306, %cst_175 {dimension_numbers = #tpu.dot_dimension_numbers<[1], [0], [0], [1], [0, 0, 1, 1], [], []>} : vector<8x128xbf16>, vector<128x512xbf16>, vector<8x512xf32> -> vector<8x512xf32>
    %704 = arith.truncf %673 : vector<8x128xf32> to vector<8x128xbf16>
    %cst_176 = arith.constant dense<0.000000e+00> : vector<8x512xf32>
    %705 = tpu.matmul %704, %307, %cst_176 {dimension_numbers = #tpu.dot_dimension_numbers<[1], [0], [0], [1], [0, 0, 1, 1], [], []>} : vector<8x128xbf16>, vector<128x512xbf16>, vector<8x512xf32> -> vector<8x512xf32>
    %706 = arith.addf %703, %705 : vector<8x512xf32>
    %707 = vector.extract_strided_slice %706 {offsets = [0, 0], sizes = [8, 128], strides = [1, 1]} : vector<8x512xf32> to vector<8x128xf32>
    %708 = arith.negf %707 : vector<8x128xf32>
    %709 = math.exp %708 : vector<8x128xf32>
    %cst_177 = arith.constant 1.000000e+00 : f32
    %710 = vector.broadcast %cst_177 : f32 to vector<8x128xf32>
    %711 = arith.addf %710, %709 : vector<8x128xf32>
    %712 = arith.divf %710, %711 : vector<8x128xf32>
    %713 = vector.extract_strided_slice %706 {offsets = [0, 128], sizes = [8, 128], strides = [1, 1]} : vector<8x512xf32> to vector<8x128xf32>
    %714 = arith.negf %713 : vector<8x128xf32>
    %715 = math.exp %714 : vector<8x128xf32>
    %cst_178 = arith.constant 1.000000e+00 : f32
    %716 = vector.broadcast %cst_178 : f32 to vector<8x128xf32>
    %717 = arith.addf %716, %715 : vector<8x128xf32>
    %718 = arith.divf %716, %717 : vector<8x128xf32>
    %719 = vector.extract_strided_slice %706 {offsets = [0, 256], sizes = [8, 128], strides = [1, 1]} : vector<8x512xf32> to vector<8x128xf32>
    %720 = vector.extract_strided_slice %706 {offsets = [0, 384], sizes = [8, 128], strides = [1, 1]} : vector<8x512xf32> to vector<8x128xf32>
    %721 = arith.mulf %712, %720 : vector<8x128xf32>
    %722 = arith.addf %719, %721 : vector<8x128xf32>
    %723 = math.tanh %722 : vector<8x128xf32>
    %cst_179 = arith.constant 1.000000e+00 : f32
    %724 = vector.broadcast %cst_179 : f32 to vector<8x128xf32>
    %725 = arith.subf %724, %718 : vector<8x128xf32>
    %726 = arith.mulf %725, %723 : vector<8x128xf32>
    %727 = arith.mulf %718, %673 : vector<8x128xf32>
    %728 = arith.addf %726, %727 : vector<8x128xf32>
    %729 = arith.truncf %728 : vector<8x128xf32> to vector<8x128xbf16>
    %cst_180 = arith.constant dense<0.000000e+00> : vector<8x128xf32>
    %730 = tpu.matmul %729, %308, %cst_180 {dimension_numbers = #tpu.dot_dimension_numbers<[1], [0], [0], [1], [0, 0, 1, 1], [], []>} : vector<8x128xbf16>, vector<128x128xbf16>, vector<8x128xf32> -> vector<8x128xf32>
    %731 = arith.addf %730, %311 : vector<8x128xf32>
    %cst_181 = arith.constant dense<0xFF800000> : vector<8xf32>
    %732 = vector.multi_reduction <maximumf>, %731, %cst_181 [1] : vector<8x128xf32> to vector<8xf32>
    %733 = vector.shape_cast %732 : vector<8xf32> to vector<8x1xf32>
    %734 = vector.broadcast %733 : vector<8x1xf32> to vector<8x128xf32>
    %735 = arith.subf %731, %734 : vector<8x128xf32>
    %736 = math.exp %735 : vector<8x128xf32>
    %cst_182 = arith.constant dense<0.000000e+00> : vector<8xf32>
    %737 = vector.multi_reduction <add>, %736, %cst_182 [1] : vector<8x128xf32> to vector<8xf32>
    %738 = vector.shape_cast %737 : vector<8xf32> to vector<8x1xf32>
    %739 = math.log %738 : vector<8x1xf32>
    %740 = arith.addf %739, %733 : vector<8x1xf32>
    %741 = vector.broadcast %740 : vector<8x1xf32> to vector<8x128xf32>
    %742 = arith.subf %731, %741 : vector<8x128xf32>
    %743 = arith.index_cast %c7_i32_174 : i32 to index
    %c0_183 = arith.constant 0 : index
    %c0_184 = arith.constant 0 : index
    %744 = vector.load %arg10[%743, %c0_183, %c0_184] : memref<8x8x128xf32, #tpu.memory_space<vmem>>, vector<1x8x128xf32>
    %745 = vector.shape_cast %744 : vector<1x8x128xf32> to vector<8x128xf32>
    %746 = vector.shape_cast %742 : vector<8x128xf32> to vector<1x8x128xf32>
    tpu.vector_store %arg10[%743, %c0_183, %c0_184], %746 {strides = array<i32>} : memref<8x8x128xf32, #tpu.memory_space<vmem>>, vector<1x8x128xf32>,
    %747 = vector.broadcast %733 : vector<8x1xf32> to vector<8x128xf32>
    %748 = arith.cmpf oeq, %731, %747 : vector<8x128xf32>
    %c128_i32_185 = arith.constant 128 : i32
    %749 = vector.broadcast %c128_i32_185 : i32 to vector<8x128xi32>
    %750 = arith.select %748, %312, %749 : vector<8x128xi1>, vector<8x128xi32>
    %cst_186 = arith.constant dense<2147483647> : vector<8xi32>
    %751 = vector.multi_reduction <minsi>, %750, %cst_186 [1] : vector<8x128xi32> to vector<8xi32>
    %752 = vector.shape_cast %751 : vector<8xi32> to vector<8x1xi32>
    %753 = vector.broadcast %752 : vector<8x1xi32> to vector<8x128xi32>
    %754 = arith.cmpi eq, %312, %753 : vector<8x128xi32>
    %755 = arith.extui %754 : vector<8x128xi1> to vector<8x128xi32>
    %756 = arith.sitofp %755 : vector<8x128xi32> to vector<8x128xf32>
    %757 = arith.truncf %756 : vector<8x128xf32> to vector<8x128xbf16>
    %c8_i32_187 = arith.constant 8 : i32
    %c0_188 = arith.constant 0 : index
    %c0_189 = arith.constant 0 : index
    %758 = vector.load %arg11[%c0_188, %c0_189] : memref<8x128xf32, #tpu.memory_space<vmem>>, vector<8x128xf32>
    tpu.vector_store %arg11[%c0_188, %c0_189], %728 {strides = array<i32>} : memref<8x128xf32, #tpu.memory_space<vmem>>, vector<8x128xf32>,
    return
  }
  func.func @transform_0(%arg0: i32) -> (i32, i32, i32) {
    %c0_i32 = arith.constant 0 : i32
    %c0_i32_0 = arith.constant 0 : i32
    %c0_i32_1 = arith.constant 0 : i32
    %c0_i32_2 = arith.constant 0 : i32
    return %c0_i32, %c0_i32_0, %c0_i32_1 : i32, i32, i32
  }
  func.func @transform_1(%arg0: i32) -> (i32, i32) {
    %c0_i32 = arith.constant 0 : i32
    %c0_i32_0 = arith.constant 0 : i32
    %c0_i32_1 = arith.constant 0 : i32
    return %c0_i32, %c0_i32_0 : i32, i32
  }
  func.func @transform_2(%arg0: i32) -> (i32, i32) {
    %c0_i32 = arith.constant 0 : i32
    %c0_i32_0 = arith.constant 0 : i32
    %c0_i32_1 = arith.constant 0 : i32
    return %c0_i32, %c0_i32_0 : i32, i32
  }
  func.func @transform_3(%arg0: i32) -> (i32, i32) {
    %c0_i32 = arith.constant 0 : i32
    %c0_i32_0 = arith.constant 0 : i32
    %c0_i32_1 = arith.constant 0 : i32
    return %c0_i32, %c0_i32_0 : i32, i32
  }
  func.func @transform_7(%arg0: i32) -> (i32, i32, i32) {
    %c0_i32 = arith.constant 0 : i32
    %c0_i32_0 = arith.constant 0 : i32
    %c0_i32_1 = arith.constant 0 : i32
    %c0_i32_2 = arith.constant 0 : i32
    return %c0_i32, %c0_i32_0, %c0_i32_1 : i32, i32, i32
  }
  func.func @transform_8(%arg0: i32) -> (i32, i32) {
    %c0_i32 = arith.constant 0 : i32
    %c0_i32_0 = arith.constant 0 : i32
    %c0_i32_1 = arith.constant 0 : i32
    return %c0_i32, %c0_i32_0 : i32, i32
  }
  func.func @transform_9(%arg0: i32) -> (i32, i32, i32) {
    %c0_i32 = arith.constant 0 : i32
    %c0_i32_0 = arith.constant 0 : i32
    %c0_i32_1 = arith.constant 0 : i32
    %c0_i32_2 = arith.constant 0 : i32
    return %c0_i32, %c0_i32_0, %c0_i32_1 : i32, i32, i32
  }
  func.func @transform_10(%arg0: i32) -> (i32, i32) {
    %c0_i32 = arith.constant 0 : i32
    %c0_i32_0 = arith.constant 0 : i32
    %c0_i32_1 = arith.constant 0 : i32
    return %c0_i32, %c0_i32_0 : i32, i32
  }
}

</mosaic_0001>

<bundles_post_ra>
// kernel: tpu_custom_call.1
= control target key start
LH: loop header
LB: loop body
LE: loop exit
PB: predicated region body
PF: predicated region fallthrough
CT: control target
= control target key end

     0   :  { %16 = vsyncpa [#allocation7], 0  ;;  %s6267_s0 = inlined_call_operand.hbm [shape: f32[8,8,384], index: 0, kind: input, shape index: {}]   ;;  %s6268_s1 = inlined_call_operand.hbm [shape: bf16[128,384], index: 1, kind: input, shape index: {}]   ;;  %s6269_s2 = inlined_call_operand.vmem [shape: f32[1,384], index: 2, kind: input, shape index: {}]   ;;  %s6270_s3 = inlined_call_operand.vmem [shape: f32[1,128], index: 3, kind: input, shape index: {}]   ;;  %s6271_s4 = inlined_call_operand.hbm [shape: bf16[128,512], index: 4, kind: input, shape index: {}]   ;;  %s6272_s5 = inlined_call_operand.hbm [shape: bf16[128,512], index: 5, kind: input, shape index: {}]   ;;  %s6273_s6 = inlined_call_operand.hbm [shape: bf16[128,128], index: 6, kind: input, shape index: {}]   ;;  %s6274_s7 = inlined_call_operand.hbm [shape: f32[8,8,128], index: 7, kind: output, shape index: {0}]   ;;  %s6275_s8 = inlined_call_operand.hbm [shape: f32[8,128], index: 8, kind: output, shape index: {1}]   ;;  %s6276_s9 = inlined_call_operand.hbm [shape: f32[8,8,128], index: 9, kind: output, shape index: {2}]   ;;  %s6277_s10 = inlined_call_operand.hbm [shape: f32[8,128], index: 10, kind: output, shape index: {3}]  }
   0x1   :  { %17 = vsyncpa [#allocation10], 0 }
   0x2   :  { %18 = vsyncpa [#allocation8], 0 }
   0x3   :  { %19 = vsyncpa [#allocation13], 0 }
   0x4   :  { %20 = vsyncpa [#allocation16], 0  ;;  %s4508_s13 = smov [#allocation6]   ;;  %s4338_s17 = scalar_lea.hbm %s6267_s0, 3072 }
   0x5   :  { %s26_s14 = sshll.u32 %s4508_s13, 4  ;;  %p4339_p0 = scmp.ne.s32.totalorder %s6267_s0, %s4338_s17  ;;  %s27_s14 = int_to_ptr.vmem [resolvable:$true] %s26_s14 }
   0x6   :  { %p4342_p1 = scmp.lt.u32.totalorder %s4338_s17, %s6267_s0 }
   0x8   :  { %p4344_p2 = pnand %p4342_p1, %p4339_p0 }
   0xa   :  { %4347 = shalt.err (!%p4344_p2)
}
   0xb   :  { %s4348_s22 = scalar_lea.vmem %s27_s14, 3072  ;;  %p4353_p4 = scmp.lt.s32.totalorder %s27_s14, %s27_s14 }
   0xc   :  { %p4349_p3 = scmp.ne.s32.totalorder %s27_s14, %s4348_s22  ;;  %p4354_p5 = scmp.lt.s32.totalorder %s4348_s22, %s4348_s22 }
   0xe   :  { %p4355_p6 = por %p4354_p5, %p4353_p4 }
  0x10   :  { %p4356_p7 = pnand %p4355_p6, %p4349_p3 }
  0x12   :  { %4359 = shalt.err (!%p4356_p7)
}
  0x13   :  { %s4509_s23 = smov 384   ;;  %s4510_s24 = smov 24  }
  0x14   :  { %32 = dma.hbm_to_vmem [thread:$0]  %s6267_s0, 3072, %s27_s14, [#allocation7], %s4509_s23, %s4509_s23, %s4510_s24  }
  0x15   :  { %s4511_s27 = smov [#allocation9]   ;;  %s4360_s11 = scalar_lea.hbm %s6268_s1, 3072 }
  0x16   :  { %s38_s28 = sshll.u32 %s4511_s27, 4  ;;  %p4361_p8 = scmp.ne.s32.totalorder %s6268_s1, %s4360_s11  ;;  %s39_s28 = int_to_ptr.vmem [resolvable:$true] %s38_s28 }
  0x17   :  { %p4364_p9 = scmp.lt.u32.totalorder %s4360_s11, %s6268_s1 }
  0x19   :  { %p4366_p10 = pnand %p4364_p9, %p4361_p8 }
  0x1b   :  { %4369 = shalt.err (!%p4366_p10)
}
  0x1c   :  { %s4370_s17 = scalar_lea.vmem %s39_s28, 3072  ;;  %p4375_p12 = scmp.lt.s32.totalorder %s39_s28, %s39_s28 }
  0x1d   :  { %p4371_p11 = scmp.ne.s32.totalorder %s39_s28, %s4370_s17  ;;  %p4376_p13 = scmp.lt.s32.totalorder %s4370_s17, %s4370_s17 }
  0x1f   :  { %p4377_p0 = por %p4376_p13, %p4375_p12 }
  0x21   :  { %p4378_p1 = pnand %p4377_p0, %p4371_p11 }
  0x23   :  { %4381 = shalt.err (!%p4378_p1)
}
  0x24   :  { %s4512_s0 = smov 192   ;;  %s4513_s14 = smov 12  }
  0x25   :  { %44 = dma.hbm_to_vmem [thread:$0]  %s6268_s1, 3072, %s39_s28, [#allocation10], %s4512_s0, %s4512_s0, %s4513_s14  }
  0x26   :  { %4492 = dma.done.wait [#allocation7], 3072  }
  0x27   :  { %4493 = vsyncadd [#allocation7], 4294964224 }
  0x28   :  { %4494 = dma.done.wait [#allocation10], 3072  }
  0x29   :  { %4495 = vsyncadd [#allocation10], 4294964224  ;;  %s60_s20 = sld [smem:[#allocation0]]   ;;  %s4514_s21 = smov [#allocation2]   ;;  %v6280_v0 = vmov 0.0   ;;  %v6278_v1 = vmov 0   ;;  %v172_v26 = vlaneseq }
  0x2a   :  { %s4615_s22 = sshll.u32 %s4514_s21, 4  ;;  %3645 = vmatprep.subr.bf16.mxu1 %v6280_v0  ;;  %350 = vmatprep.mubr.bf16.mxu0 %v6278_v1  ;;  %s4517_s23 = smov 512   ;;  %vm4518_vm0 = vmmov 0   ;;  %s69_s22 = int_to_ptr.vmem [resolvable:$true] %s4615_s22 }
  0x2b   :  { %72 = sst [smem:[#allocation18]] %s4517_s23  ;;  %3661 = vmatprep.mubr.msk.bf16.mxu1 %vm4518_vm0, %v6280_v0  ;;  %s4519_s1 = smov 4   ;;  %v173_v27 = vshrl.u32 %v172_v26, 7 }
  0x2c   :  { %74 = sst [smem:[#allocation18 + $0x1]] %s4517_s23  ;;  %s4520_s24 = smov 64  }
  0x2d   :  { %76 = sst [smem:[#allocation18 + $0x2]] %s4519_s1  ;;  %s4521_s25 = smov 128   ;;  %v174_v28 = vsub.s32 0, %v173_v27  ;;  %v178_v30 = vsub.s32 1, %v173_v27  ;;  %v182_v51 = vsub.s32 2, %v173_v27 }
  0x2e   :  { %78 = sst [smem:[#allocation18 + $0x3]] %s4520_s24  ;;  %s4522_s27 = smov 2  }
  0x2f   :  { %80 = sst [smem:[#allocation18 + $0x4]] %s4521_s25  ;;  %s3397_s26 = sshll.u32 %s60_s20, 26 }
  0x30   :  { %82 = sst [smem:[#allocation18 + $0x5]] %s4522_s27  ;;  %s3398_s28 = sadd.s32 134217728, %s3397_s26 }
  0x31   :  { %s4523_s29 = smov 256   ;;  %86 = sst [smem:[#allocation18 + $0x7]] %s4520_s24 }
  0x32   :  { %84 = sst [smem:[#allocation18 + $0x6]] %s4523_s29  ;;  %s4524_s30 = smov [#allocation5]  }
  0x33   :  { %88 = sst [smem:[#allocation18 + $0x8]] %s4519_s1  ;;  %s4525_s11 = smov [#allocation17]  }
  0x34   :  { %90 = dma.general %s6271_s4, 4096, %s69_s22, %s4524_s30, %s4525_s11, [#allocation18], %s3398_s28, 0  }
  0x35   :  { %107 = sst [smem:[#allocation20]] %s4517_s23  ;;  %s4526_s15 = smov [#allocation3]  }
  0x36   :  { %109 = sst [smem:[#allocation20 + $0x1]] %s4517_s23  ;;  %s103_s16 = sshll.u32 %s4526_s15, 4  ;;  %s104_s16 = int_to_ptr.vmem [resolvable:$true] %s103_s16 }
  0x37   :  { %111 = sst [smem:[#allocation20 + $0x2]] %s4519_s1  ;;  %s4527_s17 = smov [#allocation5 + $0x1]  }
  0x38   :  { %113 = sst [smem:[#allocation20 + $0x3]] %s4520_s24  ;;  %s4528_s0 = smov [#allocation19]  }
  0x39   :  { %115 = sst [smem:[#allocation20 + $0x4]] %s4521_s25  ;;  %s4382_s22 = scalar_lea.hbm %s6273_s6, 1024 }
  0x3a   :  { %117 = sst [smem:[#allocation20 + $0x5]] %s4522_s27  ;;  %p4383_p2 = scmp.ne.s32.totalorder %s6273_s6, %s4382_s22 }
  0x3b   :  { %119 = sst [smem:[#allocation20 + $0x6]] %s4523_s29  ;;  %p4386_p3 = scmp.lt.u32.totalorder %s4382_s22, %s6273_s6 }
  0x3c   :  { %121 = sst [smem:[#allocation20 + $0x7]] %s4520_s24 }
  0x3d   :  { %123 = sst [smem:[#allocation20 + $0x8]] %s4519_s1  ;;  %p4388_p4 = pnand %p4386_p3, %p4383_p2 }
  0x3e   :  { %125 = dma.general %s6272_s5, 4096, %s104_s16, %s4527_s17, %s4528_s0, [#allocation20], %s3398_s28, 0  }
  0x3f   :  { %v4630_v2 = vld [vmem:[#allocation9 + $0x4] ss:$12 sps:$4 sm:$0xff]   ;;  %v4632_v3 = vld [vmem:[#allocation9] ss:$12 sps:$4 sm:$0xff]   ;;  %v4635_v4 = vld [vmem:[#allocation9 + $0x1c] ss:$12 sps:$4 sm:$0xff]  }
  0x40   :  { %318 = vmatprep.subr.bf16.mxu0 %v4630_v2  ;;  %v4638_v5 = vld [vmem:[#allocation9 + $0x18] ss:$12 sps:$4 sm:$0xff]   ;;  %v4641_v6 = vld [vmem:[#allocation9 + $0x34] ss:$12 sps:$4 sm:$0xff]   ;;  %v4644_v7 = vld [vmem:[#allocation9 + $0x30] ss:$12 sps:$4 sm:$0xff]  }
  0x41   :  { %319 = vmatpush1.bf16.msra.mxu0 %v4632_v3  ;;  %v4647_v8 = vld [vmem:[#allocation9 + $0x4c] ss:$12 sps:$4 sm:$0xff]   ;;  %v4649_v9 = vld [vmem:[#allocation9 + $0x8] ss:$12 sps:$4 sm:$0xff]   ;;  %v4654_v11 = vld [vmem:[#allocation9 + $0x64] ss:$12 sps:$4 sm:$0xff]  }
  0x42   :  { %320 = vmatprep.subr.bf16.mxu0 %v4635_v4  ;;  %v4652_v10 = vld [vmem:[#allocation9 + $0x48] ss:$12 sps:$4 sm:$0xff]   ;;  %3646 = vmatpush3.bf16.msra.mxu1 %v4649_v9  ;;  %v4658_v12 = vld [vmem:[#allocation9 + $0x20] ss:$12 sps:$4 sm:$0xff]   ;;  %v4668_v15 = vld [vmem:[#allocation9 + $0x38] ss:$12 sps:$4 sm:$0xff]  }
  0x43   :  { %3647 = vmatprep.subr.bf16.mxu1 %v6280_v0  ;;  %v4661_v13 = vld [vmem:[#allocation9 + $0x60] ss:$12 sps:$4 sm:$0xff]   ;;  %v4664_v14 = vld [vmem:[#allocation9 + $0x7c] ss:$12 sps:$4 sm:$0xff]   ;;  %v4672_v16 = vld [vmem:[#allocation9 + $0x78] ss:$12 sps:$4 sm:$0xff]  }
  0x44   :  { %v4675_v17 = vld [vmem:[#allocation9 + $0x94] ss:$12 sps:$4 sm:$0xff]   ;;  %v4678_v18 = vld [vmem:[#allocation9 + $0x50] ss:$12 sps:$4 sm:$0xff]   ;;  %v4685_v20 = vld [vmem:[#allocation9 + $0xac] ss:$12 sps:$4 sm:$0xff]  }
  0x45   :  { %321 = vmatpush1.bf16.msra.mxu0 %v4638_v5  ;;  %v4682_v19 = vld [vmem:[#allocation9 + $0x90] ss:$12 sps:$4 sm:$0xff]   ;;  %v4688_v21 = vld [vmem:[#allocation9 + $0x68] ss:$12 sps:$4 sm:$0xff]   ;;  %v4696_v23 = vld [vmem:[#allocation9 + $0x80] ss:$12 sps:$4 sm:$0xff]  }
  0x46   :  { %322 = vmatprep.subr.bf16.mxu0 %v4641_v6  ;;  %3648 = vmatpush3.bf16.msra.mxu1 %v4658_v12  ;;  %v4692_v22 = vld [vmem:[#allocation9 + $0xa8] ss:$12 sps:$4 sm:$0xff]   ;;  %v4701_v24 = vld [vmem:[#allocation9 + $0x98] ss:$12 sps:$4 sm:$0xff]   ;;  %v4709_v25 = vld [vmem:[#allocation9 + $0xb0] ss:$12 sps:$4 sm:$0xff]  }
  0x47   :  { %3649 = vmatprep.subr.bf16.mxu1 %v6280_v0  ;;  %v170_v29 = vld [vmem:[%s6269_s2] sm:$0x7]  ;;  %v188_v40 = vld [vmem:[#allocation6 + $0x8] sm:$0xff]  ;;  %v189_v57 = vld [vmem:[#allocation6 + $0x10] sm:$0xff]  ;;  %s4529_s2 = smov [#allocation4]  }
  0x48   :  { %v4752_v31 = vrot.slane %v170_v29, %v174_v28  ;;  %v4754_v32 = vrot.slane %v170_v29, %v178_v30  ;;  %v187_v33 = vld [vmem:[#allocation6] sm:$0xff]  ;;  %v4758_v52 = vrot.slane %v170_v29, %v182_v51  ;;  %v422_v29 = vld [vmem:[#allocation6 + $0x18] sm:$0xff]  ;;  %s134_s19 = sshll.u32 %s4529_s2, 4  ;;  %s135_s19 = int_to_ptr.vmem [resolvable:$true] %s134_s19 }
  0x49   :  { %323 = vmatpush1.bf16.msra.mxu0 %v4644_v7 }
  0x4a   :  { %324 = vmatprep.subr.bf16.mxu0 %v4647_v8  ;;  %3650 = vmatpush3.bf16.msra.mxu1 %v4668_v15 }
  0x4b   :  { %3651 = vmatprep.subr.bf16.mxu1 %v6280_v0 }
  0x4d   :  { %325 = vmatpush1.bf16.msra.mxu0 %v4652_v10 }
  0x4e   :  { %326 = vmatprep.subr.bf16.mxu0 %v4654_v11  ;;  %3652 = vmatpush3.bf16.msra.mxu1 %v4678_v18 }
  0x4f   :  { %3653 = vmatprep.subr.bf16.mxu1 %v6280_v0 }
  0x51   :  { %327 = vmatpush1.bf16.msra.mxu0 %v4661_v13 }
  0x52   :  { %328 = vmatprep.subr.bf16.mxu0 %v4664_v14  ;;  %3654 = vmatpush3.bf16.msra.mxu1 %v4688_v21 }
  0x53   :  { %3655 = vmatprep.subr.bf16.mxu1 %v6280_v0 }
  0x55   :  { %329 = vmatpush1.bf16.msra.mxu0 %v4672_v16 }
  0x56   :  { %330 = vmatprep.subr.bf16.mxu0 %v4675_v17  ;;  %3656 = vmatpush3.bf16.msra.mxu1 %v4696_v23 }
  0x57   :  { %3657 = vmatprep.subr.bf16.mxu1 %v6280_v0 }
  0x59   :  { %331 = vmatpush1.bf16.msra.mxu0 %v4682_v19 }
  0x5a   :  { %332 = vmatprep.subr.bf16.mxu0 %v4685_v20  ;;  %3658 = vmatpush3.bf16.msra.mxu1 %v4701_v24 }
  0x5b   :  { %3659 = vmatprep.subr.bf16.mxu1 %v6280_v0 }
  0x5d   :  { %333 = vmatpush1.bf16.msra.mxu0 %v4692_v22 }
  0x5e   :  { %426 = vmatprep.subr.bf16.mxu0 %v4630_v2  ;;  %3660 = vmatpush3.bf16.msra.mxu1 %v4709_v25 }
  0x5f   :  { %3665 = vmatprep.subr.bf16.mxu1 %v6280_v0 }
  0x60   :  { %351 = vmatmul.mubr.bf16.vlgmr.msra.gmra.mrb[0].mxu0 %v6278_v1 }
  0x61   :  { %427 = vmatpush1.bf16.msra.mxu0 %v4632_v3  ;;  %458 = vmatprep.mubr.bf16.mxu0 %v6278_v1 }
  0x62   :  { %428 = vmatprep.subr.bf16.mxu0 %v4635_v4  ;;  %3662 = vmatmul.mubr.bf16.vlgmr.msra.gmra.mrb[0].mxu1 %v6278_v1 }
  0x63   :  { %3666 = vmatpush3.bf16.msra.mxu1 %v4649_v9  ;;  %3681 = vmatprep.mubr.msk.bf16.mxu1 %vm4518_vm0, %v6280_v0 }
  0x64   :  { %3667 = vmatprep.subr.bf16.mxu1 %v6280_v0 }
  0x65   :  { %429 = vmatpush1.bf16.msra.mxu0 %v4638_v5 }
  0x66   :  { %430 = vmatprep.subr.bf16.mxu0 %v4641_v6 }
  0x67   :  { %3668 = vmatpush3.bf16.msra.mxu1 %v4658_v12 }
  0x68   :  { %3669 = vmatprep.subr.bf16.mxu1 %v6280_v0 }
  0x69   :  { %431 = vmatpush1.bf16.msra.mxu0 %v4644_v7 }
  0x6a   :  { %432 = vmatprep.subr.bf16.mxu0 %v4647_v8 }
  0x6b   :  { %3670 = vmatpush3.bf16.msra.mxu1 %v4668_v15 }
  0x6c   :  { %3671 = vmatprep.subr.bf16.mxu1 %v6280_v0 }
  0x6d   :  { %433 = vmatpush1.bf16.msra.mxu0 %v4652_v10 }
  0x6e   :  { %434 = vmatprep.subr.bf16.mxu0 %v4654_v11 }
  0x6f   :  { %3672 = vmatpush3.bf16.msra.mxu1 %v4678_v18 }
  0x70   :  { %3673 = vmatprep.subr.bf16.mxu1 %v6280_v0 }
  0x71   :  { %435 = vmatpush1.bf16.msra.mxu0 %v4661_v13 }
  0x72   :  { %436 = vmatprep.subr.bf16.mxu0 %v4664_v14 }
  0x73   :  { %3674 = vmatpush3.bf16.msra.mxu1 %v4688_v21 }
  0x74   :  { %3675 = vmatprep.subr.bf16.mxu1 %v6280_v0 }
  0x75   :  { %437 = vmatpush1.bf16.msra.mxu0 %v4672_v16 }
  0x76   :  { %438 = vmatprep.subr.bf16.mxu0 %v4675_v17 }
  0x77   :  { %3676 = vmatpush3.bf16.msra.mxu1 %v4696_v23 }
  0x78   :  { %3677 = vmatprep.subr.bf16.mxu1 %v6280_v0 }
  0x79   :  { %439 = vmatpush1.bf16.msra.mxu0 %v4682_v19 }
  0x7a   :  { %440 = vmatprep.subr.bf16.mxu0 %v4685_v20 }
  0x7b   :  { %3678 = vmatpush3.bf16.msra.mxu1 %v4701_v24 }
  0x7c   :  { %3679 = vmatprep.subr.bf16.mxu1 %v6280_v0 }
  0x7d   :  { %441 = vmatpush1.bf16.msra.mxu0 %v4692_v22 }
  0x7e   :  { %535 = vmatprep.subr.bf16.mxu0 %v4630_v2 }
  0x7f   :  { %3680 = vmatpush3.bf16.msra.mxu1 %v4709_v25 }
  0x80   :  { %3685 = vmatprep.subr.bf16.mxu1 %v6280_v0 }
 0x133   :  { %v352_v34 = vpop.f32.mrb[0].mxu0 }
 0x134   :  { %v353_v35 = vadd.f32 %v352_v34, %v4752_v31  ;;  %v354_v36 = vpop.f32.mrb[1].mxu0 }
 0x135   :  { %v355_v37 = vadd.f32 %v354_v36, %v4754_v32  ;;  %v356_v38 = vpop.f32.mrb[2].mxu0  ;;  %v393_v44 = vpop.f32.mrb[0].mxu1 }
 0x136   :  { %v399_v39 = vadd.f32 %v353_v35, %v187_v33  ;;  %v357_v41 = vpop.f32.mrb[3].mxu0  ;;  %v3663_v46 = vpop.f32.mrb[1].mxu1  ;;  %v394_v55 = vadd.f32 %v393_v44, %v4758_v52 }
 0x137   :  { %v406_v43 = vadd.f32 %v355_v37, %v188_v40  ;;  %v396_v47 = vpop.f32.mrb[2].mxu1 }
 0x138   :  { %v3425_v42 = vmul.f32 -1.442695, %v399_v39  ;;  %v3664_v48 = vpop.f32.mrb[3].mxu1 }
 0x139   :  { %v3426_v45 = vmul.f32 -1.442695, %v406_v43 }
 0x13a   :  { %4057 = vpow2.f32 %v3425_v42  ;;  %v423_v42 = vld [vmem:[#allocation6 + $0x20] sm:$0xff] }
 0x13b   :  { %4059 = vpow2.f32 %v3426_v45 }
 0x144   :  { %v4058_v49 = vpop.eup %4057 }
 0x145   :  { %v403_v50 = vadd.f32 1.0, %v4058_v49  ;;  %v4060_v53 = vpop.eup %4059 }
 0x146   :  { %v410_v54 = vadd.f32 1.0, %v4060_v53 }
 0x147   :  { %4061 = vrcp.f32 %v403_v50 }
 0x148   :  { %4063 = vrcp.f32 %v410_v54 }
 0x151   :  { %v4062_v56 = vpop.eup %4061 }
 0x152   :  { %v413_v58 = vmul.f32 %v4062_v56, %v394_v55  ;;  %v4064_v60 = vpop.eup %4063  ;;  %v424_v55 = vld [vmem:[#allocation6 + $0x28] sm:$0xff] }
 0x153   :  { %v416_v61 = vsub.f32 1.0, %v4064_v60  ;;  %v418_v28 = vmul.f32 0.0, %v4064_v60 }
 0x154   :  { %v414_v59 = vadd.f32 %v413_v58, %v189_v57 }
 0x156   :  { %4065 = vtanh.f32 %v414_v59 }
 0x160   :  { %v4066_v62 = vpop.eup %4065 }
 0x161   :  { %v417_v63 = vmul.f32 %v4066_v62, %v416_v61 }
 0x163   :  { %v4761_v30 = vadd.f32 %v418_v28, %v417_v63 }
 0x165   :  { %420 = vst [vmem:[#allocation11] sm:$0xff] %v4761_v30  ;;  %v425_v27 = vpack.c.bf16 %v4761_v30, %v4761_v30 }
 0x167   :  { %459 = vmatmul.mubr.bf16.vlgmr.msra.gmra.mrb[4].mxu0 %v425_v27  ;;  %3682 = vmatmul.mubr.bf16.vlgmr.msra.gmra.mrb[4].mxu1 %v425_v27 }
 0x168   :  { %536 = vmatpush1.bf16.msra.mxu0 %v4632_v3  ;;  %3686 = vmatpush3.bf16.msra.mxu1 %v4649_v9 }
 0x169   :  { %537 = vmatprep.subr.bf16.mxu0 %v4635_v4  ;;  %3687 = vmatprep.subr.bf16.mxu1 %v6280_v0 }
 0x16a   :  { %567 = vmatprep.mubr.bf16.mxu0 %v6278_v1  ;;  %3701 = vmatprep.mubr.msk.bf16.mxu1 %vm4518_vm0, %v6280_v0 }
 0x16c   :  { %538 = vmatpush1.bf16.msra.mxu0 %v4638_v5  ;;  %3688 = vmatpush3.bf16.msra.mxu1 %v4658_v12 }
 0x16d   :  { %539 = vmatprep.subr.bf16.mxu0 %v4641_v6  ;;  %3689 = vmatprep.subr.bf16.mxu1 %v6280_v0 }
 0x170   :  { %540 = vmatpush1.bf16.msra.mxu0 %v4644_v7  ;;  %3690 = vmatpush3.bf16.msra.mxu1 %v4668_v15 }
 0x171   :  { %541 = vmatprep.subr.bf16.mxu0 %v4647_v8  ;;  %3691 = vmatprep.subr.bf16.mxu1 %v6280_v0 }
 0x174   :  { %542 = vmatpush1.bf16.msra.mxu0 %v4652_v10  ;;  %3692 = vmatpush3.bf16.msra.mxu1 %v4678_v18 }
 0x175   :  { %543 = vmatprep.subr.bf16.mxu0 %v4654_v11  ;;  %3693 = vmatprep.subr.bf16.mxu1 %v6280_v0 }
 0x178   :  { %544 = vmatpush1.bf16.msra.mxu0 %v4661_v13  ;;  %3694 = vmatpush3.bf16.msra.mxu1 %v4688_v21 }
 0x179   :  { %545 = vmatprep.subr.bf16.mxu0 %v4664_v14  ;;  %3695 = vmatprep.subr.bf16.mxu1 %v6280_v0 }
 0x17c   :  { %546 = vmatpush1.bf16.msra.mxu0 %v4672_v16  ;;  %3696 = vmatpush3.bf16.msra.mxu1 %v4696_v23 }
 0x17d   :  { %547 = vmatprep.subr.bf16.mxu0 %v4675_v17  ;;  %3697 = vmatprep.subr.bf16.mxu1 %v6280_v0 }
 0x180   :  { %548 = vmatpush1.bf16.msra.mxu0 %v4682_v19  ;;  %3698 = vmatpush3.bf16.msra.mxu1 %v4701_v24 }
 0x181   :  { %549 = vmatprep.subr.bf16.mxu0 %v4685_v20  ;;  %3699 = vmatprep.subr.bf16.mxu1 %v6280_v0 }
 0x184   :  { %550 = vmatpush1.bf16.msra.mxu0 %v4692_v22  ;;  %3700 = vmatpush3.bf16.msra.mxu1 %v4709_v25 }
 0x185   :  { %644 = vmatprep.subr.bf16.mxu0 %v4630_v2  ;;  %3705 = vmatprep.subr.bf16.mxu1 %v6280_v0 }
 0x23a   :  { %v460_v33 = vpop.f32.mrb[4].mxu0  ;;  %v501_v34 = vpop.f32.mrb[4].mxu1 }
 0x23b   :  { %v461_v35 = vadd.f32 %v460_v33, %v4752_v31  ;;  %v462_v36 = vpop.f32.mrb[5].mxu0  ;;  %v3683_v37 = vpop.f32.mrb[5].mxu1  ;;  %v502_v53 = vadd.f32 %v501_v34, %v4758_v52 }
 0x23c   :  { %v463_v38 = vadd.f32 %v462_v36, %v4754_v32  ;;  %v464_v39 = vpop.f32.mrb[6].mxu0  ;;  %v504_v40 = vpop.f32.mrb[6].mxu1 }
 0x23d   :  { %v507_v41 = vadd.f32 %v461_v35, %v422_v29  ;;  %v465_v43 = vpop.f32.mrb[7].mxu0  ;;  %v3684_v44 = vpop.f32.mrb[7].mxu1  ;;  %v532_v40 = vld [vmem:[#allocation6 + $0x38] sm:$0xff] }
 0x23e   :  { %v514_v46 = vadd.f32 %v463_v38, %v423_v42 }
 0x23f   :  { %v3427_v45 = vmul.f32 -1.442695, %v507_v41 }
 0x240   :  { %v3428_v47 = vmul.f32 -1.442695, %v514_v46 }
 0x241   :  { %4067 = vpow2.f32 %v3427_v45 }
 0x242   :  { %4069 = vpow2.f32 %v3428_v47 }
 0x24b   :  { %v4068_v48 = vpop.eup %4067 }
 0x24c   :  { %v511_v49 = vadd.f32 1.0, %v4068_v48  ;;  %v4070_v50 = vpop.eup %4069 }
 0x24d   :  { %v518_v51 = vadd.f32 1.0, %v4070_v50 }
 0x24e   :  { %4071 = vrcp.f32 %v511_v49 }
 0x24f   :  { %4073 = vrcp.f32 %v518_v51 }
 0x258   :  { %v4072_v54 = vpop.eup %4071 }
 0x259   :  { %v521_v56 = vmul.f32 %v4072_v54, %v502_v53  ;;  %v4074_v58 = vpop.eup %4073  ;;  %v533_v53 = vld [vmem:[#allocation6 + $0x40] sm:$0xff] }
 0x25a   :  { %v524_v59 = vsub.f32 1.0, %v4074_v58  ;;  %v526_v62 = vmul.f32 %v4074_v58, %v4761_v30  ;;  %v531_v30 = vld [vmem:[#allocation6 + $0x30] sm:$0xff] }
 0x25b   :  { %v522_v57 = vadd.f32 %v521_v56, %v424_v55 }
 0x25d   :  { %4075 = vtanh.f32 %v522_v57 }
 0x267   :  { %v4076_v60 = vpop.eup %4075 }
 0x268   :  { %v525_v61 = vmul.f32 %v4076_v60, %v524_v59 }
 0x26a   :  { %v4805_v63 = vadd.f32 %v526_v62, %v525_v61 }
 0x26c   :  { %529 = vst [vmem:[#allocation11 + $0x8] sm:$0xff] %v4805_v63  ;;  %v534_v28 = vpack.c.bf16 %v4805_v63, %v4805_v63 }
 0x26e   :  { %568 = vmatmul.mubr.bf16.vlgmr.msra.gmra.mrb[8].mxu0 %v534_v28  ;;  %3702 = vmatmul.mubr.bf16.vlgmr.msra.gmra.mrb[8].mxu1 %v534_v28 }
 0x26f   :  { %645 = vmatpush1.bf16.msra.mxu0 %v4632_v3  ;;  %3706 = vmatpush3.bf16.msra.mxu1 %v4649_v9 }
 0x270   :  { %646 = vmatprep.subr.bf16.mxu0 %v4635_v4  ;;  %3707 = vmatprep.subr.bf16.mxu1 %v6280_v0 }
 0x271   :  { %676 = vmatprep.mubr.bf16.mxu0 %v6278_v1  ;;  %3721 = vmatprep.mubr.msk.bf16.mxu1 %vm4518_vm0, %v6280_v0 }
 0x273   :  { %647 = vmatpush1.bf16.msra.mxu0 %v4638_v5  ;;  %3708 = vmatpush3.bf16.msra.mxu1 %v4658_v12 }
 0x274   :  { %648 = vmatprep.subr.bf16.mxu0 %v4641_v6  ;;  %3709 = vmatprep.subr.bf16.mxu1 %v6280_v0 }
 0x277   :  { %649 = vmatpush1.bf16.msra.mxu0 %v4644_v7  ;;  %3710 = vmatpush3.bf16.msra.mxu1 %v4668_v15 }
 0x278   :  { %650 = vmatprep.subr.bf16.mxu0 %v4647_v8  ;;  %3711 = vmatprep.subr.bf16.mxu1 %v6280_v0 }
 0x27b   :  { %651 = vmatpush1.bf16.msra.mxu0 %v4652_v10  ;;  %3712 = vmatpush3.bf16.msra.mxu1 %v4678_v18 }
 0x27c   :  { %652 = vmatprep.subr.bf16.mxu0 %v4654_v11  ;;  %3713 = vmatprep.subr.bf16.mxu1 %v6280_v0 }
 0x27f   :  { %653 = vmatpush1.bf16.msra.mxu0 %v4661_v13  ;;  %3714 = vmatpush3.bf16.msra.mxu1 %v4688_v21 }
 0x280   :  { %654 = vmatprep.subr.bf16.mxu0 %v4664_v14  ;;  %3715 = vmatprep.subr.bf16.mxu1 %v6280_v0 }
 0x283   :  { %655 = vmatpush1.bf16.msra.mxu0 %v4672_v16  ;;  %3716 = vmatpush3.bf16.msra.mxu1 %v4696_v23 }
 0x284   :  { %656 = vmatprep.subr.bf16.mxu0 %v4675_v17  ;;  %3717 = vmatprep.subr.bf16.mxu1 %v6280_v0 }
 0x287   :  { %657 = vmatpush1.bf16.msra.mxu0 %v4682_v19  ;;  %3718 = vmatpush3.bf16.msra.mxu1 %v4701_v24 }
 0x288   :  { %658 = vmatprep.subr.bf16.mxu0 %v4685_v20  ;;  %3719 = vmatprep.subr.bf16.mxu1 %v6280_v0 }
 0x28b   :  { %659 = vmatpush1.bf16.msra.mxu0 %v4692_v22  ;;  %3720 = vmatpush3.bf16.msra.mxu1 %v4709_v25 }
 0x28c   :  { %753 = vmatprep.subr.bf16.mxu0 %v4630_v2  ;;  %3725 = vmatprep.subr.bf16.mxu1 %v6280_v0 }
 0x341   :  { %v569_v27 = vpop.f32.mrb[8].mxu0  ;;  %v610_v29 = vpop.f32.mrb[8].mxu1 }
 0x342   :  { %v570_v33 = vadd.f32 %v569_v27, %v4752_v31  ;;  %v571_v34 = vpop.f32.mrb[9].mxu0  ;;  %v3703_v35 = vpop.f32.mrb[9].mxu1  ;;  %v611_v50 = vadd.f32 %v610_v29, %v4758_v52 }
 0x343   :  { %v572_v36 = vadd.f32 %v571_v34, %v4754_v32  ;;  %v573_v37 = vpop.f32.mrb[10].mxu0  ;;  %v613_v38 = vpop.f32.mrb[10].mxu1 }
 0x344   :  { %v616_v39 = vadd.f32 %v570_v33, %v531_v30  ;;  %v574_v41 = vpop.f32.mrb[11].mxu0  ;;  %v3704_v42 = vpop.f32.mrb[11].mxu1  ;;  %v641_v38 = vld [vmem:[#allocation6 + $0x50] sm:$0xff] }
 0x345   :  { %v623_v44 = vadd.f32 %v572_v36, %v532_v40 }
 0x346   :  { %v3429_v43 = vmul.f32 -1.442695, %v616_v39 }
 0x347   :  { %v3430_v45 = vmul.f32 -1.442695, %v623_v44 }
 0x348   :  { %4077 = vpow2.f32 %v3429_v43 }
 0x349   :  { %4079 = vpow2.f32 %v3430_v45 }
 0x352   :  { %v4078_v46 = vpop.eup %4077 }
 0x353   :  { %v620_v47 = vadd.f32 1.0, %v4078_v46  ;;  %v4080_v48 = vpop.eup %4079 }
 0x354   :  { %v627_v49 = vadd.f32 1.0, %v4080_v48 }
 0x355   :  { %4081 = vrcp.f32 %v620_v47 }
 0x356   :  { %4083 = vrcp.f32 %v627_v49 }
 0x35f   :  { %v4082_v51 = vpop.eup %4081 }
 0x360   :  { %v630_v54 = vmul.f32 %v4082_v51, %v611_v50  ;;  %v4084_v56 = vpop.eup %4083  ;;  %v642_v50 = vld [vmem:[#allocation6 + $0x58] sm:$0xff] }
 0x361   :  { %v633_v57 = vsub.f32 1.0, %v4084_v56  ;;  %v635_v60 = vmul.f32 %v4084_v56, %v4805_v63  ;;  %v640_v63 = vld [vmem:[#allocation6 + $0x48] sm:$0xff] }
 0x362   :  { %v631_v55 = vadd.f32 %v630_v54, %v533_v53 }
 0x364   :  { %4085 = vtanh.f32 %v631_v55 }
 0x36e   :  { %v4086_v58 = vpop.eup %4085 }
 0x36f   :  { %v634_v59 = vmul.f32 %v4086_v58, %v633_v57 }
 0x371   :  { %v4849_v61 = vadd.f32 %v635_v60, %v634_v59 }
 0x373   :  { %638 = vst [vmem:[#allocation11 + $0x10] sm:$0xff] %v4849_v61  ;;  %v643_v62 = vpack.c.bf16 %v4849_v61, %v4849_v61 }
 0x375   :  { %677 = vmatmul.mubr.bf16.vlgmr.msra.gmra.mrb[12].mxu0 %v643_v62  ;;  %3722 = vmatmul.mubr.bf16.vlgmr.msra.gmra.mrb[12].mxu1 %v643_v62 }
 0x376   :  { %754 = vmatpush1.bf16.msra.mxu0 %v4632_v3  ;;  %3726 = vmatpush3.bf16.msra.mxu1 %v4649_v9 }
 0x377   :  { %755 = vmatprep.subr.bf16.mxu0 %v4635_v4  ;;  %3727 = vmatprep.subr.bf16.mxu1 %v6280_v0 }
 0x378   :  { %785 = vmatprep.mubr.bf16.mxu0 %v6278_v1  ;;  %3741 = vmatprep.mubr.msk.bf16.mxu1 %vm4518_vm0, %v6280_v0 }
 0x37a   :  { %756 = vmatpush1.bf16.msra.mxu0 %v4638_v5  ;;  %3728 = vmatpush3.bf16.msra.mxu1 %v4658_v12 }
 0x37b   :  { %757 = vmatprep.subr.bf16.mxu0 %v4641_v6  ;;  %3729 = vmatprep.subr.bf16.mxu1 %v6280_v0 }
 0x37e   :  { %758 = vmatpush1.bf16.msra.mxu0 %v4644_v7  ;;  %3730 = vmatpush3.bf16.msra.mxu1 %v4668_v15 }
 0x37f   :  { %759 = vmatprep.subr.bf16.mxu0 %v4647_v8  ;;  %3731 = vmatprep.subr.bf16.mxu1 %v6280_v0 }
 0x382   :  { %760 = vmatpush1.bf16.msra.mxu0 %v4652_v10  ;;  %3732 = vmatpush3.bf16.msra.mxu1 %v4678_v18 }
 0x383   :  { %761 = vmatprep.subr.bf16.mxu0 %v4654_v11  ;;  %3733 = vmatprep.subr.bf16.mxu1 %v6280_v0 }
 0x386   :  { %762 = vmatpush1.bf16.msra.mxu0 %v4661_v13  ;;  %3734 = vmatpush3.bf16.msra.mxu1 %v4688_v21 }
 0x387   :  { %763 = vmatprep.subr.bf16.mxu0 %v4664_v14  ;;  %3735 = vmatprep.subr.bf16.mxu1 %v6280_v0 }
 0x38a   :  { %764 = vmatpush1.bf16.msra.mxu0 %v4672_v16  ;;  %3736 = vmatpush3.bf16.msra.mxu1 %v4696_v23 }
 0x38b   :  { %765 = vmatprep.subr.bf16.mxu0 %v4675_v17  ;;  %3737 = vmatprep.subr.bf16.mxu1 %v6280_v0 }
 0x38e   :  { %766 = vmatpush1.bf16.msra.mxu0 %v4682_v19  ;;  %3738 = vmatpush3.bf16.msra.mxu1 %v4701_v24 }
 0x38f   :  { %767 = vmatprep.subr.bf16.mxu0 %v4685_v20  ;;  %3739 = vmatprep.subr.bf16.mxu1 %v6280_v0 }
 0x392   :  { %768 = vmatpush1.bf16.msra.mxu0 %v4692_v22  ;;  %3740 = vmatpush3.bf16.msra.mxu1 %v4709_v25 }
 0x393   :  { %862 = vmatprep.subr.bf16.mxu0 %v4630_v2  ;;  %3745 = vmatprep.subr.bf16.mxu1 %v6280_v0 }
 0x448   :  { %v678_v28 = vpop.f32.mrb[12].mxu0  ;;  %v719_v30 = vpop.f32.mrb[12].mxu1 }
 0x449   :  { %v679_v27 = vadd.f32 %v678_v28, %v4752_v31  ;;  %v680_v29 = vpop.f32.mrb[13].mxu0  ;;  %v3723_v33 = vpop.f32.mrb[13].mxu1  ;;  %v720_v48 = vadd.f32 %v719_v30, %v4758_v52 }
 0x44a   :  { %v681_v34 = vadd.f32 %v680_v29, %v4754_v32  ;;  %v682_v35 = vpop.f32.mrb[14].mxu0  ;;  %v722_v36 = vpop.f32.mrb[14].mxu1 }
 0x44b   :  { %v725_v37 = vadd.f32 %v679_v27, %v640_v63  ;;  %v683_v39 = vpop.f32.mrb[15].mxu0  ;;  %v3724_v40 = vpop.f32.mrb[15].mxu1  ;;  %v750_v36 = vld [vmem:[#allocation6 + $0x68] sm:$0xff] }
 0x44c   :  { %v732_v42 = vadd.f32 %v681_v34, %v641_v38 }
 0x44d   :  { %v3431_v41 = vmul.f32 -1.442695, %v725_v37 }
 0x44e   :  { %v3432_v43 = vmul.f32 -1.442695, %v732_v42 }
 0x44f   :  { %4087 = vpow2.f32 %v3431_v41 }
 0x450   :  { %4089 = vpow2.f32 %v3432_v43 }
 0x459   :  { %v4088_v44 = vpop.eup %4087 }
 0x45a   :  { %v729_v45 = vadd.f32 1.0, %v4088_v44  ;;  %v4090_v46 = vpop.eup %4089 }
 0x45b   :  { %v736_v47 = vadd.f32 1.0, %v4090_v46 }
 0x45c   :  { %4091 = vrcp.f32 %v729_v45 }
 0x45d   :  { %4093 = vrcp.f32 %v736_v47 }
 0x466   :  { %v4092_v49 = vpop.eup %4091 }
 0x467   :  { %v739_v51 = vmul.f32 %v4092_v49, %v720_v48  ;;  %v4094_v54 = vpop.eup %4093  ;;  %v751_v48 = vld [vmem:[#allocation6 + $0x70] sm:$0xff] }
 0x468   :  { %v742_v55 = vsub.f32 1.0, %v4094_v54  ;;  %v744_v58 = vmul.f32 %v4094_v54, %v4849_v61  ;;  %v749_v61 = vld [vmem:[#allocation6 + $0x60] sm:$0xff] }
 0x469   :  { %v740_v53 = vadd.f32 %v739_v51, %v642_v50 }
 0x46b   :  { %4095 = vtanh.f32 %v740_v53 }
 0x475   :  { %v4096_v56 = vpop.eup %4095 }
 0x476   :  { %v743_v57 = vmul.f32 %v4096_v56, %v742_v55 }
 0x478   :  { %v4893_v59 = vadd.f32 %v744_v58, %v743_v57 }
 0x47a   :  { %747 = vst [vmem:[#allocation11 + $0x18] sm:$0xff] %v4893_v59  ;;  %v752_v60 = vpack.c.bf16 %v4893_v59, %v4893_v59 }
 0x47c   :  { %786 = vmatmul.mubr.bf16.vlgmr.msra.gmra.mrb[16].mxu0 %v752_v60  ;;  %3742 = vmatmul.mubr.bf16.vlgmr.msra.gmra.mrb[16].mxu1 %v752_v60 }
 0x47d   :  { %863 = vmatpush1.bf16.msra.mxu0 %v4632_v3  ;;  %3746 = vmatpush3.bf16.msra.mxu1 %v4649_v9 }
 0x47e   :  { %864 = vmatprep.subr.bf16.mxu0 %v4635_v4  ;;  %3747 = vmatprep.subr.bf16.mxu1 %v6280_v0 }
 0x47f   :  { %894 = vmatprep.mubr.bf16.mxu0 %v6278_v1  ;;  %3761 = vmatprep.mubr.msk.bf16.mxu1 %vm4518_vm0, %v6280_v0 }
 0x481   :  { %865 = vmatpush1.bf16.msra.mxu0 %v4638_v5  ;;  %3748 = vmatpush3.bf16.msra.mxu1 %v4658_v12 }
 0x482   :  { %866 = vmatprep.subr.bf16.mxu0 %v4641_v6  ;;  %3749 = vmatprep.subr.bf16.mxu1 %v6280_v0 }
 0x485   :  { %867 = vmatpush1.bf16.msra.mxu0 %v4644_v7  ;;  %3750 = vmatpush3.bf16.msra.mxu1 %v4668_v15 }
 0x486   :  { %868 = vmatprep.subr.bf16.mxu0 %v4647_v8  ;;  %3751 = vmatprep.subr.bf16.mxu1 %v6280_v0 }
 0x489   :  { %869 = vmatpush1.bf16.msra.mxu0 %v4652_v10  ;;  %3752 = vmatpush3.bf16.msra.mxu1 %v4678_v18 }
 0x48a   :  { %870 = vmatprep.subr.bf16.mxu0 %v4654_v11  ;;  %3753 = vmatprep.subr.bf16.mxu1 %v6280_v0 }
 0x48d   :  { %871 = vmatpush1.bf16.msra.mxu0 %v4661_v13  ;;  %3754 = vmatpush3.bf16.msra.mxu1 %v4688_v21 }
 0x48e   :  { %872 = vmatprep.subr.bf16.mxu0 %v4664_v14  ;;  %3755 = vmatprep.subr.bf16.mxu1 %v6280_v0 }
 0x491   :  { %873 = vmatpush1.bf16.msra.mxu0 %v4672_v16  ;;  %3756 = vmatpush3.bf16.msra.mxu1 %v4696_v23 }
 0x492   :  { %874 = vmatprep.subr.bf16.mxu0 %v4675_v17  ;;  %3757 = vmatprep.subr.bf16.mxu1 %v6280_v0 }
 0x495   :  { %875 = vmatpush1.bf16.msra.mxu0 %v4682_v19  ;;  %3758 = vmatpush3.bf16.msra.mxu1 %v4701_v24 }
 0x496   :  { %876 = vmatprep.subr.bf16.mxu0 %v4685_v20  ;;  %3759 = vmatprep.subr.bf16.mxu1 %v6280_v0 }
 0x499   :  { %877 = vmatpush1.bf16.msra.mxu0 %v4692_v22  ;;  %3760 = vmatpush3.bf16.msra.mxu1 %v4709_v25 }
 0x49a   :  { %971 = vmatprep.subr.bf16.mxu0 %v4630_v2  ;;  %3765 = vmatprep.subr.bf16.mxu1 %v6280_v0 }
 0x54f   :  { %v787_v62 = vpop.f32.mrb[16].mxu0  ;;  %v828_v63 = vpop.f32.mrb[16].mxu1 }
 0x550   :  { %v788_v28 = vadd.f32 %v787_v62, %v4752_v31  ;;  %v789_v30 = vpop.f32.mrb[17].mxu0  ;;  %v3743_v27 = vpop.f32.mrb[17].mxu1  ;;  %v829_v46 = vadd.f32 %v828_v63, %v4758_v52 }
 0x551   :  { %v790_v29 = vadd.f32 %v789_v30, %v4754_v32  ;;  %v791_v33 = vpop.f32.mrb[18].mxu0  ;;  %v831_v34 = vpop.f32.mrb[18].mxu1 }
 0x552   :  { %v834_v35 = vadd.f32 %v788_v28, %v749_v61  ;;  %v792_v37 = vpop.f32.mrb[19].mxu0  ;;  %v3744_v38 = vpop.f32.mrb[19].mxu1  ;;  %v860_v33 = vld [vmem:[#allocation6 + $0x88] sm:$0xff] }
 0x553   :  { %v841_v40 = vadd.f32 %v790_v29, %v750_v36 }
 0x554   :  { %v3433_v39 = vmul.f32 -1.442695, %v834_v35 }
 0x555   :  { %v3434_v41 = vmul.f32 -1.442695, %v841_v40 }
 0x556   :  { %4097 = vpow2.f32 %v3433_v39 }
 0x557   :  { %4099 = vpow2.f32 %v3434_v41 }
 0x560   :  { %v4098_v42 = vpop.eup %4097 }
 0x561   :  { %v838_v43 = vadd.f32 1.0, %v4098_v42  ;;  %v4100_v44 = vpop.eup %4099 }
 0x562   :  { %v845_v45 = vadd.f32 1.0, %v4100_v44  ;;  %v4138_v44 = vld [vmem:[#allocation9 + $0x8] ss:$12 sps:$4 sm:$0xff]  }
 0x563   :  { %4101 = vrcp.f32 %v838_v43  ;;  %v4137_v43 = vld [vmem:[#allocation9] ss:$12 sps:$4 sm:$0xff]  }
 0x564   :  { %4103 = vrcp.f32 %v845_v45  ;;  %v4139_v45 = vld [vmem:[#allocation9 + $0x1c] ss:$12 sps:$4 sm:$0xff]  }
 0x56d   :  { %v4102_v47 = vpop.eup %4101 }
 0x56e   :  { %v848_v49 = vmul.f32 %v4102_v47, %v829_v46  ;;  %v4104_v51 = vpop.eup %4103  ;;  %v4140_v46 = vld [vmem:[#allocation9 + $0x18] ss:$12 sps:$4 sm:$0xff]   ;;  %v4141_v47 = vld [vmem:[#allocation9 + $0x20] ss:$12 sps:$4 sm:$0xff]  }
 0x56f   :  { %v851_v53 = vsub.f32 1.0, %v4104_v51  ;;  %v853_v56 = vmul.f32 %v4104_v51, %v4893_v59  ;;  %v4145_v51 = vld [vmem:[#allocation9 + $0x48] ss:$12 sps:$4 sm:$0xff]  }
 0x570   :  { %v849_v50 = vadd.f32 %v848_v49, %v751_v48  ;;  %v4142_v48 = vld [vmem:[#allocation9 + $0x34] ss:$12 sps:$4 sm:$0xff]   ;;  %v4143_v49 = vld [vmem:[#allocation9 + $0x30] ss:$12 sps:$4 sm:$0xff]  }
 0x572   :  { %4105 = vtanh.f32 %v849_v50  ;;  %v4144_v50 = vld [vmem:[#allocation9 + $0x4c] ss:$12 sps:$4 sm:$0xff]  }
 0x57c   :  { %v4106_v54 = vpop.eup %4105 }
 0x57d   :  { %v852_v55 = vmul.f32 %v4106_v54, %v851_v53  ;;  %v4146_v53 = vld [vmem:[#allocation9 + $0x64] ss:$12 sps:$4 sm:$0xff]   ;;  %v4147_v54 = vld [vmem:[#allocation9 + $0x60] ss:$12 sps:$4 sm:$0xff]  }
 0x57f   :  { %v4937_v57 = vadd.f32 %v853_v56, %v852_v55  ;;  %v4148_v55 = vld [vmem:[#allocation9 + $0x7c] ss:$12 sps:$4 sm:$0xff]  }
 0x581   :  { %856 = vst [vmem:[#allocation11 + $0x20] sm:$0xff] %v4937_v57  ;;  %v861_v58 = vpack.c.bf16 %v4937_v57, %v4937_v57 }
 0x583   :  { %895 = vmatmul.mubr.bf16.vlgmr.msra.gmra.mrb[20].mxu0 %v861_v58  ;;  %3762 = vmatmul.mubr.bf16.vlgmr.msra.gmra.mrb[20].mxu1 %v861_v58  ;;  %v968_v58 = vld [vmem:[#allocation6 + $0x98] sm:$0xff] }
 0x584   :  { %972 = vmatpush1.bf16.msra.mxu0 %v4632_v3  ;;  %3766 = vmatpush3.bf16.msra.mxu1 %v4649_v9  ;;  %v858_v3 = vld [vmem:[#allocation6 + $0x78] sm:$0xff] }
 0x585   :  { %973 = vmatprep.subr.bf16.mxu0 %v4635_v4  ;;  %3767 = vmatprep.subr.bf16.mxu1 %v6280_v0 }
 0x586   :  { %1003 = vmatprep.mubr.bf16.mxu0 %v6278_v1  ;;  %3781 = vmatprep.mubr.msk.bf16.mxu1 %vm4518_vm0, %v6280_v0 }
 0x588   :  { %974 = vmatpush1.bf16.msra.mxu0 %v4638_v5  ;;  %3768 = vmatpush3.bf16.msra.mxu1 %v4658_v12 }
 0x589   :  { %975 = vmatprep.subr.bf16.mxu0 %v4641_v6  ;;  %3769 = vmatprep.subr.bf16.mxu1 %v6280_v0 }
 0x58c   :  { %976 = vmatpush1.bf16.msra.mxu0 %v4644_v7  ;;  %3770 = vmatpush3.bf16.msra.mxu1 %v4668_v15 }
 0x58d   :  { %977 = vmatprep.subr.bf16.mxu0 %v4647_v8  ;;  %3771 = vmatprep.subr.bf16.mxu1 %v6280_v0 }
 0x590   :  { %978 = vmatpush1.bf16.msra.mxu0 %v4652_v10  ;;  %3772 = vmatpush3.bf16.msra.mxu1 %v4678_v18 }
 0x591   :  { %979 = vmatprep.subr.bf16.mxu0 %v4654_v11  ;;  %3773 = vmatprep.subr.bf16.mxu1 %v6280_v0 }
 0x594   :  { %980 = vmatpush1.bf16.msra.mxu0 %v4661_v13  ;;  %3774 = vmatpush3.bf16.msra.mxu1 %v4688_v21  ;;  %v859_v13 = vld [vmem:[#allocation6 + $0x80] sm:$0xff] }
 0x595   :  { %981 = vmatprep.subr.bf16.mxu0 %v4664_v14  ;;  %3775 = vmatprep.subr.bf16.mxu1 %v6280_v0 }
 0x598   :  { %982 = vmatpush1.bf16.msra.mxu0 %v4672_v16  ;;  %3776 = vmatpush3.bf16.msra.mxu1 %v4696_v23 }
 0x599   :  { %983 = vmatprep.subr.bf16.mxu0 %v4675_v17  ;;  %3777 = vmatprep.subr.bf16.mxu1 %v6280_v0 }
 0x59c   :  { %984 = vmatpush1.bf16.msra.mxu0 %v4682_v19  ;;  %3778 = vmatpush3.bf16.msra.mxu1 %v4701_v24 }
 0x59d   :  { %985 = vmatprep.subr.bf16.mxu0 %v4685_v20  ;;  %3779 = vmatprep.subr.bf16.mxu1 %v6280_v0 }
 0x5a0   :  { %986 = vmatpush1.bf16.msra.mxu0 %v4692_v22  ;;  %3780 = vmatpush3.bf16.msra.mxu1 %v4709_v25 }
 0x5a1   :  { %1080 = vmatprep.subr.bf16.mxu0 %v4630_v2  ;;  %3785 = vmatprep.subr.bf16.mxu1 %v6280_v0 }
 0x656   :  { %v896_v4 = vpop.f32.mrb[20].mxu0  ;;  %v937_v5 = vpop.f32.mrb[20].mxu1 }
 0x657   :  { %v897_v6 = vadd.f32 %v896_v4, %v4752_v31  ;;  %v898_v7 = vpop.f32.mrb[21].mxu0  ;;  %v3763_v8 = vpop.f32.mrb[21].mxu1  ;;  %v938_v27 = vadd.f32 %v937_v5, %v4758_v52 }
 0x658   :  { %v899_v9 = vadd.f32 %v898_v7, %v4754_v32  ;;  %v900_v10 = vpop.f32.mrb[22].mxu0  ;;  %v940_v11 = vpop.f32.mrb[22].mxu1 }
 0x659   :  { %v943_v12 = vadd.f32 %v897_v6, %v858_v3  ;;  %v901_v14 = vpop.f32.mrb[23].mxu0  ;;  %v3764_v59 = vpop.f32.mrb[23].mxu1  ;;  %v969_v11 = vld [vmem:[#allocation6 + $0xa0] sm:$0xff] }
 0x65a   :  { %v950_v61 = vadd.f32 %v899_v9, %v859_v13 }
 0x65b   :  { %v3435_v60 = vmul.f32 -1.442695, %v943_v12 }
 0x65c   :  { %v3436_v2 = vmul.f32 -1.442695, %v950_v61 }
 0x65d   :  { %4107 = vpow2.f32 %v3435_v60 }
 0x65e   :  { %4109 = vpow2.f32 %v3436_v2 }
 0x667   :  { %v4108_v62 = vpop.eup %4107 }
 0x668   :  { %v947_v63 = vadd.f32 1.0, %v4108_v62  ;;  %v4110_v28 = vpop.eup %4109 }
 0x669   :  { %v954_v30 = vadd.f32 1.0, %v4110_v28 }
 0x66a   :  { %4111 = vrcp.f32 %v947_v63 }
 0x66b   :  { %4113 = vrcp.f32 %v954_v30 }
 0x674   :  { %v4112_v29 = vpop.eup %4111 }
 0x675   :  { %v957_v34 = vmul.f32 %v4112_v29, %v938_v27  ;;  %v4114_v36 = vpop.eup %4113 }
 0x676   :  { %v960_v37 = vsub.f32 1.0, %v4114_v36  ;;  %v962_v40 = vmul.f32 %v4114_v36, %v4937_v57 }
 0x677   :  { %v958_v35 = vadd.f32 %v957_v34, %v860_v33 }
 0x679   :  { %4115 = vtanh.f32 %v958_v35 }
 0x683   :  { %v4116_v38 = vpop.eup %4115 }
 0x684   :  { %v961_v39 = vmul.f32 %v4116_v38, %v960_v37 }
 0x686   :  { %v4981_v41 = vadd.f32 %v962_v40, %v961_v39 }
 0x688   :  { %965 = vst [vmem:[#allocation11 + $0x28] sm:$0xff] %v4981_v41  ;;  %v970_v42 = vpack.c.bf16 %v4981_v41, %v4981_v41 }
 0x68a   :  { %1004 = vmatmul.mubr.bf16.vlgmr.msra.gmra.mrb[24].mxu0 %v970_v42  ;;  %3782 = vmatmul.mubr.bf16.vlgmr.msra.gmra.mrb[24].mxu1 %v970_v42 }
 0x68b   :  { %1081 = vmatpush1.bf16.msra.mxu0 %v4137_v43  ;;  %3786 = vmatpush3.bf16.msra.mxu1 %v4138_v44 }
 0x68c   :  { %1082 = vmatprep.subr.bf16.mxu0 %v4139_v45  ;;  %3787 = vmatprep.subr.bf16.mxu1 %v6280_v0 }
 0x68d   :  { %1112 = vmatprep.mubr.bf16.mxu0 %v6278_v1  ;;  %3801 = vmatprep.mubr.msk.bf16.mxu1 %vm4518_vm0, %v6280_v0 }
 0x68f   :  { %1083 = vmatpush1.bf16.msra.mxu0 %v4140_v46  ;;  %3788 = vmatpush3.bf16.msra.mxu1 %v4141_v47 }
 0x690   :  { %1084 = vmatprep.subr.bf16.mxu0 %v4142_v48  ;;  %3789 = vmatprep.subr.bf16.mxu1 %v6280_v0 }
 0x693   :  { %1085 = vmatpush1.bf16.msra.mxu0 %v4143_v49  ;;  %3790 = vmatpush3.bf16.msra.mxu1 %v4668_v15  ;;  %v967_v15 = vld [vmem:[#allocation6 + $0x90] sm:$0xff] }
 0x694   :  { %1086 = vmatprep.subr.bf16.mxu0 %v4144_v50  ;;  %3791 = vmatprep.subr.bf16.mxu1 %v6280_v0 }
 0x697   :  { %1087 = vmatpush1.bf16.msra.mxu0 %v4145_v51  ;;  %3792 = vmatpush3.bf16.msra.mxu1 %v4678_v18 }
 0x698   :  { %1088 = vmatprep.subr.bf16.mxu0 %v4146_v53  ;;  %3793 = vmatprep.subr.bf16.mxu1 %v6280_v0 }
 0x69b   :  { %1089 = vmatpush1.bf16.msra.mxu0 %v4147_v54  ;;  %3794 = vmatpush3.bf16.msra.mxu1 %v4688_v21 }
 0x69c   :  { %1090 = vmatprep.subr.bf16.mxu0 %v4148_v55  ;;  %3795 = vmatprep.subr.bf16.mxu1 %v6280_v0 }
 0x69f   :  { %1091 = vmatpush1.bf16.msra.mxu0 %v4672_v16  ;;  %3796 = vmatpush3.bf16.msra.mxu1 %v4696_v23 }
 0x6a0   :  { %1092 = vmatprep.subr.bf16.mxu0 %v4675_v17  ;;  %3797 = vmatprep.subr.bf16.mxu1 %v6280_v0 }
 0x6a3   :  { %1093 = vmatpush1.bf16.msra.mxu0 %v4682_v19  ;;  %3798 = vmatpush3.bf16.msra.mxu1 %v4701_v24 }
 0x6a4   :  { %1094 = vmatprep.subr.bf16.mxu0 %v4685_v20  ;;  %3799 = vmatprep.subr.bf16.mxu1 %v6280_v0 }
 0x6a7   :  { %1095 = vmatpush1.bf16.msra.mxu0 %v4692_v22  ;;  %3800 = vmatpush3.bf16.msra.mxu1 %v4709_v25 }
 0x75d   :  { %v1005_v16 = vpop.f32.mrb[24].mxu0  ;;  %v1046_v18 = vpop.f32.mrb[24].mxu1 }
 0x75e   :  { %v1006_v21 = vadd.f32 %v1005_v16, %v4752_v31  ;;  %v1007_v17 = vpop.f32.mrb[25].mxu0  ;;  %v3783_v23 = vpop.f32.mrb[25].mxu1  ;;  %v1047_v9 = vadd.f32 %v1046_v18, %v4758_v52 }
 0x75f   :  { %v1008_v56 = vadd.f32 %v1007_v17, %v4754_v32  ;;  %v1009_v19 = vpop.f32.mrb[26].mxu0  ;;  %v1049_v57 = vpop.f32.mrb[26].mxu1 }
 0x760   :  { %v1052_v24 = vadd.f32 %v1006_v21, %v967_v15  ;;  %v1010_v20 = vpop.f32.mrb[27].mxu0  ;;  %v3784_v3 = vpop.f32.mrb[27].mxu1 }
 0x761   :  { %v1059_v5 = vadd.f32 %v1008_v56, %v968_v58 }
 0x762   :  { %v3437_v4 = vmul.f32 -1.442695, %v1052_v24 }
 0x763   :  { %v3438_v22 = vmul.f32 -1.442695, %v1059_v5 }
 0x764   :  { %4117 = vpow2.f32 %v3437_v4 }
 0x765   :  { %4119 = vpow2.f32 %v3438_v22 }
 0x76e   :  { %v4118_v25 = vpop.eup %4117 }
 0x76f   :  { %v1056_v6 = vadd.f32 1.0, %v4118_v25  ;;  %v4120_v7 = vpop.eup %4119 }
 0x770   :  { %v1063_v8 = vadd.f32 1.0, %v4120_v7 }
 0x771   :  { %4121 = vrcp.f32 %v1056_v6 }
 0x772   :  { %4123 = vrcp.f32 %v1063_v8 }
 0x77b   :  { %v4122_v10 = vpop.eup %4121 }
 0x77c   :  { %v1066_v12 = vmul.f32 %v4122_v10, %v1047_v9  ;;  %v4124_v14 = vpop.eup %4123 }
 0x77d   :  { %v1069_v59 = vsub.f32 1.0, %v4124_v14  ;;  %v1071_v2 = vmul.f32 %v4124_v14, %v4981_v41 }
 0x77e   :  { %v1067_v13 = vadd.f32 %v1066_v12, %v969_v11 }
 0x780   :  { %4125 = vtanh.f32 %v1067_v13 }
 0x78a   :  { %v4126_v60 = vpop.eup %4125 }
 0x78b   :  { %v1070_v61 = vmul.f32 %v4126_v60, %v1069_v59 }
 0x78d   :  { %v1072_v62 = vadd.f32 %v1071_v2, %v1070_v61 }
 0x78f   :  { %1074 = vst [vmem:[#allocation11 + $0x30] sm:$0xff] %v1072_v62  ;;  %v1079_v63 = vpack.c.bf16 %v1072_v62, %v1072_v62 }
 0x791   :  { %1113 = vmatmul.mubr.bf16.vlgmr.msra.gmra.mrb[28].mxu0 %v1079_v63  ;;  %3802 = vmatmul.mubr.bf16.vlgmr.msra.gmra.mrb[28].mxu1 %v1079_v63 }
 0x792   :  { %4391 = shalt.err (!%p4388_p4)  }
 0x793   :  { %s4392_s27 = scalar_lea.vmem %s135_s19, 1024  ;;  %p4397_p6 = scmp.lt.s32.totalorder %s135_s19, %s135_s19 }
 0x794   :  { %p4393_p5 = scmp.ne.s32.totalorder %s135_s19, %s4392_s27  ;;  %p4398_p7 = scmp.lt.s32.totalorder %s4392_s27, %s4392_s27 }
 0x796   :  { %p4399_p8 = por %p4398_p7, %p4397_p6 }
 0x798   :  { %p4400_p9 = pnand %p4399_p8, %p4393_p5 }
 0x79a   :  { %4403 = shalt.err (!%p4400_p9)  }
 0x79b   :  { %137 = dma.hbm_to_vmem [thread:$0]  %s6273_s6, 1024, %s135_s19, [#allocation5 + $0x2]  ;;  %v1076_v28 = vld [vmem:[#allocation6 + $0xa8] sm:$0xff]  ;;  %v1077_v39 = vld [vmem:[#allocation6 + $0xb0] sm:$0xff] }
 0x864   :  { %v1114_v30 = vpop.f32.mrb[28].mxu0  ;;  %v1155_v27 = vpop.f32.mrb[28].mxu1 }
 0x865   :  { %v1115_v29 = vadd.f32 %v1114_v30, %v4752_v31  ;;  %v1116_v33 = vpop.f32.mrb[29].mxu0  ;;  %v3803_v34 = vpop.f32.mrb[29].mxu1  ;;  %v1156_v48 = vadd.f32 %v1155_v27, %v4758_v52 }
 0x866   :  { %v1117_v35 = vadd.f32 %v1116_v33, %v4754_v32  ;;  %v1118_v36 = vpop.f32.mrb[30].mxu0  ;;  %v1158_v37 = vpop.f32.mrb[30].mxu1  ;;  %v1078_v32 = vld [vmem:[#allocation6 + $0xb8] sm:$0xff] }
 0x867   :  { %v1161_v38 = vadd.f32 %v1115_v29, %v1076_v28  ;;  %v1119_v40 = vpop.f32.mrb[31].mxu0  ;;  %v3804_v41 = vpop.f32.mrb[31].mxu1 }
 0x868   :  { %v1168_v43 = vadd.f32 %v1117_v35, %v1077_v39 }
 0x869   :  { %v3439_v42 = vmul.f32 -1.442695, %v1161_v38 }
 0x86a   :  { %v3440_v44 = vmul.f32 -1.442695, %v1168_v43 }
 0x86b   :  { %4127 = vpow2.f32 %v3439_v42 }
 0x86c   :  { %4129 = vpow2.f32 %v3440_v44 }
 0x875   :  { %v4128_v45 = vpop.eup %4127 }
 0x876   :  { %v1165_v46 = vadd.f32 1.0, %v4128_v45  ;;  %v4130_v47 = vpop.eup %4129 }
 0x877   :  { %v1172_v31 = vadd.f32 1.0, %v4130_v47 }
 0x878   :  { %4131 = vrcp.f32 %v1165_v46 }
 0x879   :  { %4133 = vrcp.f32 %v1172_v31 }
 0x882   :  { %v4132_v49 = vpop.eup %4131 }
 0x883   :  { %v1175_v50 = vmul.f32 %v4132_v49, %v1156_v48  ;;  %v4134_v53 = vpop.eup %4133 }
 0x884   :  { %v1178_v54 = vsub.f32 1.0, %v4134_v53  ;;  %v1180_v16 = vmul.f32 %v4134_v53, %v1072_v62 }
 0x885   :  { %v1176_v51 = vadd.f32 %v1175_v50, %v1078_v32 }
 0x887   :  { %4135 = vtanh.f32 %v1176_v51 }
 0x891   :  { %v4136_v55 = vpop.eup %4135 }
 0x892   :  { %v1179_v15 = vmul.f32 %v4136_v55, %v1178_v54 }
 0x894   :  { %v5026_v18 = vadd.f32 %v1180_v16, %v1179_v15 }
 0x896   :  { %1183 = vst [vmem:[#allocation11 + $0x38] sm:$0xff] %v5026_v18  ;;  %1184 = vst [vmem:[#allocation12] sm:$0xff] %v5026_v18 }
 0x897   :  { %4496 = dma.done.wait [#allocation5], 4096 }
 0x898   :  { %4497 = vsyncadd [#allocation5], 4294963200 }
 0x899   :  { %4498 = dma.done.wait [#allocation5 + $0x1], 4096 }
 0x89a   :  { %4499 = vsyncadd [#allocation5 + $0x1], 4294963200 }
 0x89b   :  { %4500 = dma.done.wait [#allocation5 + $0x2], 1024 }
 0x89c   :  { %4501 = vsyncadd [#allocation5 + $0x2], 4294966272  ;;  %1312 = vmatprep.mubr.bf16.mxu0 %v6278_v1  ;;  %1353 = vmatprep.mubr.bf16.mxu1 %v6278_v1  ;;  %v5032_v52 = vld [vmem:[#allocation3 + $0x8] sm:$0xff]  ;;  %v5034_v21 = vld [vmem:[#allocation3 + $0x18] sm:$0xff]  ;;  %v1279_v33 = vpack.c.bf16 %v5026_v18, %v5026_v18  ;;  %s4532_s15 = smov [#allocation11]  }
 0x89d   :  { %6454 = vst [vmem:[#allocation33_spill] sm:$0xff] %v5032_v52  ;;  %6455 = vst [vmem:[#allocation34_spill] sm:$0xff] %v5034_v21  ;;  %v5036_v17 = vld [vmem:[#allocation3] sm:$0xff]  ;;  %1280 = vmatprep.subr.bf16.mxu0 %v5032_v52  ;;  %1321 = vmatprep.subr.bf16.mxu1 %v5034_v21  ;;  %v5040_v23 = vld [vmem:[#allocation3 + $0x10] sm:$0xff]  ;;  %s3321_s16 = sshll.u32 %s4532_s15, 4  ;;  %s3322_s16 = int_to_ptr.vmem [resolvable:$true] %s3321_s16 }
 0x89e   :  { %6456 = vst [vmem:[#allocation35_spill] sm:$0xff] %v5036_v17  ;;  %v5042_v56 = vld [vmem:[#allocation3 + $0x28] sm:$0xff]  ;;  %v5044_v19 = vld [vmem:[#allocation3 + $0x38] sm:$0xff]  ;;  %1281 = vmatpush1.bf16.msra.mxu0 %v5036_v17  ;;  %1322 = vmatpush1.bf16.msra.mxu1 %v5040_v23  ;;  %v5050_v57 = vld [vmem:[#allocation3 + $0x20] sm:$0xff] }
 0x89f   :  { %6457 = vst [vmem:[#allocation36_spill] sm:$0xff] %v5042_v56  ;;  %1282 = vmatprep.subr.bf16.mxu0 %v5042_v56  ;;  %1323 = vmatprep.subr.bf16.mxu1 %v5044_v19  ;;  %6458 = vst [vmem:[#allocation37_spill] sm:$0xff] %v5050_v57  ;;  %v5052_v24 = vld [vmem:[#allocation3 + $0x30] sm:$0xff]  ;;  %v5054_v58 = vld [vmem:[#allocation3 + $0x48] sm:$0xff] }
 0x8a0   :  { %6459 = vst [vmem:[#allocation38_spill] sm:$0xff] %v5054_v58  ;;  %v5056_v20 = vld [vmem:[#allocation3 + $0x58] sm:$0xff]  ;;  %v5062_v3 = vld [vmem:[#allocation3 + $0x40] sm:$0xff]  ;;  %v5064_v4 = vld [vmem:[#allocation3 + $0x50] sm:$0xff] }
 0x8a1   :  { %6460 = vst [vmem:[#allocation39_spill] sm:$0xff] %v5062_v3  ;;  %v5066_v5 = vld [vmem:[#allocation3 + $0x68] sm:$0xff]  ;;  %v5068_v22 = vld [vmem:[#allocation3 + $0x78] sm:$0xff]  ;;  %v5074_v25 = vld [vmem:[#allocation3 + $0x60] sm:$0xff] }
 0x8a2   :  { %1283 = vmatpush1.bf16.msra.mxu0 %v5050_v57  ;;  %1324 = vmatpush1.bf16.msra.mxu1 %v5052_v24  ;;  %6461 = vst [vmem:[#allocation40_spill] sm:$0xff] %v5066_v5  ;;  %6462 = vst [vmem:[#allocation41_spill] sm:$0xff] %v5074_v25  ;;  %v5076_v6 = vld [vmem:[#allocation3 + $0x70] sm:$0xff]  ;;  %v5078_v7 = vld [vmem:[#allocation3 + $0x88] sm:$0xff] }
 0x8a3   :  { %1284 = vmatprep.subr.bf16.mxu0 %v5054_v58  ;;  %1325 = vmatprep.subr.bf16.mxu1 %v5056_v20  ;;  %6463 = vst [vmem:[#allocation42_spill] sm:$0xff] %v5078_v7  ;;  %v5080_v8 = vld [vmem:[#allocation3 + $0x98] sm:$0xff]  ;;  %v5086_v9 = vld [vmem:[#allocation3 + $0x80] sm:$0xff]  ;;  %v5088_v10 = vld [vmem:[#allocation3 + $0x90] sm:$0xff] }
 0x8a4   :  { %6464 = vst [vmem:[#allocation43_spill] sm:$0xff] %v5086_v9  ;;  %v5090_v11 = vld [vmem:[#allocation3 + $0xa8] sm:$0xff]  ;;  %v5092_v12 = vld [vmem:[#allocation3 + $0xb8] sm:$0xff]  ;;  %v5098_v13 = vld [vmem:[#allocation3 + $0xa0] sm:$0xff] }
 0x8a5   :  { %6465 = vst [vmem:[#allocation44_spill] sm:$0xff] %v5090_v11  ;;  %6466 = vst [vmem:[#allocation45_spill] sm:$0xff] %v5098_v13  ;;  %v5100_v14 = vld [vmem:[#allocation3 + $0xb0] sm:$0xff]  ;;  %v5102_v59 = vld [vmem:[#allocation3 + $0xc8] sm:$0xff] }
 0x8a6   :  { %1285 = vmatpush1.bf16.msra.mxu0 %v5062_v3  ;;  %1326 = vmatpush1.bf16.msra.mxu1 %v5064_v4  ;;  %6467 = vst [vmem:[#allocation46_spill] sm:$0xff] %v5102_v59  ;;  %v5104_v60 = vld [vmem:[#allocation3 + $0xd8] sm:$0xff]  ;;  %v5110_v61 = vld [vmem:[#allocation3 + $0xc0] sm:$0xff]  ;;  %v5112_v2 = vld [vmem:[#allocation3 + $0xd0] sm:$0xff] }
 0x8a7   :  { %1286 = vmatprep.subr.bf16.mxu0 %v5066_v5  ;;  %1327 = vmatprep.subr.bf16.mxu1 %v5068_v22  ;;  %6468 = vst [vmem:[#allocation47_spill] sm:$0xff] %v5110_v61  ;;  %v5114_v62 = vld [vmem:[#allocation3 + $0xe8] sm:$0xff]  ;;  %v5116_v63 = vld [vmem:[#allocation3 + $0xf8] sm:$0xff]  ;;  %v5122_v28 = vld [vmem:[#allocation3 + $0xe0] sm:$0xff] }
 0x8a8   :  { %6469 = vst [vmem:[#allocation48_spill] sm:$0xff] %v5114_v62  ;;  %6470 = vst [vmem:[#allocation49_spill] sm:$0xff] %v5122_v28  ;;  %v5124_v30 = vld [vmem:[#allocation3 + $0xf0] sm:$0xff]  ;;  %v5126_v27 = vld [vmem:[#allocation2 + $0x8] sm:$0xff] }
 0x8a9   :  { %6471 = vst [vmem:[#allocation50_spill] sm:$0xff] %v5126_v27  ;;  %v5128_v29 = vld [vmem:[#allocation2 + $0x18] sm:$0xff]  ;;  %v5136_v34 = vld [vmem:[#allocation2] sm:$0xff]  ;;  %v5138_v35 = vld [vmem:[#allocation2 + $0x10] sm:$0xff] }
 0x8aa   :  { %1287 = vmatpush1.bf16.msra.mxu0 %v5074_v25  ;;  %1328 = vmatpush1.bf16.msra.mxu1 %v5076_v6  ;;  %v5140_v36 = vld [vmem:[#allocation2 + $0x28] sm:$0xff]  ;;  %v5142_v37 = vld [vmem:[#allocation2 + $0x38] sm:$0xff]  ;;  %v5148_v38 = vld [vmem:[#allocation2 + $0x20] sm:$0xff] }
 0x8ab   :  { %1288 = vmatprep.subr.bf16.mxu0 %v5078_v7  ;;  %1329 = vmatprep.subr.bf16.mxu1 %v5080_v8  ;;  %v5150_v39 = vld [vmem:[#allocation2 + $0x30] sm:$0xff]  ;;  %v5152_v40 = vld [vmem:[#allocation2 + $0x48] sm:$0xff]  ;;  %v5154_v41 = vld [vmem:[#allocation2 + $0x58] sm:$0xff] }
 0x8ac   :  { %v5162_v42 = vld [vmem:[#allocation2 + $0x40] sm:$0xff]  ;;  %v5164_v43 = vld [vmem:[#allocation2 + $0x50] sm:$0xff]  ;;  %v5166_v44 = vld [vmem:[#allocation2 + $0x68] sm:$0xff] }
 0x8ad   :  { %v5168_v45 = vld [vmem:[#allocation2 + $0x78] sm:$0xff]  ;;  %v5174_v46 = vld [vmem:[#allocation2 + $0x60] sm:$0xff]  ;;  %v5176_v47 = vld [vmem:[#allocation2 + $0x70] sm:$0xff] }
 0x8ae   :  { %1289 = vmatpush1.bf16.msra.mxu0 %v5086_v9  ;;  %1330 = vmatpush1.bf16.msra.mxu1 %v5088_v10  ;;  %v5178_v31 = vld [vmem:[#allocation2 + $0x88] sm:$0xff]  ;;  %v5180_v48 = vld [vmem:[#allocation2 + $0x98] sm:$0xff]  ;;  %v5186_v49 = vld [vmem:[#allocation2 + $0x80] sm:$0xff] }
 0x8af   :  { %1290 = vmatprep.subr.bf16.mxu0 %v5090_v11  ;;  %1331 = vmatprep.subr.bf16.mxu1 %v5092_v12  ;;  %v5188_v32 = vld [vmem:[#allocation2 + $0x90] sm:$0xff]  ;;  %v5190_v50 = vld [vmem:[#allocation2 + $0xa8] sm:$0xff]  ;;  %v5192_v51 = vld [vmem:[#allocation2 + $0xb8] sm:$0xff] }
 0x8b0   :  { %6472 = vst [vmem:[#allocation51_spill] sm:$0xff] %v5192_v51  ;;  %v5198_v53 = vld [vmem:[#allocation2 + $0xa0] sm:$0xff]  ;;  %v5200_v54 = vld [vmem:[#allocation2 + $0xb0] sm:$0xff]  ;;  %v5202_v55 = vld [vmem:[#allocation2 + $0xc8] sm:$0xff] }
 0x8b1   :  { %6473 = vst [vmem:[#allocation52_spill] sm:$0xff] %v5200_v54  ;;  %v5204_v15 = vld [vmem:[#allocation2 + $0xd8] sm:$0xff]  ;;  %v5210_v16 = vld [vmem:[#allocation2 + $0xc0] sm:$0xff]  ;;  %v5217_v0 = vld [vmem:[#allocation2 + $0xe8] sm:$0xff] }
 0x8b2   :  { %1291 = vmatpush1.bf16.msra.mxu0 %v5098_v13  ;;  %1332 = vmatpush1.bf16.msra.mxu1 %v5100_v14  ;;  %6474 = vst [vmem:[#allocation53_spill] sm:$0xff] %v5204_v15 }
 0x8b3   :  { %1292 = vmatprep.subr.bf16.mxu0 %v5102_v59  ;;  %1333 = vmatprep.subr.bf16.mxu1 %v5104_v60 }
 0x8b6   :  { %1293 = vmatpush1.bf16.msra.mxu0 %v5110_v61  ;;  %1334 = vmatpush1.bf16.msra.mxu1 %v5112_v2 }
 0x8b7   :  { %1294 = vmatprep.subr.bf16.mxu0 %v5114_v62  ;;  %1335 = vmatprep.subr.bf16.mxu1 %v5116_v63 }
 0x8ba   :  { %1295 = vmatpush1.bf16.msra.mxu0 %v5122_v28  ;;  %1336 = vmatpush1.bf16.msra.mxu1 %v5124_v30 }
 0x8bb   :  { %1362 = vmatprep.subr.bf16.mxu0 %v5126_v27  ;;  %1403 = vmatprep.subr.bf16.mxu1 %v5128_v29 }
 0x8bd   :  { %1313 = vmatmul.mubr.bf16.vlgmr.msra.gmra.mrb[32].mxu0 %v1279_v33  ;;  %1354 = vmatmul.mubr.bf16.vlgmr.msra.gmra.mrb[32].mxu1 %v1279_v33  ;;  %v5212_v33 = vld [vmem:[#allocation2 + $0xd0] sm:$0xff] }
 0x8be   :  { %1363 = vmatpush1.bf16.msra.mxu0 %v5136_v34  ;;  %1404 = vmatpush1.bf16.msra.mxu1 %v5138_v35  ;;  %6475 = vst [vmem:[#allocation54_spill] sm:$0xff] %v5212_v33 }
 0x8bf   :  { %1364 = vmatprep.subr.bf16.mxu0 %v5140_v36  ;;  %1405 = vmatprep.subr.bf16.mxu1 %v5142_v37 }
 0x8c0   :  { %1394 = vmatprep.mubr.bf16.mxu0 %v6278_v1  ;;  %1435 = vmatprep.mubr.bf16.mxu1 %v6278_v1  ;;  %v5215_v1 = vand.u32 127, %v172_v26  ;;  %v6479_v26 = vmov 0.0  }
 0x8c2   :  { %1365 = vmatpush1.bf16.msra.mxu0 %v5148_v38  ;;  %1406 = vmatpush1.bf16.msra.mxu1 %v5150_v39  ;;  %6476 = vst [vmem:[#allocation55_spill] sm:$0xff] %v5215_v1  ;;  %vm1275_vm1 = vcmp.eq.s32.totalorder %v5215_v1, 1  ;;  %v6480_v1 = vmov 0  }
 0x8c3   :  { %1366 = vmatprep.subr.bf16.mxu0 %v5152_v40  ;;  %1407 = vmatprep.subr.bf16.mxu1 %v5154_v41  ;;  %vm3443_vm2 = vmpackc.low %vm1275_vm1, %vm1275_vm1 }
 0x8c6   :  { %1367 = vmatpush1.bf16.msra.mxu0 %v5162_v42  ;;  %1408 = vmatpush1.bf16.msra.mxu1 %v5164_v43 }
 0x8c7   :  { %1368 = vmatprep.subr.bf16.mxu0 %v5166_v44  ;;  %1409 = vmatprep.subr.bf16.mxu1 %v5168_v45 }
 0x8ca   :  { %1369 = vmatpush1.bf16.msra.mxu0 %v5174_v46  ;;  %1410 = vmatpush1.bf16.msra.mxu1 %v5176_v47 }
 0x8cb   :  { %1370 = vmatprep.subr.bf16.mxu0 %v5178_v31  ;;  %1411 = vmatprep.subr.bf16.mxu1 %v5180_v48 }
 0x8ce   :  { %1371 = vmatpush1.bf16.msra.mxu0 %v5186_v49  ;;  %1412 = vmatpush1.bf16.msra.mxu1 %v5188_v32 }
 0x8cf   :  { %1372 = vmatprep.subr.bf16.mxu0 %v5190_v50  ;;  %1413 = vmatprep.subr.bf16.mxu1 %v5192_v51  ;;  %v5219_v51 = vld [vmem:[#allocation2 + $0xf8] sm:$0xff] }
 0x8d0   :  { %6477 = vst [vmem:[#allocation56_spill] sm:$0xff] %v5219_v51 }
 0x8d2   :  { %1373 = vmatpush1.bf16.msra.mxu0 %v5198_v53  ;;  %1414 = vmatpush1.bf16.msra.mxu1 %v5200_v54  ;;  %v5227_v54 = vld [vmem:[#allocation2 + $0xf0] sm:$0xff] }
 0x8d3   :  { %1374 = vmatprep.subr.bf16.mxu0 %v5202_v55  ;;  %1415 = vmatprep.subr.bf16.mxu1 %v5204_v15  ;;  %v5225_v15 = vld [vmem:[#allocation2 + $0xe0] sm:$0xff]  ;;  %6478 = vst [vmem:[#allocation57_spill] sm:$0xff] %v5227_v54 }
 0x8d6   :  { %1375 = vmatpush1.bf16.msra.mxu0 %v5210_v16  ;;  %1416 = vmatpush1.bf16.msra.mxu1 %v5212_v33  ;;  %v6292_v33 = vmov 1.0|1.0  }
 0x8d7   :  { %1376 = vmatprep.subr.bf16.mxu0 %v5217_v0  ;;  %1417 = vmatprep.subr.bf16.mxu1 %v5219_v51 }
 0x8da   :  { %1377 = vmatpush1.bf16.msra.mxu0 %v5225_v15  ;;  %1418 = vmatpush1.bf16.msra.mxu1 %v5227_v54 }
 0x8db   :  { %3805 = vmatprep.subr.bf16.mxu0 %v6479_v26  ;;  %1536 = vmatprep.subr.bf16.mxu1 %v5032_v52 }
 0x8dd   :  { %3444 = vmatmul.mubr.msk.bf16.vlgmr.msra.gmra.mrb[32].mxu0 %vm3443_vm2, %v6292_v33  ;;  %3446 = vmatmul.mubr.msk.bf16.vlgmr.msra.gmra.mrb[36].mxu1 %vm3443_vm2, %v6292_v33  ;;  %v5255_v33 = vld [vmem:[#allocation4] sm:$0xff] }
 0x8de   :  { %1537 = vmatpush1.bf16.msra.mxu1 %v5036_v17  ;;  %3821 = vmatprep.mubr.msk.bf16.mxu0 %vm4518_vm0, %v6479_v26  ;;  %6481 = vst [vmem:[#allocation58_spill] sm:$0xff] %v5255_v33 }
 0x8df   :  { %1538 = vmatprep.subr.bf16.mxu1 %v5042_v56  ;;  %1568 = vmatprep.mubr.bf16.mxu1 %v6480_v1 }
 0x8e0   :  { %3806 = vmatpush3.bf16.msra.mxu0 %v5255_v33 }
 0x8e1   :  { %3807 = vmatprep.subr.bf16.mxu0 %v6479_v26 }
 0x8e2   :  { %1539 = vmatpush1.bf16.msra.mxu1 %v5050_v57 }
 0x8e3   :  { %1540 = vmatprep.subr.bf16.mxu1 %v5054_v58 }
 0x8e6   :  { %1541 = vmatpush1.bf16.msra.mxu1 %v5062_v3 }
 0x8e7   :  { %1542 = vmatprep.subr.bf16.mxu1 %v5066_v5 }
 0x8ea   :  { %1543 = vmatpush1.bf16.msra.mxu1 %v5074_v25 }
 0x8eb   :  { %1544 = vmatprep.subr.bf16.mxu1 %v5078_v7 }
 0x8ee   :  { %1545 = vmatpush1.bf16.msra.mxu1 %v5086_v9  ;;  %v5259_v9 = vld [vmem:[#allocation4 + $0x8] sm:$0xff] }
 0x8ef   :  { %1546 = vmatprep.subr.bf16.mxu1 %v5090_v11  ;;  %6482 = vst [vmem:[#allocation59_spill] sm:$0xff] %v5259_v9  ;;  %3808 = vmatpush3.bf16.msra.mxu0 %v5259_v9 }
 0x8f0   :  { %3809 = vmatprep.subr.bf16.mxu0 %v6479_v26 }
 0x8f2   :  { %1547 = vmatpush1.bf16.msra.mxu1 %v5098_v13  ;;  %v5283_v13 = vld [vmem:[#allocation4 + $0x38] sm:$0xff] }
 0x8f3   :  { %1548 = vmatprep.subr.bf16.mxu1 %v5102_v59  ;;  %v5263_v59 = vld [vmem:[#allocation4 + $0x10] sm:$0xff]  ;;  %6488 = vst [vmem:[#allocation65_spill] sm:$0xff] %v5283_v13 }
 0x8f4   :  { %6483 = vst [vmem:[#allocation60_spill] sm:$0xff] %v5263_v59  ;;  %3810 = vmatpush3.bf16.msra.mxu0 %v5263_v59 }
 0x8f5   :  { %3811 = vmatprep.subr.bf16.mxu0 %v6479_v26 }
 0x8f6   :  { %1549 = vmatpush1.bf16.msra.mxu1 %v5110_v61  ;;  %v5279_v61 = vld [vmem:[#allocation4 + $0x30] sm:$0xff] }
 0x8f7   :  { %1550 = vmatprep.subr.bf16.mxu1 %v5114_v62  ;;  %v5275_v62 = vld [vmem:[#allocation4 + $0x28] sm:$0xff]  ;;  %6487 = vst [vmem:[#allocation64_spill] sm:$0xff] %v5279_v61 }
 0x8f8   :  { %6486 = vst [vmem:[#allocation63_spill] sm:$0xff] %v5275_v62 }
 0x8fa   :  { %1551 = vmatpush1.bf16.msra.mxu1 %v5122_v28  ;;  %v5267_v28 = vld [vmem:[#allocation4 + $0x18] sm:$0xff] }
 0x8fb   :  { %1618 = vmatprep.subr.bf16.mxu1 %v5126_v27  ;;  %6484 = vst [vmem:[#allocation61_spill] sm:$0xff] %v5267_v28  ;;  %3812 = vmatpush3.bf16.msra.mxu0 %v5267_v28  ;;  %v5271_v27 = vld [vmem:[#allocation4 + $0x20] sm:$0xff] }
 0x8fc   :  { %3813 = vmatprep.subr.bf16.mxu0 %v6479_v26  ;;  %6485 = vst [vmem:[#allocation62_spill] sm:$0xff] %v5271_v27 }
 0x8ff   :  { %3814 = vmatpush3.bf16.msra.mxu0 %v5271_v27 }
 0x900   :  { %3815 = vmatprep.subr.bf16.mxu0 %v6479_v26 }
 0x903   :  { %3816 = vmatpush3.bf16.msra.mxu0 %v5275_v62 }
 0x904   :  { %3817 = vmatprep.subr.bf16.mxu0 %v6479_v26 }
 0x907   :  { %3818 = vmatpush3.bf16.msra.mxu0 %v5279_v61 }
 0x908   :  { %3819 = vmatprep.subr.bf16.mxu0 %v6479_v26 }
 0x90b   :  { %3820 = vmatpush3.bf16.msra.mxu0 %v5283_v13 }
 0x90c   :  { %1577 = vmatprep.subr.bf16.mxu0 %v5034_v21 }
 0x990   :  { %v1355_v11 = vpop.f32.mrb[32].mxu1 }
 0x991   :  { %v1357_v27 = vpop.f32.mrb[33].mxu1 }
 0x992   :  { %v1359_v7 = vpop.f32.mrb[34].mxu1 }
 0x993   :  { %v1360_v25 = vpop.f32.mrb[35].mxu1 }
 0x9b0   :  { %v1396_v28 = vpop.f32.mrb[32].mxu0  ;;  %v1437_v62 = vpop.f32.mrb[36].mxu1 }
 0x9b1   :  { %v3447_v5 = vmul.f32 -1.442695, %v1396_v28  ;;  %v1438_v3 = vadd.f32 %v1437_v62, %v1355_v11  ;;  %v1398_v59 = vpop.f32.mrb[33].mxu0  ;;  %v1439_v58 = vpop.f32.mrb[37].mxu1 }
 0x9b2   :  { %v1440_v57 = vadd.f32 %v1439_v58, %v1357_v27  ;;  %v1400_v61 = vpop.f32.mrb[34].mxu0  ;;  %v1441_v9 = vpop.f32.mrb[38].mxu1  ;;  %v3448_v33 = vmul.f32 -1.442695, %v1398_v59 }
 0x9b3   :  { %4149 = vpow2.f32 %v3447_v5  ;;  %v1401_v56 = vpop.f32.mrb[35].mxu0  ;;  %v1442_v17 = vpop.f32.mrb[39].mxu1  ;;  %v6494_v9 = vld [vmem:[#allocation33_spill] sm:$0xff] }
 0x9b4   :  { %4151 = vpow2.f32 %v3448_v33 }
 0x9bd   :  { %v4150_v13 = vpop.eup %4149 }
 0x9be   :  { %v1447_v21 = vadd.f32 1.0, %v4150_v13  ;;  %v4152_v52 = vpop.eup %4151  ;;  %v5346_v13 = vld [vmem:[%s6270_s3] ss:$0 sm:$0xff] }
 0x9bf   :  { %v1453_v7 = vadd.f32 1.0, %v4152_v52  ;;  %v6490_v52 = vld [vmem:[#allocation52_spill] sm:$0xff] }
 0x9c0   :  { %4153 = vrcp.f32 %v1447_v21  ;;  %v6491_v21 = vld [vmem:[#allocation53_spill] sm:$0xff] }
 0x9c1   :  { %4155 = vrcp.f32 %v1453_v7 }
 0x9ca   :  { %v4154_v25 = vpop.eup %4153 }
 0x9cb   :  { %v1456_v54 = vmul.f32 %v4154_v25, %v1440_v57  ;;  %v4156_v11 = vpop.eup %4155  ;;  %v6492_v57 = vld [vmem:[#allocation54_spill] sm:$0xff] }
 0x9cc   :  { %v1459_v62 = vsub.f32 1.0, %v4156_v11  ;;  %v1461_v5 = vmul.f32 %v4156_v11, %v5026_v18  ;;  %v6489_v18 = vld [vmem:[#allocation51_spill] sm:$0xff] }
 0x9cd   :  { %v1457_v28 = vadd.f32 %v1456_v54, %v1438_v3  ;;  %v6493_v3 = vld [vmem:[#allocation57_spill] sm:$0xff]  ;;  %6495 = vst [vmem:[#allocation51_spill] sm:$0xff] %v5346_v13 }
 0x9cf   :  { %4157 = vtanh.f32 %v1457_v28 }
 0x9d9   :  { %v4158_v58 = vpop.eup %4157 }
 0x9da   :  { %v1460_v61 = vmul.f32 %v4158_v58, %v1459_v62 }
 0x9dc   :  { %v5288_v56 = vadd.f32 %v1461_v5, %v1460_v61  ;;  %v6498_v61 = vld [vmem:[#allocation55_spill] sm:$0xff] }
 0x9de   :  { %v1463_v17 = vpack.c.bf16 %v5288_v56, %v5288_v56 }
 0x9e0   :  { %3822 = vmatmul.mubr.bf16.vlgmr.msra.gmra.mrb[36].mxu0 %v1463_v17  ;;  %1569 = vmatmul.mubr.bf16.vlgmr.msra.gmra.mrb[40].mxu1 %v1463_v17 }
 0x9e1   :  { %1578 = vmatpush1.bf16.msra.mxu0 %v5040_v23  ;;  %1609 = vmatprep.mubr.bf16.mxu0 %v6480_v1 }
 0x9e2   :  { %1579 = vmatprep.subr.bf16.mxu0 %v5044_v19  ;;  %1619 = vmatpush1.bf16.msra.mxu1 %v5136_v34 }
 0x9e3   :  { %1620 = vmatprep.subr.bf16.mxu1 %v5140_v36  ;;  %1650 = vmatprep.mubr.bf16.mxu1 %v6480_v1 }
 0x9e5   :  { %1580 = vmatpush1.bf16.msra.mxu0 %v5052_v24 }
 0x9e6   :  { %1581 = vmatprep.subr.bf16.mxu0 %v5056_v20  ;;  %1621 = vmatpush1.bf16.msra.mxu1 %v5148_v38 }
 0x9e7   :  { %1622 = vmatprep.subr.bf16.mxu1 %v5152_v40 }
 0x9e9   :  { %1582 = vmatpush1.bf16.msra.mxu0 %v5064_v4 }
 0x9ea   :  { %1583 = vmatprep.subr.bf16.mxu0 %v5068_v22  ;;  %1623 = vmatpush1.bf16.msra.mxu1 %v5162_v42 }
 0x9eb   :  { %1624 = vmatprep.subr.bf16.mxu1 %v5166_v44 }
 0x9ed   :  { %1584 = vmatpush1.bf16.msra.mxu0 %v5076_v6 }
 0x9ee   :  { %1585 = vmatprep.subr.bf16.mxu0 %v5080_v8  ;;  %1625 = vmatpush1.bf16.msra.mxu1 %v5174_v46 }
 0x9ef   :  { %1626 = vmatprep.subr.bf16.mxu1 %v5178_v31 }
 0x9f1   :  { %1586 = vmatpush1.bf16.msra.mxu0 %v5088_v10 }
 0x9f2   :  { %1587 = vmatprep.subr.bf16.mxu0 %v5092_v12  ;;  %1627 = vmatpush1.bf16.msra.mxu1 %v5186_v49 }
 0x9f3   :  { %1628 = vmatprep.subr.bf16.mxu1 %v5190_v50 }
 0x9f5   :  { %1588 = vmatpush1.bf16.msra.mxu0 %v5100_v14 }
 0x9f6   :  { %1589 = vmatprep.subr.bf16.mxu0 %v5104_v60  ;;  %1629 = vmatpush1.bf16.msra.mxu1 %v5198_v53 }
 0x9f7   :  { %1630 = vmatprep.subr.bf16.mxu1 %v5202_v55 }
 0x9f9   :  { %1590 = vmatpush1.bf16.msra.mxu0 %v5112_v2 }
 0x9fa   :  { %1591 = vmatprep.subr.bf16.mxu0 %v5116_v63  ;;  %1631 = vmatpush1.bf16.msra.mxu1 %v5210_v16 }
 0x9fb   :  { %1632 = vmatprep.subr.bf16.mxu1 %v5217_v0 }
 0x9fd   :  { %1592 = vmatpush1.bf16.msra.mxu0 %v5124_v30 }
 0x9fe   :  { %1659 = vmatprep.subr.bf16.mxu0 %v5128_v29  ;;  %1633 = vmatpush1.bf16.msra.mxu1 %v5225_v15 }
 0x9ff   :  { %3825 = vmatprep.subr.bf16.mxu1 %v6479_v26 }
 0xa00   :  { %1610 = vmatmul.mubr.bf16.vlgmr.msra.gmra.mrb[40].mxu0 %v1463_v17 }
 0xa01   :  { %1660 = vmatpush1.bf16.msra.mxu0 %v5138_v35  ;;  %1691 = vmatprep.mubr.bf16.mxu0 %v6480_v1 }
 0xa02   :  { %1661 = vmatprep.subr.bf16.mxu0 %v5142_v37 }
 0xa05   :  { %1662 = vmatpush1.bf16.msra.mxu0 %v5150_v39 }
 0xa06   :  { %1663 = vmatprep.subr.bf16.mxu0 %v5154_v41 }
 0xa09   :  { %1664 = vmatpush1.bf16.msra.mxu0 %v5164_v43 }
 0xa0a   :  { %1665 = vmatprep.subr.bf16.mxu0 %v5168_v45 }
 0xa0d   :  { %1666 = vmatpush1.bf16.msra.mxu0 %v5176_v47 }
 0xa0e   :  { %1667 = vmatprep.subr.bf16.mxu0 %v5180_v48 }
 0xa11   :  { %1668 = vmatpush1.bf16.msra.mxu0 %v5188_v32 }
 0xa12   :  { %1669 = vmatprep.subr.bf16.mxu0 %v6489_v18 }
 0xa15   :  { %1670 = vmatpush1.bf16.msra.mxu0 %v6490_v52 }
 0xa16   :  { %1671 = vmatprep.subr.bf16.mxu0 %v6491_v21 }
 0xa19   :  { %1672 = vmatpush1.bf16.msra.mxu0 %v6492_v57 }
 0xa1a   :  { %1673 = vmatprep.subr.bf16.mxu0 %v5219_v51 }
 0xa1d   :  { %1674 = vmatpush1.bf16.msra.mxu0 %v6493_v3 }
 0xa1e   :  { %1793 = vmatprep.subr.bf16.mxu0 %v6494_v9 }
 0xab3   :  { %v1498_v59 = vpop.f32.mrb[36].mxu0 }
 0xab4   :  { %v5349_v27 = vadd.f32 %v5346_v13, %v1498_v59  ;;  %v3823_v54 = vpop.f32.mrb[37].mxu0 }
 0xab5   :  { %v1501_v33 = vpop.f32.mrb[38].mxu0 }
 0xab6   :  { %6496 = vst [vmem:[#allocation66_spill] sm:$0xff] %v5349_v27  ;;  %1504 = vmax.xlane.f32.xlu0 %v5349_v27  ;;  %v3824_v7 = vpop.f32.mrb[39].mxu0 }
 0xad3   :  { %v1611_v25 = vpop.f32.mrb[40].mxu0 }
 0xad4   :  { %v5352_v28 = vpop.f32.mrb[41].mxu0 }
 0xad5   :  { %v1615_v11 = vpop.f32.mrb[42].mxu0 }
 0xad6   :  { %v1616_v62 = vpop.f32.mrb[43].mxu0 }
 0xb43   :  { %v5354_v58 = vpop.xlane.xlu0 %1504 }
 0xb44   :  { %6497 = vst [vmem:[#allocation67_spill] sm:$0xff] %v5354_v58  ;;  %vm1516_vm3 = vcmp.eq.f32.partialorder %v5349_v27, %v5354_v58  ;;  %v6499_v27 = vmov 1.0|1.0   ;;  %v6512_v58 = vld [vmem:[#allocation62_spill] sm:$0xff] }
 0xb45   :  { %v1517_v5 = vsel %vm1516_vm3, %v6498_v61, 128 }
 0xb46   :  { %v1519_v17 = vshra.s32 %v1517_v5, 16  ;;  %v1518_v54 = vand.u32 65535, %v1517_v5  ;;  %v6501_v5 = vld [vmem:[#allocation35_spill] sm:$0xff] }
 0xb48   :  { %v1521_v59 = vcvt.s32.f32 %v1519_v17  ;;  %v1520_v13 = vcvt.s32.f32 %v1518_v54  ;;  %v6500_v17 = vld [vmem:[#allocation58_spill] sm:$0xff]  ;;  %v6507_v54 = vld [vmem:[#allocation39_spill] sm:$0xff] }
 0xb4a   :  { %1522 = vmin.xlane.f32.xlu0 %v1521_v59 }
 0xbd7   :  { %v1523_v33 = vpop.xlane.xlu0 %1522 }
 0xbd8   :  { %vm1524_vm4 = vcmp.eq.f32.partialorder %v1521_v59, %v1523_v33  ;;  %v1529_v9 = vcvt.f32.s32 %v1523_v33  ;;  %v6506_v59 = vld [vmem:[#allocation60_spill] sm:$0xff] }
 0xbd9   :  { %v1525_v7 = vsel %vm1524_vm4, %v1520_v13, inf  ;;  %v6502_v13 = vld [vmem:[#allocation36_spill] sm:$0xff] }
 0xbda   :  { %1526 = vmin.xlane.f32.xlu1 %v1525_v7  ;;  %v1530_v11 = vshll.u32 %v1529_v9, 16  ;;  %v6505_v9 = vld [vmem:[#allocation38_spill] sm:$0xff]  ;;  %v6508_v33 = vld [vmem:[#allocation40_spill] sm:$0xff]  ;;  %v6509_v7 = vld [vmem:[#allocation61_spill] sm:$0xff] }
 0xc67   :  { %v1527_v3 = vpop.xlane.xlu1 %1526 }
 0xc68   :  { %v1528_v62 = vcvt.f32.s32 %v1527_v3  ;;  %v6503_v3 = vld [vmem:[#allocation59_spill] sm:$0xff] }
 0xc6a   :  { %v1531_v51 = vadd.s32 %v1530_v11, %v1528_v62  ;;  %v6510_v11 = vld [vmem:[#allocation41_spill] sm:$0xff]  ;;  %v6511_v62 = vld [vmem:[#allocation42_spill] sm:$0xff] }
 0xc6c   :  { %vm1532_vm5 = vcmp.eq.s32.totalorder %v6498_v61, %v1531_v51  ;;  %v6504_v51 = vld [vmem:[#allocation37_spill] sm:$0xff] }
 0xc6d   :  { %vm3450_vm6 = vmpackc.low %vm1532_vm5, %vm1532_vm5 }
 0xc6e   :  { %3451 = vmatmul.mubr.msk.bf16.vlgmr.msra.gmra.mrb[40].mxu1 %vm3450_vm6, %v6499_v27  ;;  %3453 = vmatmul.mubr.msk.bf16.vlgmr.msra.gmra.mrb[44].mxu0 %vm3450_vm6, %v6499_v27 }
 0xc6f   :  { %3826 = vmatpush3.bf16.msra.mxu1 %v6500_v17  ;;  %1794 = vmatpush1.bf16.msra.mxu0 %v6501_v5 }
 0xc70   :  { %3827 = vmatprep.subr.bf16.mxu1 %v6479_v26  ;;  %1795 = vmatprep.subr.bf16.mxu0 %v6502_v13 }
 0xc71   :  { %3841 = vmatprep.mubr.msk.bf16.mxu1 %vm4518_vm0, %v6479_v26  ;;  %1825 = vmatprep.mubr.bf16.mxu0 %v6480_v1 }
 0xc73   :  { %3828 = vmatpush3.bf16.msra.mxu1 %v6503_v3  ;;  %1796 = vmatpush1.bf16.msra.mxu0 %v6504_v51  ;;  %v6513_v51 = vld [vmem:[#allocation43_spill] sm:$0xff] }
 0xc74   :  { %3829 = vmatprep.subr.bf16.mxu1 %v6479_v26  ;;  %1797 = vmatprep.subr.bf16.mxu0 %v6505_v9  ;;  %v6516_v9 = vld [vmem:[#allocation45_spill] sm:$0xff] }
 0xc77   :  { %3830 = vmatpush3.bf16.msra.mxu1 %v6506_v59  ;;  %1798 = vmatpush1.bf16.msra.mxu0 %v6507_v54  ;;  %v6514_v59 = vld [vmem:[#allocation44_spill] sm:$0xff]  ;;  %v6515_v54 = vld [vmem:[#allocation63_spill] sm:$0xff] }
 0xc78   :  { %3831 = vmatprep.subr.bf16.mxu1 %v6479_v26  ;;  %1799 = vmatprep.subr.bf16.mxu0 %v6508_v33  ;;  %v6519_v33 = vld [vmem:[#allocation47_spill] sm:$0xff] }
 0xc7b   :  { %3832 = vmatpush3.bf16.msra.mxu1 %v6509_v7  ;;  %1800 = vmatpush1.bf16.msra.mxu0 %v6510_v11  ;;  %v6517_v7 = vld [vmem:[#allocation46_spill] sm:$0xff]  ;;  %v6518_v11 = vld [vmem:[#allocation64_spill] sm:$0xff] }
 0xc7c   :  { %3833 = vmatprep.subr.bf16.mxu1 %v6479_v26  ;;  %1801 = vmatprep.subr.bf16.mxu0 %v6511_v62  ;;  %v6522_v62 = vld [vmem:[#allocation49_spill] sm:$0xff] }
 0xc7f   :  { %3834 = vmatpush3.bf16.msra.mxu1 %v6512_v58  ;;  %1802 = vmatpush1.bf16.msra.mxu0 %v6513_v51  ;;  %v6520_v58 = vld [vmem:[#allocation48_spill] sm:$0xff]  ;;  %v6521_v51 = vld [vmem:[#allocation65_spill] sm:$0xff] }
 0xc80   :  { %3835 = vmatprep.subr.bf16.mxu1 %v6479_v26  ;;  %1803 = vmatprep.subr.bf16.mxu0 %v6514_v59  ;;  %v6523_v59 = vld [vmem:[#allocation34_spill] sm:$0xff] }
 0xc83   :  { %3836 = vmatpush3.bf16.msra.mxu1 %v6515_v54  ;;  %1804 = vmatpush1.bf16.msra.mxu0 %v6516_v9  ;;  %v6524_v54 = vld [vmem:[#allocation50_spill] sm:$0xff] }
 0xc84   :  { %3837 = vmatprep.subr.bf16.mxu1 %v6479_v26  ;;  %1805 = vmatprep.subr.bf16.mxu0 %v6517_v7 }
 0xc87   :  { %3838 = vmatpush3.bf16.msra.mxu1 %v6518_v11  ;;  %1806 = vmatpush1.bf16.msra.mxu0 %v6519_v33 }
 0xc88   :  { %3839 = vmatprep.subr.bf16.mxu1 %v6479_v26  ;;  %1807 = vmatprep.subr.bf16.mxu0 %v6520_v58 }
 0xc8b   :  { %3840 = vmatpush3.bf16.msra.mxu1 %v6521_v51  ;;  %1808 = vmatpush1.bf16.msra.mxu0 %v6522_v62 }
 0xc8c   :  { %1834 = vmatprep.subr.bf16.mxu1 %v6523_v59  ;;  %1875 = vmatprep.subr.bf16.mxu0 %v6524_v54 }
 0xd41   :  { %v1652_v9 = vpop.f32.mrb[40].mxu1  ;;  %v1693_v3 = vpop.f32.mrb[44].mxu0 }
 0xd42   :  { %v3454_v13 = vmul.f32 -1.442695, %v1652_v9  ;;  %v1694_v7 = vadd.f32 %v1693_v3, %v1611_v25  ;;  %v1654_v5 = vpop.f32.mrb[41].mxu1  ;;  %v1695_v11 = vpop.f32.mrb[45].mxu0 }
 0xd43   :  { %v1696_v33 = vadd.f32 %v1695_v11, %v5352_v28  ;;  %v1656_v17 = vpop.f32.mrb[42].mxu1  ;;  %v1697_v27 = vpop.f32.mrb[46].mxu0  ;;  %v3455_v51 = vmul.f32 -1.442695, %v1654_v5 }
 0xd44   :  { %4159 = vpow2.f32 %v3454_v13  ;;  %v1657_v58 = vpop.f32.mrb[43].mxu1  ;;  %v1698_v61 = vpop.f32.mrb[47].mxu0 }
 0xd45   :  { %4161 = vpow2.f32 %v3455_v51 }
 0xd4e   :  { %v4160_v62 = vpop.eup %4159 }
 0xd4f   :  { %v1703_v57 = vadd.f32 1.0, %v4160_v62  ;;  %v4162_v59 = vpop.eup %4161 }
 0xd50   :  { %v1709_v54 = vadd.f32 1.0, %v4162_v59 }
 0xd51   :  { %4163 = vrcp.f32 %v1703_v57  ;;  %v6531_v57 = vld [vmem:[#allocation51_spill] sm:$0xff] }
 0xd52   :  { %4165 = vrcp.f32 %v1709_v54 }
 0xd5b   :  { %v4164_v21 = vpop.eup %4163 }
 0xd5c   :  { %v1712_v9 = vmul.f32 %v4164_v21, %v1696_v33  ;;  %v4166_v3 = vpop.eup %4165 }
 0xd5d   :  { %v1715_v52 = vsub.f32 1.0, %v4166_v3  ;;  %v1717_v27 = vmul.f32 %v4166_v3, %v5288_v56  ;;  %v6529_v56 = vld [vmem:[#allocation57_spill] sm:$0xff] }
 0xd5e   :  { %v1713_v25 = vadd.f32 %v1712_v9, %v1694_v7  ;;  %v6534_v9 = vld [vmem:[#allocation55_spill] sm:$0xff] }
 0xd60   :  { %4167 = vtanh.f32 %v1713_v25 }
 0xd6a   :  { %v4168_v28 = vpop.eup %4167 }
 0xd6b   :  { %v1716_v17 = vmul.f32 %v4168_v28, %v1715_v52  ;;  %v6530_v52 = vld [vmem:[#allocation33_spill] sm:$0xff] }
 0xd6d   :  { %v5399_v58 = vadd.f32 %v1717_v27, %v1716_v17 }
 0xd6f   :  { %v1719_v61 = vpack.c.bf16 %v5399_v58, %v5399_v58 }
 0xd71   :  { %3842 = vmatmul.mubr.bf16.vlgmr.msra.gmra.mrb[44].mxu1 %v1719_v61  ;;  %1826 = vmatmul.mubr.bf16.vlgmr.msra.gmra.mrb[48].mxu0 %v1719_v61 }
 0xd72   :  { %1835 = vmatpush1.bf16.msra.mxu1 %v5040_v23  ;;  %1866 = vmatprep.mubr.bf16.mxu1 %v6480_v1  ;;  %v6525_v23 = vld [vmem:[#allocation52_spill] sm:$0xff] }
 0xd73   :  { %1836 = vmatprep.subr.bf16.mxu1 %v5044_v19  ;;  %1876 = vmatpush1.bf16.msra.mxu0 %v5136_v34  ;;  %v6526_v19 = vld [vmem:[#allocation53_spill] sm:$0xff] }
 0xd74   :  { %1877 = vmatprep.subr.bf16.mxu0 %v5140_v36  ;;  %1907 = vmatprep.mubr.bf16.mxu0 %v6480_v1 }
 0xd76   :  { %1837 = vmatpush1.bf16.msra.mxu1 %v5052_v24  ;;  %v6527_v24 = vld [vmem:[#allocation54_spill] sm:$0xff] }
 0xd77   :  { %1838 = vmatprep.subr.bf16.mxu1 %v5056_v20  ;;  %1878 = vmatpush1.bf16.msra.mxu0 %v5148_v38  ;;  %v6528_v20 = vld [vmem:[#allocation56_spill] sm:$0xff] }
 0xd78   :  { %1879 = vmatprep.subr.bf16.mxu0 %v5152_v40 }
 0xd7a   :  { %1839 = vmatpush1.bf16.msra.mxu1 %v5064_v4 }
 0xd7b   :  { %1840 = vmatprep.subr.bf16.mxu1 %v5068_v22  ;;  %1880 = vmatpush1.bf16.msra.mxu0 %v5162_v42 }
 0xd7c   :  { %1881 = vmatprep.subr.bf16.mxu0 %v5166_v44 }
 0xd7e   :  { %1841 = vmatpush1.bf16.msra.mxu1 %v5076_v6 }
 0xd7f   :  { %1842 = vmatprep.subr.bf16.mxu1 %v5080_v8  ;;  %1882 = vmatpush1.bf16.msra.mxu0 %v5174_v46 }
 0xd80   :  { %1883 = vmatprep.subr.bf16.mxu0 %v5178_v31 }
 0xd82   :  { %1843 = vmatpush1.bf16.msra.mxu1 %v5088_v10 }
 0xd83   :  { %1844 = vmatprep.subr.bf16.mxu1 %v5092_v12  ;;  %1884 = vmatpush1.bf16.msra.mxu0 %v5186_v49 }
 0xd84   :  { %1885 = vmatprep.subr.bf16.mxu0 %v5190_v50 }
 0xd86   :  { %1845 = vmatpush1.bf16.msra.mxu1 %v5100_v14 }
 0xd87   :  { %1846 = vmatprep.subr.bf16.mxu1 %v5104_v60  ;;  %1886 = vmatpush1.bf16.msra.mxu0 %v5198_v53 }
 0xd88   :  { %1887 = vmatprep.subr.bf16.mxu0 %v5202_v55 }
 0xd8a   :  { %1847 = vmatpush1.bf16.msra.mxu1 %v5112_v2 }
 0xd8b   :  { %1848 = vmatprep.subr.bf16.mxu1 %v5116_v63  ;;  %1888 = vmatpush1.bf16.msra.mxu0 %v5210_v16 }
 0xd8c   :  { %1889 = vmatprep.subr.bf16.mxu0 %v5217_v0 }
 0xd8e   :  { %1849 = vmatpush1.bf16.msra.mxu1 %v5124_v30 }
 0xd8f   :  { %1916 = vmatprep.subr.bf16.mxu1 %v5128_v29  ;;  %1890 = vmatpush1.bf16.msra.mxu0 %v5225_v15 }
 0xd90   :  { %3845 = vmatprep.subr.bf16.mxu0 %v6479_v26 }
 0xd91   :  { %1867 = vmatmul.mubr.bf16.vlgmr.msra.gmra.mrb[48].mxu1 %v1719_v61 }
 0xd92   :  { %1917 = vmatpush1.bf16.msra.mxu1 %v5138_v35  ;;  %1948 = vmatprep.mubr.bf16.mxu1 %v6480_v1 }
 0xd93   :  { %1918 = vmatprep.subr.bf16.mxu1 %v5142_v37 }
 0xd96   :  { %1919 = vmatpush1.bf16.msra.mxu1 %v5150_v39 }
 0xd97   :  { %1920 = vmatprep.subr.bf16.mxu1 %v5154_v41 }
 0xd9a   :  { %1921 = vmatpush1.bf16.msra.mxu1 %v5164_v43 }
 0xd9b   :  { %1922 = vmatprep.subr.bf16.mxu1 %v5168_v45 }
 0xd9e   :  { %1923 = vmatpush1.bf16.msra.mxu1 %v5176_v47 }
 0xd9f   :  { %1924 = vmatprep.subr.bf16.mxu1 %v5180_v48 }
 0xda2   :  { %1925 = vmatpush1.bf16.msra.mxu1 %v5188_v32 }
 0xda3   :  { %1926 = vmatprep.subr.bf16.mxu1 %v6489_v18 }
 0xda6   :  { %1927 = vmatpush1.bf16.msra.mxu1 %v6525_v23 }
 0xda7   :  { %1928 = vmatprep.subr.bf16.mxu1 %v6526_v19 }
 0xdaa   :  { %1929 = vmatpush1.bf16.msra.mxu1 %v6527_v24 }
 0xdab   :  { %1930 = vmatprep.subr.bf16.mxu1 %v6528_v20 }
 0xdae   :  { %1931 = vmatpush1.bf16.msra.mxu1 %v6529_v56 }
 0xdaf   :  { %2050 = vmatprep.subr.bf16.mxu1 %v6530_v52 }
 0xe44   :  { %v1754_v21 = vpop.f32.mrb[44].mxu1 }
 0xe45   :  { %v5455_v5 = vadd.f32 %v6531_v57, %v1754_v21  ;;  %v3843_v13 = vpop.f32.mrb[45].mxu1 }
 0xe46   :  { %v1757_v51 = vpop.f32.mrb[46].mxu1 }
 0xe47   :  { %6532 = vst [vmem:[#allocation52_spill] sm:$0xff] %v5455_v5  ;;  %1760 = vmax.xlane.f32.xlu1 %v5455_v5  ;;  %v3844_v59 = vpop.f32.mrb[47].mxu1 }
 0xe64   :  { %v1868_v54 = vpop.f32.mrb[48].mxu1 }
 0xe65   :  { %v5458_v33 = vpop.f32.mrb[49].mxu1 }
 0xe66   :  { %v1872_v7 = vpop.f32.mrb[50].mxu1 }
 0xe67   :  { %v1873_v11 = vpop.f32.mrb[51].mxu1 }
 0xe68   :  { %v6535_v11 = vmov 1.0|1.0  }
 0xed4   :  { %v5460_v62 = vpop.xlane.xlu1 %1760 }
 0xed5   :  { %6533 = vst [vmem:[#allocation53_spill] sm:$0xff] %v5460_v62  ;;  %vm1773_vm7 = vcmp.eq.f32.partialorder %v5455_v5, %v5460_v62  ;;  %v6555_v5 = vld [vmem:[#allocation47_spill] sm:$0xff]  ;;  %v6558_v62 = vld [vmem:[#allocation49_spill] sm:$0xff] }
 0xed6   :  { %v1774_v25 = vsel %vm1773_vm7, %v6534_v9, 128 }
 0xed7   :  { %v1776_v3 = vshra.s32 %v1774_v25, 16  ;;  %v1775_v17 = vand.u32 65535, %v1774_v25  ;;  %v6537_v25 = vld [vmem:[#allocation35_spill] sm:$0xff] }
 0xed9   :  { %v1778_v28 = vcvt.s32.f32 %v1776_v3  ;;  %v1777_v61 = vcvt.s32.f32 %v1775_v17  ;;  %v6536_v3 = vld [vmem:[#allocation58_spill] sm:$0xff]  ;;  %v6539_v17 = vld [vmem:[#allocation59_spill] sm:$0xff] }
 0xedb   :  { %1779 = vmin.xlane.f32.xlu0 %v1778_v28 }
 0xf68   :  { %v1780_v27 = vpop.xlane.xlu0 %1779 }
 0xf69   :  { %vm1781_vm8 = vcmp.eq.f32.partialorder %v1778_v28, %v1780_v27  ;;  %v1786_v21 = vcvt.f32.s32 %v1780_v27  ;;  %v6538_v28 = vld [vmem:[#allocation36_spill] sm:$0xff]  ;;  %v6540_v27 = vld [vmem:[#allocation37_spill] sm:$0xff] }
 0xf6a   :  { %v1782_v52 = vsel %vm1781_vm8, %v1777_v61, inf  ;;  %v6541_v61 = vld [vmem:[#allocation38_spill] sm:$0xff] }
 0xf6b   :  { %1783 = vmin.xlane.f32.xlu1 %v1782_v52  ;;  %v1787_v51 = vshll.u32 %v1786_v21, 16  ;;  %v6542_v52 = vld [vmem:[#allocation60_spill] sm:$0xff]  ;;  %v6543_v21 = vld [vmem:[#allocation39_spill] sm:$0xff] }
 0xff8   :  { %v1784_v13 = vpop.xlane.xlu1 %1783 }
 0xff9   :  { %v1785_v59 = vcvt.f32.s32 %v1784_v13  ;;  %v6544_v13 = vld [vmem:[#allocation40_spill] sm:$0xff] }
 0xffb   :  { %v1788_v7 = vadd.s32 %v1787_v51, %v1785_v59  ;;  %v6545_v51 = vld [vmem:[#allocation61_spill] sm:$0xff] }
 0xffc   :  { %v6546_v59 = vld [vmem:[#allocation41_spill] sm:$0xff] }
 0xffd   :  { %vm1789_vm9 = vcmp.eq.s32.totalorder %v6534_v9, %v1788_v7  ;;  %v6547_v7 = vld [vmem:[#allocation42_spill] sm:$0xff] }
 0xffe   :  { %vm3457_vm10 = vmpackc.low %vm1789_vm9, %vm1789_vm9 }
 0xfff   :  { %3458 = vmatmul.mubr.msk.bf16.vlgmr.msra.gmra.mrb[48].mxu0 %vm3457_vm10, %v6535_v11  ;;  %3460 = vmatmul.mubr.msk.bf16.vlgmr.msra.gmra.mrb[52].mxu1 %vm3457_vm10, %v6535_v11 }
0x1000   :  { %3846 = vmatpush3.bf16.msra.mxu0 %v6536_v3  ;;  %2051 = vmatpush1.bf16.msra.mxu1 %v6537_v25  ;;  %v6548_v25 = vld [vmem:[#allocation62_spill] sm:$0xff] }
0x1001   :  { %3847 = vmatprep.subr.bf16.mxu0 %v6479_v26  ;;  %2052 = vmatprep.subr.bf16.mxu1 %v6538_v28  ;;  %v6549_v28 = vld [vmem:[#allocation43_spill] sm:$0xff] }
0x1002   :  { %3861 = vmatprep.mubr.msk.bf16.mxu0 %vm4518_vm0, %v6479_v26  ;;  %2082 = vmatprep.mubr.bf16.mxu1 %v6480_v1 }
0x1004   :  { %3848 = vmatpush3.bf16.msra.mxu0 %v6539_v17  ;;  %2053 = vmatpush1.bf16.msra.mxu1 %v6540_v27  ;;  %v6550_v27 = vld [vmem:[#allocation44_spill] sm:$0xff] }
0x1005   :  { %3849 = vmatprep.subr.bf16.mxu0 %v6479_v26  ;;  %2054 = vmatprep.subr.bf16.mxu1 %v6541_v61  ;;  %v6551_v61 = vld [vmem:[#allocation63_spill] sm:$0xff] }
0x1008   :  { %3850 = vmatpush3.bf16.msra.mxu0 %v6542_v52  ;;  %2055 = vmatpush1.bf16.msra.mxu1 %v6543_v21  ;;  %v6552_v21 = vld [vmem:[#allocation45_spill] sm:$0xff] }
0x1009   :  { %3851 = vmatprep.subr.bf16.mxu0 %v6479_v26  ;;  %2056 = vmatprep.subr.bf16.mxu1 %v6544_v13  ;;  %v6553_v13 = vld [vmem:[#allocation46_spill] sm:$0xff] }
0x100c   :  { %3852 = vmatpush3.bf16.msra.mxu0 %v6545_v51  ;;  %2057 = vmatpush1.bf16.msra.mxu1 %v6546_v59  ;;  %v6554_v59 = vld [vmem:[#allocation64_spill] sm:$0xff] }
0x100d   :  { %3853 = vmatprep.subr.bf16.mxu0 %v6479_v26  ;;  %2058 = vmatprep.subr.bf16.mxu1 %v6547_v7  ;;  %v6556_v7 = vld [vmem:[#allocation48_spill] sm:$0xff] }
0x1010   :  { %3854 = vmatpush3.bf16.msra.mxu0 %v6548_v25  ;;  %2059 = vmatpush1.bf16.msra.mxu1 %v6549_v28  ;;  %v6557_v28 = vld [vmem:[#allocation65_spill] sm:$0xff] }
0x1011   :  { %3855 = vmatprep.subr.bf16.mxu0 %v6479_v26  ;;  %2060 = vmatprep.subr.bf16.mxu1 %v6550_v27  ;;  %v6559_v27 = vld [vmem:[#allocation34_spill] sm:$0xff] }
0x1014   :  { %3856 = vmatpush3.bf16.msra.mxu0 %v6551_v61  ;;  %2061 = vmatpush1.bf16.msra.mxu1 %v6552_v21  ;;  %v6560_v61 = vld [vmem:[#allocation50_spill] sm:$0xff] }
0x1015   :  { %3857 = vmatprep.subr.bf16.mxu0 %v6479_v26  ;;  %2062 = vmatprep.subr.bf16.mxu1 %v6553_v13 }
0x1018   :  { %3858 = vmatpush3.bf16.msra.mxu0 %v6554_v59  ;;  %2063 = vmatpush1.bf16.msra.mxu1 %v6555_v5 }
0x1019   :  { %3859 = vmatprep.subr.bf16.mxu0 %v6479_v26  ;;  %2064 = vmatprep.subr.bf16.mxu1 %v6556_v7 }
0x101c   :  { %3860 = vmatpush3.bf16.msra.mxu0 %v6557_v28  ;;  %2065 = vmatpush1.bf16.msra.mxu1 %v6558_v62 }
0x101d   :  { %2091 = vmatprep.subr.bf16.mxu0 %v6559_v27  ;;  %2132 = vmatprep.subr.bf16.mxu1 %v6560_v61 }
0x10d2   :  { %v1909_v21 = vpop.f32.mrb[48].mxu0  ;;  %v1950_v25 = vpop.f32.mrb[52].mxu1 }
0x10d3   :  { %v3461_v51 = vmul.f32 -1.442695, %v1909_v21  ;;  %v1951_v13 = vadd.f32 %v1950_v25, %v1868_v54  ;;  %v1911_v52 = vpop.f32.mrb[49].mxu0  ;;  %v1952_v59 = vpop.f32.mrb[53].mxu1 }
0x10d4   :  { %v1953_v5 = vadd.f32 %v1952_v59, %v5458_v33  ;;  %v1913_v17 = vpop.f32.mrb[50].mxu0  ;;  %v1954_v3 = vpop.f32.mrb[54].mxu1  ;;  %v3462_v28 = vmul.f32 -1.442695, %v1911_v52  ;;  %v5626_v52 = vld [vmem:[#allocation3 + $0xa8] sm:$0xff]  ;;  %v6577_v59 = vld [vmem:[#allocation63_spill] sm:$0xff] }
0x10d5   :  { %4169 = vpow2.f32 %v3461_v51  ;;  %v1914_v7 = vpop.f32.mrb[51].mxu0  ;;  %v1955_v11 = vpop.f32.mrb[55].mxu1  ;;  %6576 = vst [vmem:[#allocation38_spill] sm:$0xff] %v5626_v52 }
0x10d6   :  { %4171 = vpow2.f32 %v3462_v28  ;;  %v5630_v28 = vld [vmem:[#allocation3 + $0xa0] sm:$0xff] }
0x10d7   :  { %6578 = vst [vmem:[#allocation39_spill] sm:$0xff] %v5630_v28  ;;  %v5638_v7 = vld [vmem:[#allocation3 + $0xc0] sm:$0xff] }
0x10d8   :  { %6581 = vst [vmem:[#allocation41_spill] sm:$0xff] %v5638_v7 }
0x10df   :  { %v4170_v62 = vpop.eup %4169 }
0x10e0   :  { %v1960_v9 = vadd.f32 1.0, %v4170_v62  ;;  %v4172_v27 = vpop.eup %4171  ;;  %v5642_v62 = vld [vmem:[#allocation3 + $0xe8] sm:$0xff] }
0x10e1   :  { %v1966_v61 = vadd.f32 1.0, %v4172_v27  ;;  %6582 = vst [vmem:[#allocation42_spill] sm:$0xff] %v5642_v62  ;;  %v6583_v27 = vld [vmem:[#allocation65_spill] sm:$0xff] }
0x10e2   :  { %4173 = vrcp.f32 %v1960_v9  ;;  %v5509_v9 = vld [vmem:[#allocation3 + $0x10] sm:$0xff] }
0x10e3   :  { %4175 = vrcp.f32 %v1966_v61  ;;  %v5646_v61 = vld [vmem:[#allocation3 + $0xe0] sm:$0xff] }
0x10e4   :  { %6584 = vst [vmem:[#allocation43_spill] sm:$0xff] %v5646_v61 }
0x10ec   :  { %v4174_v57 = vpop.eup %4173 }
0x10ed   :  { %v1969_v21 = vmul.f32 %v4174_v57, %v1953_v5  ;;  %v4176_v25 = vpop.eup %4175  ;;  %v5513_v57 = vld [vmem:[#allocation3 + $0x38] sm:$0xff]  ;;  %v6580_v5 = vld [vmem:[#allocation64_spill] sm:$0xff] }
0x10ee   :  { %v1972_v56 = vsub.f32 1.0, %v4176_v25  ;;  %v1974_v3 = vmul.f32 %v4176_v25, %v5399_v58  ;;  %v5519_v58 = vld [vmem:[#allocation3 + $0x30] sm:$0xff] }
0x10ef   :  { %v1970_v54 = vadd.f32 %v1969_v21, %v1951_v13  ;;  %v5634_v13 = vld [vmem:[#allocation3 + $0xc8] sm:$0xff]  ;;  %v5649_v21 = vld [vmem:[#allocation3 + $0x18] sm:$0xff] }
0x10f0   :  { %6579 = vst [vmem:[#allocation40_spill] sm:$0xff] %v5634_v13  ;;  %6585 = vst [vmem:[#allocation44_spill] sm:$0xff] %v5649_v21 }
0x10f1   :  { %4177 = vtanh.f32 %v1970_v54  ;;  %v5652_v54 = vld [vmem:[#allocation2 + $0x8] sm:$0xff] }
0x10f2   :  { %6586 = vst [vmem:[#allocation45_spill] sm:$0xff] %v5652_v54 }
0x10fb   :  { %v4178_v33 = vpop.eup %4177 }
0x10fc   :  { %v1973_v17 = vmul.f32 %v4178_v33, %v1972_v56  ;;  %v5522_v56 = vld [vmem:[#allocation3 + $0x58] sm:$0xff] }
0x10fe   :  { %v5505_v51 = vadd.f32 %v1974_v3, %v1973_v17 }
0x1100   :  { %v1976_v11 = vpack.c.bf16 %v5505_v51, %v5505_v51 }
0x1102   :  { %3862 = vmatmul.mubr.bf16.vlgmr.msra.gmra.mrb[52].mxu0 %v1976_v11  ;;  %2083 = vmatmul.mubr.bf16.vlgmr.msra.gmra.mrb[56].mxu1 %v1976_v11 }
0x1103   :  { %2092 = vmatpush1.bf16.msra.mxu0 %v5509_v9  ;;  %2123 = vmatprep.mubr.bf16.mxu0 %v6480_v1 }
0x1104   :  { %2093 = vmatprep.subr.bf16.mxu0 %v5513_v57  ;;  %2133 = vmatpush1.bf16.msra.mxu1 %v5136_v34  ;;  %v6566_v34 = vld [vmem:[#allocation55_spill] sm:$0xff] }
0x1105   :  { %2134 = vmatprep.subr.bf16.mxu1 %v5140_v36  ;;  %2164 = vmatprep.mubr.bf16.mxu1 %v6480_v1 }
0x1107   :  { %2094 = vmatpush1.bf16.msra.mxu0 %v5519_v58 }
0x1108   :  { %2095 = vmatprep.subr.bf16.mxu0 %v5522_v56  ;;  %2135 = vmatpush1.bf16.msra.mxu1 %v5148_v38 }
0x1109   :  { %2136 = vmatprep.subr.bf16.mxu1 %v5152_v40 }
0x110b   :  { %2096 = vmatpush1.bf16.msra.mxu0 %v5064_v4  ;;  %v5567_v4 = vld [vmem:[#allocation3 + $0x8] sm:$0xff] }
0x110c   :  { %2097 = vmatprep.subr.bf16.mxu0 %v5068_v22  ;;  %2137 = vmatpush1.bf16.msra.mxu1 %v5162_v42  ;;  %6562 = vst [vmem:[#allocation54_spill] sm:$0xff] %v5567_v4 }
0x110d   :  { %2138 = vmatprep.subr.bf16.mxu1 %v5166_v44 }
0x110f   :  { %2098 = vmatpush1.bf16.msra.mxu0 %v5076_v6  ;;  %v6563_v6 = vld [vmem:[#allocation51_spill] sm:$0xff] }
0x1110   :  { %2099 = vmatprep.subr.bf16.mxu0 %v5080_v8  ;;  %2139 = vmatpush1.bf16.msra.mxu1 %v5174_v46 }
0x1111   :  { %2140 = vmatprep.subr.bf16.mxu1 %v5178_v31  ;;  %v6568_v31 = vld [vmem:[#allocation58_spill] sm:$0xff] }
0x1113   :  { %2100 = vmatpush1.bf16.msra.mxu0 %v5088_v10 }
0x1114   :  { %2101 = vmatprep.subr.bf16.mxu0 %v5092_v12  ;;  %2141 = vmatpush1.bf16.msra.mxu1 %v5186_v49  ;;  %v5591_v49 = vld [vmem:[#allocation3 + $0x28] sm:$0xff] }
0x1115   :  { %2142 = vmatprep.subr.bf16.mxu1 %v5190_v50  ;;  %v5598_v50 = vld [vmem:[#allocation3 + $0x20] sm:$0xff] }
0x1117   :  { %2102 = vmatpush1.bf16.msra.mxu0 %v5100_v14 }
0x1118   :  { %2103 = vmatprep.subr.bf16.mxu0 %v5104_v60  ;;  %2143 = vmatpush1.bf16.msra.mxu1 %v5198_v53  ;;  %v5602_v53 = vld [vmem:[#allocation3 + $0x48] sm:$0xff] }
0x1119   :  { %2144 = vmatprep.subr.bf16.mxu1 %v5202_v55  ;;  %v6570_v55 = vld [vmem:[#allocation60_spill] sm:$0xff] }
0x111b   :  { %2104 = vmatpush1.bf16.msra.mxu0 %v5112_v2 }
0x111c   :  { %2105 = vmatprep.subr.bf16.mxu0 %v5116_v63  ;;  %2145 = vmatpush1.bf16.msra.mxu1 %v5210_v16  ;;  %v5610_v16 = vld [vmem:[#allocation3 + $0x68] sm:$0xff] }
0x111d   :  { %2146 = vmatprep.subr.bf16.mxu1 %v5217_v0  ;;  %v6561_v0 = vld [vmem:[#allocation57_spill] sm:$0xff] }
0x111f   :  { %2106 = vmatpush1.bf16.msra.mxu0 %v5124_v30 }
0x1120   :  { %2173 = vmatprep.subr.bf16.mxu0 %v5128_v29  ;;  %2147 = vmatpush1.bf16.msra.mxu1 %v5225_v15  ;;  %v5606_v15 = vld [vmem:[#allocation3 + $0x40] sm:$0xff] }
0x1121   :  { %3865 = vmatprep.subr.bf16.mxu1 %v6479_v26 }
0x1122   :  { %2124 = vmatmul.mubr.bf16.vlgmr.msra.gmra.mrb[56].mxu0 %v1976_v11 }
0x1123   :  { %2174 = vmatpush1.bf16.msra.mxu0 %v5138_v35  ;;  %2205 = vmatprep.mubr.bf16.mxu0 %v6480_v1 }
0x1124   :  { %2175 = vmatprep.subr.bf16.mxu0 %v5142_v37 }
0x1127   :  { %2176 = vmatpush1.bf16.msra.mxu0 %v5150_v39 }
0x1128   :  { %2177 = vmatprep.subr.bf16.mxu0 %v5154_v41 }
0x112b   :  { %2178 = vmatpush1.bf16.msra.mxu0 %v5164_v43 }
0x112c   :  { %2179 = vmatprep.subr.bf16.mxu0 %v5168_v45 }
0x112f   :  { %2180 = vmatpush1.bf16.msra.mxu0 %v5176_v47  ;;  %v6567_v47 = vmov 1.0|1.0  }
0x1130   :  { %2181 = vmatprep.subr.bf16.mxu0 %v5180_v48  ;;  %v5587_v48 = vld [vmem:[#allocation3] sm:$0xff] }
0x1133   :  { %2182 = vmatpush1.bf16.msra.mxu0 %v5188_v32  ;;  %v6569_v32 = vld [vmem:[#allocation59_spill] sm:$0xff] }
0x1134   :  { %2183 = vmatprep.subr.bf16.mxu0 %v6489_v18  ;;  %v6571_v18 = vld [vmem:[#allocation61_spill] sm:$0xff] }
0x1137   :  { %2184 = vmatpush1.bf16.msra.mxu0 %v6525_v23  ;;  %v5614_v23 = vld [vmem:[#allocation3 + $0x60] sm:$0xff] }
0x1138   :  { %2185 = vmatprep.subr.bf16.mxu0 %v6526_v19  ;;  %6572 = vst [vmem:[#allocation35_spill] sm:$0xff] %v5614_v23  ;;  %v5618_v19 = vld [vmem:[#allocation3 + $0x88] sm:$0xff] }
0x1139   :  { %6573 = vst [vmem:[#allocation36_spill] sm:$0xff] %v5618_v19 }
0x113b   :  { %2186 = vmatpush1.bf16.msra.mxu0 %v6527_v24  ;;  %v6574_v24 = vld [vmem:[#allocation62_spill] sm:$0xff] }
0x113c   :  { %2187 = vmatprep.subr.bf16.mxu0 %v6528_v20  ;;  %v5622_v20 = vld [vmem:[#allocation3 + $0x80] sm:$0xff] }
0x113d   :  { %6575 = vst [vmem:[#allocation37_spill] sm:$0xff] %v5622_v20 }
0x113f   :  { %2188 = vmatpush1.bf16.msra.mxu0 %v6561_v0 }
0x1140   :  { %2307 = vmatprep.subr.bf16.mxu0 %v5567_v4 }
0x11d5   :  { %v2011_v22 = vpop.f32.mrb[52].mxu0 }
0x11d6   :  { %v5571_v8 = vadd.f32 %v6563_v6, %v2011_v22  ;;  %v3863_v10 = vpop.f32.mrb[53].mxu0 }
0x11d7   :  { %v2014_v12 = vpop.f32.mrb[54].mxu0 }
0x11d8   :  { %6564 = vst [vmem:[#allocation56_spill] sm:$0xff] %v5571_v8  ;;  %2017 = vmax.xlane.f32.xlu0 %v5571_v8  ;;  %v3864_v14 = vpop.f32.mrb[55].mxu0 }
0x11f5   :  { %v5574_v60 = vpop.f32.mrb[56].mxu0 }
0x11f6   :  { %v5576_v2 = vpop.f32.mrb[57].mxu0 }
0x11f7   :  { %v2129_v63 = vpop.f32.mrb[58].mxu0 }
0x11f8   :  { %v2130_v30 = vpop.f32.mrb[59].mxu0 }
0x1265   :  { %v5578_v29 = vpop.xlane.xlu0 %2017 }
0x1266   :  { %6565 = vst [vmem:[#allocation33_spill] sm:$0xff] %v5578_v29  ;;  %vm2030_vm11 = vcmp.eq.f32.partialorder %v5571_v8, %v5578_v29  ;;  %v5777_v8 = vld [vmem:[#allocation2 + $0x98] sm:$0xff]  ;;  %v5780_v29 = vld [vmem:[#allocation2 + $0x90] sm:$0xff] }
0x1267   :  { %v2031_v35 = vsel %vm2030_vm11, %v6566_v34, 128  ;;  %6599 = vst [vmem:[#allocation61_spill] sm:$0xff] %v5777_v8  ;;  %6600 = vst [vmem:[#allocation62_spill] sm:$0xff] %v5780_v29 }
0x1268   :  { %v2033_v36 = vshra.s32 %v2031_v35, 16  ;;  %v2032_v38 = vand.u32 65535, %v2031_v35 }
0x126a   :  { %v2035_v37 = vcvt.s32.f32 %v2033_v36  ;;  %v2034_v40 = vcvt.s32.f32 %v2032_v38 }
0x126c   :  { %2036 = vmin.xlane.f32.xlu1 %v2035_v37 }
0x12f9   :  { %v2037_v39 = vpop.xlane.xlu1 %2036 }
0x12fa   :  { %vm2038_vm12 = vcmp.eq.f32.partialorder %v2035_v37, %v2037_v39  ;;  %v2043_v42 = vcvt.f32.s32 %v2037_v39 }
0x12fb   :  { %v2039_v41 = vsel %vm2038_vm12, %v2034_v40, inf }
0x12fc   :  { %2040 = vmin.xlane.f32.xlu0 %v2039_v41  ;;  %v2044_v44 = vshll.u32 %v2043_v42, 16 }
0x1389   :  { %v2041_v43 = vpop.xlane.xlu0 %2040 }
0x138a   :  { %v2042_v45 = vcvt.f32.s32 %v2041_v43 }
0x138c   :  { %v2045_v46 = vadd.s32 %v2044_v44, %v2042_v45 }
0x138e   :  { %vm2046_vm13 = vcmp.eq.s32.totalorder %v6566_v34, %v2045_v46 }
0x138f   :  { %vm3464_vm14 = vmpackc.low %vm2046_vm13, %vm2046_vm13 }
0x1390   :  { %3465 = vmatmul.mubr.msk.bf16.vlgmr.msra.gmra.mrb[56].mxu1 %vm3464_vm14, %v6567_v47  ;;  %3467 = vmatmul.mubr.msk.bf16.vlgmr.msra.gmra.mrb[60].mxu0 %vm3464_vm14, %v6567_v47 }
0x1391   :  { %3866 = vmatpush3.bf16.msra.mxu1 %v6568_v31  ;;  %2308 = vmatpush1.bf16.msra.mxu0 %v5587_v48  ;;  %v5669_v31 = vld [vmem:[#allocation2] sm:$0xff] }
0x1392   :  { %3867 = vmatprep.subr.bf16.mxu1 %v6479_v26  ;;  %2309 = vmatprep.subr.bf16.mxu0 %v5591_v49 }
0x1393   :  { %3881 = vmatprep.mubr.msk.bf16.mxu1 %vm4518_vm0, %v6479_v26  ;;  %2339 = vmatprep.mubr.bf16.mxu0 %v6480_v1 }
0x1395   :  { %3868 = vmatpush3.bf16.msra.mxu1 %v6569_v32  ;;  %2310 = vmatpush1.bf16.msra.mxu0 %v5598_v50  ;;  %v5678_v32 = vld [vmem:[#allocation2 + $0x20] sm:$0xff] }
0x1396   :  { %3869 = vmatprep.subr.bf16.mxu1 %v6479_v26  ;;  %2311 = vmatprep.subr.bf16.mxu0 %v5602_v53 }
0x1399   :  { %3870 = vmatpush3.bf16.msra.mxu1 %v6570_v55  ;;  %2312 = vmatpush1.bf16.msra.mxu0 %v5606_v15  ;;  %v5681_v55 = vld [vmem:[#allocation2 + $0x48] sm:$0xff] }
0x139a   :  { %3871 = vmatprep.subr.bf16.mxu1 %v6479_v26  ;;  %2313 = vmatprep.subr.bf16.mxu0 %v5610_v16 }
0x139d   :  { %3872 = vmatpush3.bf16.msra.mxu1 %v6571_v18  ;;  %2314 = vmatpush1.bf16.msra.mxu0 %v5614_v23  ;;  %v5684_v18 = vld [vmem:[#allocation3 + $0x50] sm:$0xff] }
0x139e   :  { %3873 = vmatprep.subr.bf16.mxu1 %v6479_v26  ;;  %2315 = vmatprep.subr.bf16.mxu0 %v5618_v19 }
0x13a1   :  { %3874 = vmatpush3.bf16.msra.mxu1 %v6574_v24  ;;  %2316 = vmatpush1.bf16.msra.mxu0 %v5622_v20  ;;  %v5687_v24 = vld [vmem:[#allocation3 + $0x78] sm:$0xff] }
0x13a2   :  { %3875 = vmatprep.subr.bf16.mxu1 %v6479_v26  ;;  %2317 = vmatprep.subr.bf16.mxu0 %v5626_v52 }
0x13a5   :  { %3876 = vmatpush3.bf16.msra.mxu1 %v6577_v59  ;;  %2318 = vmatpush1.bf16.msra.mxu0 %v5630_v28  ;;  %v5690_v59 = vld [vmem:[#allocation2 + $0x40] sm:$0xff] }
0x13a6   :  { %3877 = vmatprep.subr.bf16.mxu1 %v6479_v26  ;;  %2319 = vmatprep.subr.bf16.mxu0 %v5634_v13 }
0x13a9   :  { %3878 = vmatpush3.bf16.msra.mxu1 %v6580_v5  ;;  %2320 = vmatpush1.bf16.msra.mxu0 %v5638_v7  ;;  %v5693_v5 = vld [vmem:[#allocation2 + $0x68] sm:$0xff] }
0x13aa   :  { %3879 = vmatprep.subr.bf16.mxu1 %v6479_v26  ;;  %2321 = vmatprep.subr.bf16.mxu0 %v5642_v62 }
0x13ad   :  { %3880 = vmatpush3.bf16.msra.mxu1 %v6583_v27  ;;  %2322 = vmatpush1.bf16.msra.mxu0 %v5646_v61  ;;  %v5696_v27 = vld [vmem:[#allocation3 + $0x70] sm:$0xff] }
0x13ae   :  { %2348 = vmatprep.subr.bf16.mxu1 %v5649_v21  ;;  %2389 = vmatprep.subr.bf16.mxu0 %v5652_v54 }
0x1463   :  { %v2166_v25 = vpop.f32.mrb[56].mxu1  ;;  %v2207_v33 = vpop.f32.mrb[60].mxu0 }
0x1464   :  { %v3468_v17 = vmul.f32 -1.442695, %v2166_v25  ;;  %v2208_v3 = vadd.f32 %v2207_v33, %v5574_v60  ;;  %v2168_v11 = vpop.f32.mrb[57].mxu1  ;;  %v2209_v0 = vpop.f32.mrb[61].mxu0  ;;  %v5699_v25 = vld [vmem:[#allocation3 + $0x98] sm:$0xff]  ;;  %v5702_v33 = vld [vmem:[#allocation2 + $0x60] sm:$0xff] }
0x1465   :  { %v2210_v22 = vadd.f32 %v2209_v0, %v5576_v2  ;;  %v2170_v10 = vpop.f32.mrb[58].mxu1  ;;  %v2211_v12 = vpop.f32.mrb[62].mxu0  ;;  %v3469_v30 = vmul.f32 -1.442695, %v2168_v11  ;;  %v5711_v11 = vld [vmem:[#allocation3 + $0xb8] sm:$0xff]  ;;  %v5714_v0 = vld [vmem:[#allocation2 + $0x80] sm:$0xff] }
0x1466   :  { %4179 = vpow2.f32 %v3468_v17  ;;  %v2171_v14 = vpop.f32.mrb[59].mxu1  ;;  %v2212_v63 = vpop.f32.mrb[63].mxu0  ;;  %v5705_v17 = vld [vmem:[#allocation2 + $0x88] sm:$0xff]  ;;  %v5720_v10 = vld [vmem:[#allocation3 + $0xb0] sm:$0xff]  ;;  %v5723_v12 = vld [vmem:[#allocation3 + $0xd8] sm:$0xff] }
0x1467   :  { %4181 = vpow2.f32 %v3469_v30  ;;  %v5726_v14 = vld [vmem:[#allocation2 + $0xa0] sm:$0xff]  ;;  %v5729_v63 = vld [vmem:[#allocation2 + $0xc8] sm:$0xff]  ;;  %v5732_v30 = vld [vmem:[#allocation3 + $0xd0] sm:$0xff] }
0x1470   :  { %v4180_v35 = vpop.eup %4179 }
0x1471   :  { %v2217_v36 = vadd.f32 1.0, %v4180_v35  ;;  %v4182_v37 = vpop.eup %4181  ;;  %v5735_v35 = vld [vmem:[#allocation3 + $0xf8] sm:$0xff] }
0x1472   :  { %v2223_v38 = vadd.f32 1.0, %v4182_v37  ;;  %v5741_v37 = vld [vmem:[#allocation2 + $0xe8] sm:$0xff] }
0x1473   :  { %4183 = vrcp.f32 %v2217_v36  ;;  %v5738_v36 = vld [vmem:[#allocation2 + $0xc0] sm:$0xff]  ;;  %6588 = vst [vmem:[#allocation47_spill] sm:$0xff] %v5741_v37 }
0x1474   :  { %4185 = vrcp.f32 %v2223_v38  ;;  %6587 = vst [vmem:[#allocation46_spill] sm:$0xff] %v5738_v36  ;;  %v5744_v38 = vld [vmem:[#allocation3 + $0xf0] sm:$0xff] }
0x1475   :  { %6589 = vst [vmem:[#allocation48_spill] sm:$0xff] %v5744_v38 }
0x147d   :  { %v4184_v39 = vpop.eup %4183 }
0x147e   :  { %v2226_v40 = vmul.f32 %v4184_v39, %v2210_v22  ;;  %v4186_v41 = vpop.eup %4185  ;;  %v5717_v22 = vld [vmem:[#allocation2 + $0xa8] sm:$0xff]  ;;  %v5747_v39 = vld [vmem:[#allocation2 + $0x18] sm:$0xff] }
0x147f   :  { %v2229_v42 = vsub.f32 1.0, %v4186_v41  ;;  %v2231_v44 = vmul.f32 %v4186_v41, %v5505_v51  ;;  %v5672_v51 = vld [vmem:[#allocation2 + $0x28] sm:$0xff]  ;;  %6590 = vst [vmem:[#allocation49_spill] sm:$0xff] %v5747_v39  ;;  %v5759_v41 = vld [vmem:[#allocation2 + $0x38] sm:$0xff] }
0x1480   :  { %v2227_v60 = vadd.f32 %v2226_v40, %v2208_v3  ;;  %v5708_v3 = vld [vmem:[#allocation3 + $0x90] sm:$0xff]  ;;  %v5750_v40 = vld [vmem:[#allocation2 + $0xe0] sm:$0xff]  ;;  %6593 = vst [vmem:[#allocation57_spill] sm:$0xff] %v5759_v41 }
0x1481   :  { %6591 = vst [vmem:[#allocation34_spill] sm:$0xff] %v5750_v40 }
0x1482   :  { %4187 = vtanh.f32 %v2227_v60  ;;  %v5755_v60 = vld [vmem:[#allocation2 + $0x10] sm:$0xff] }
0x1483   :  { %6592 = vst [vmem:[#allocation50_spill] sm:$0xff] %v5755_v60 }
0x148c   :  { %v4188_v2 = vpop.eup %4187 }
0x148d   :  { %v2230_v43 = vmul.f32 %v4188_v2, %v2229_v42  ;;  %v5762_v42 = vld [vmem:[#allocation2 + $0x30] sm:$0xff]  ;;  %v5765_v2 = vld [vmem:[#allocation2 + $0x58] sm:$0xff] }
0x148e   :  { %6594 = vst [vmem:[#allocation51_spill] sm:$0xff] %v5762_v42  ;;  %6595 = vst [vmem:[#allocation55_spill] sm:$0xff] %v5765_v2 }
0x148f   :  { %v5658_v45 = vadd.f32 %v2231_v44, %v2230_v43  ;;  %v5768_v43 = vld [vmem:[#allocation2 + $0x50] sm:$0xff]  ;;  %v5771_v44 = vld [vmem:[#allocation2 + $0x78] sm:$0xff] }
0x1490   :  { %6596 = vst [vmem:[#allocation58_spill] sm:$0xff] %v5768_v43  ;;  %6597 = vst [vmem:[#allocation59_spill] sm:$0xff] %v5771_v44 }
0x1491   :  { %v5662_v46 = vpack.c.bf16 %v5658_v45, %v5658_v45 }
0x1493   :  { %3882 = vmatmul.mubr.bf16.vlgmr.msra.gmra.mrb[60].mxu1 %v5662_v46  ;;  %2340 = vmatmul.mubr.bf16.vlgmr.msra.gmra.mrb[64].mxu0 %v5662_v46 }
0x1494   :  { %2349 = vmatpush1.bf16.msra.mxu1 %v5509_v9  ;;  %2380 = vmatprep.mubr.bf16.mxu1 %v6480_v1 }
0x1495   :  { %2350 = vmatprep.subr.bf16.mxu1 %v5513_v57  ;;  %2390 = vmatpush1.bf16.msra.mxu0 %v5669_v31 }
0x1496   :  { %2391 = vmatprep.subr.bf16.mxu0 %v5672_v51  ;;  %2421 = vmatprep.mubr.bf16.mxu0 %v6480_v1 }
0x1498   :  { %2351 = vmatpush1.bf16.msra.mxu1 %v5519_v58 }
0x1499   :  { %2352 = vmatprep.subr.bf16.mxu1 %v5522_v56  ;;  %2392 = vmatpush1.bf16.msra.mxu0 %v5678_v32 }
0x149a   :  { %2393 = vmatprep.subr.bf16.mxu0 %v5681_v55 }
0x149c   :  { %2353 = vmatpush1.bf16.msra.mxu1 %v5684_v18 }
0x149d   :  { %2354 = vmatprep.subr.bf16.mxu1 %v5687_v24  ;;  %2394 = vmatpush1.bf16.msra.mxu0 %v5690_v59 }
0x149e   :  { %2395 = vmatprep.subr.bf16.mxu0 %v5693_v5 }
0x14a0   :  { %2355 = vmatpush1.bf16.msra.mxu1 %v5696_v27 }
0x14a1   :  { %2356 = vmatprep.subr.bf16.mxu1 %v5699_v25  ;;  %2396 = vmatpush1.bf16.msra.mxu0 %v5702_v33 }
0x14a2   :  { %2397 = vmatprep.subr.bf16.mxu0 %v5705_v17 }
0x14a4   :  { %2357 = vmatpush1.bf16.msra.mxu1 %v5708_v3 }
0x14a5   :  { %2358 = vmatprep.subr.bf16.mxu1 %v5711_v11  ;;  %2398 = vmatpush1.bf16.msra.mxu0 %v5714_v0 }
0x14a6   :  { %2399 = vmatprep.subr.bf16.mxu0 %v5717_v22 }
0x14a8   :  { %2359 = vmatpush1.bf16.msra.mxu1 %v5720_v10 }
0x14a9   :  { %2360 = vmatprep.subr.bf16.mxu1 %v5723_v12  ;;  %2400 = vmatpush1.bf16.msra.mxu0 %v5726_v14 }
0x14aa   :  { %2401 = vmatprep.subr.bf16.mxu0 %v5729_v63 }
0x14ac   :  { %2361 = vmatpush1.bf16.msra.mxu1 %v5732_v30 }
0x14ad   :  { %2362 = vmatprep.subr.bf16.mxu1 %v5735_v35  ;;  %2402 = vmatpush1.bf16.msra.mxu0 %v5738_v36 }
0x14ae   :  { %2403 = vmatprep.subr.bf16.mxu0 %v5741_v37 }
0x14b0   :  { %2363 = vmatpush1.bf16.msra.mxu1 %v5744_v38 }
0x14b1   :  { %2430 = vmatprep.subr.bf16.mxu1 %v5747_v39  ;;  %2404 = vmatpush1.bf16.msra.mxu0 %v5750_v40 }
0x14b2   :  { %3885 = vmatprep.subr.bf16.mxu0 %v6479_v26 }
0x14b3   :  { %2381 = vmatmul.mubr.bf16.vlgmr.msra.gmra.mrb[64].mxu1 %v5662_v46  ;;  %v5774_v46 = vld [vmem:[#allocation2 + $0x70] sm:$0xff] }
0x14b4   :  { %2431 = vmatpush1.bf16.msra.mxu1 %v5755_v60  ;;  %2462 = vmatprep.mubr.bf16.mxu1 %v6480_v1  ;;  %6598 = vst [vmem:[#allocation60_spill] sm:$0xff] %v5774_v46 }
0x14b5   :  { %2432 = vmatprep.subr.bf16.mxu1 %v5759_v41 }
0x14b8   :  { %2433 = vmatpush1.bf16.msra.mxu1 %v5762_v42 }
0x14b9   :  { %2434 = vmatprep.subr.bf16.mxu1 %v5765_v2  ;;  %v5783_v2 = vld [vmem:[#allocation2 + $0xb8] sm:$0xff] }
0x14ba   :  { %6601 = vst [vmem:[#allocation63_spill] sm:$0xff] %v5783_v2 }
0x14bc   :  { %2435 = vmatpush1.bf16.msra.mxu1 %v5768_v43  ;;  %v5786_v43 = vld [vmem:[#allocation2 + $0xb0] sm:$0xff] }
0x14bd   :  { %2436 = vmatprep.subr.bf16.mxu1 %v5771_v44  ;;  %6602 = vst [vmem:[#allocation64_spill] sm:$0xff] %v5786_v43  ;;  %v5789_v44 = vld [vmem:[#allocation2 + $0xd8] sm:$0xff] }
0x14be   :  { %6603 = vst [vmem:[#allocation65_spill] sm:$0xff] %v5789_v44 }
0x14c0   :  { %2437 = vmatpush1.bf16.msra.mxu1 %v5774_v46  ;;  %v5792_v46 = vld [vmem:[#allocation2 + $0xd0] sm:$0xff] }
0x14c1   :  { %2438 = vmatprep.subr.bf16.mxu1 %v5777_v8  ;;  %6604 = vst [vmem:[#allocation68_spill] sm:$0xff] %v5792_v46  ;;  %v5795_v8 = vld [vmem:[#allocation2 + $0xf8] sm:$0xff] }
0x14c2   :  { %6605 = vst [vmem:[#allocation69_spill] sm:$0xff] %v5795_v8 }
0x14c4   :  { %2439 = vmatpush1.bf16.msra.mxu1 %v5780_v29  ;;  %v5798_v29 = vld [vmem:[#allocation2 + $0xf0] sm:$0xff] }
0x14c5   :  { %2440 = vmatprep.subr.bf16.mxu1 %v5783_v2  ;;  %6606 = vst [vmem:[#allocation70_spill] sm:$0xff] %v5798_v29 }
0x14c8   :  { %2441 = vmatpush1.bf16.msra.mxu1 %v5786_v43 }
0x14c9   :  { %2442 = vmatprep.subr.bf16.mxu1 %v5789_v44 }
0x14cc   :  { %2443 = vmatpush1.bf16.msra.mxu1 %v5792_v46 }
0x14cd   :  { %2444 = vmatprep.subr.bf16.mxu1 %v5795_v8 }
0x14d0   :  { %2445 = vmatpush1.bf16.msra.mxu1 %v5798_v29 }
0x14d1   :  { %2564 = vmatprep.subr.bf16.mxu1 %v5567_v4 }
0x1566   :  { %v2268_v2 = vpop.f32.mrb[60].mxu1 }
0x1567   :  { %v5803_v43 = vadd.f32 %v6563_v6, %v2268_v2  ;;  %v3883_v42 = vpop.f32.mrb[61].mxu1 }
0x1568   :  { %v2271_v44 = vpop.f32.mrb[62].mxu1 }
0x1569   :  { %6607 = vst [vmem:[#allocation71_spill] sm:$0xff] %v5803_v43  ;;  %2274 = vmax.xlane.f32.xlu1 %v5803_v43  ;;  %v3884_v41 = vpop.f32.mrb[63].mxu1 }
0x1586   :  { %v5806_v46 = vpop.f32.mrb[64].mxu1 }
0x1587   :  { %v5808_v60 = vpop.f32.mrb[65].mxu1 }
0x1588   :  { %v2386_v8 = vpop.f32.mrb[66].mxu1 }
0x1589   :  { %v2387_v40 = vpop.f32.mrb[67].mxu1 }
0x15f6   :  { %v5810_v39 = vpop.xlane.xlu1 %2274 }
0x15f7   :  { %6608 = vst [vmem:[#allocation72_spill] sm:$0xff] %v5810_v39  ;;  %vm2287_vm15 = vcmp.eq.f32.partialorder %v5803_v43, %v5810_v39 }
0x15f8   :  { %v2288_v4 = vsel %vm2287_vm15, %v6566_v34, 128 }
0x15f9   :  { %v2290_v6 = vshra.s32 %v2288_v4, 16  ;;  %v2289_v42 = vand.u32 65535, %v2288_v4  ;;  %v5827_v4 = vld [vmem:[#allocation4 + $0x8] sm:$0xff] }
0x15fb   :  { %v2292_v2 = vcvt.s32.f32 %v2290_v6  ;;  %v2291_v29 = vcvt.s32.f32 %v2289_v42  ;;  %v5818_v6 = vld [vmem:[#allocation4] sm:$0xff]  ;;  %v5863_v42 = vld [vmem:[#allocation4 + $0x38] sm:$0xff] }
0x15fc   :  { %6613 = vst [vmem:[#allocation77_spill] sm:$0xff] %v5863_v42 }
0x15fd   :  { %2293 = vmin.xlane.f32.xlu0 %v2292_v2 }
0x168a   :  { %v2294_v44 = vpop.xlane.xlu0 %2293 }
0x168b   :  { %vm2295_vm1 = vcmp.eq.f32.partialorder %v2292_v2, %v2294_v44  ;;  %v2300_v38 = vcvt.f32.s32 %v2294_v44  ;;  %v5857_v2 = vld [vmem:[#allocation4 + $0x30] sm:$0xff] }
0x168c   :  { %v2296_v41 = vsel %vm2295_vm1, %v2291_v29, inf  ;;  %v5833_v29 = vld [vmem:[#allocation4 + $0x10] sm:$0xff]  ;;  %6612 = vst [vmem:[#allocation76_spill] sm:$0xff] %v5857_v2 }
0x168d   :  { %2297 = vmin.xlane.f32.xlu1 %v2296_v41  ;;  %v2301_v8 = vshll.u32 %v2300_v38, 16  ;;  %v5851_v38 = vld [vmem:[#allocation4 + $0x28] sm:$0xff] }
0x168e   :  { %6611 = vst [vmem:[#allocation75_spill] sm:$0xff] %v5851_v38 }
0x171a   :  { %v2298_v37 = vpop.xlane.xlu1 %2297 }
0x171b   :  { %v2299_v40 = vcvt.f32.s32 %v2298_v37  ;;  %v5845_v37 = vld [vmem:[#allocation4 + $0x20] sm:$0xff] }
0x171c   :  { %6610 = vst [vmem:[#allocation74_spill] sm:$0xff] %v5845_v37 }
0x171d   :  { %v2302_v36 = vadd.s32 %v2301_v8, %v2299_v40 }
0x171f   :  { %vm2303_vm2 = vcmp.eq.s32.totalorder %v6566_v34, %v2302_v36  ;;  %v5839_v36 = vld [vmem:[#allocation4 + $0x18] sm:$0xff] }
0x1720   :  { %vm3471_vm3 = vmpackc.low %vm2303_vm2, %vm2303_vm2  ;;  %6609 = vst [vmem:[#allocation73_spill] sm:$0xff] %v5839_v36 }
0x1721   :  { %3472 = vmatmul.mubr.msk.bf16.vlgmr.msra.gmra.mrb[64].mxu0 %vm3471_vm3, %v6567_v47  ;;  %3474 = vmatmul.mubr.msk.bf16.vlgmr.msra.gmra.mrb[68].mxu1 %vm3471_vm3, %v6567_v47 }
0x1722   :  { %3886 = vmatpush3.bf16.msra.mxu0 %v5818_v6  ;;  %2565 = vmatpush1.bf16.msra.mxu1 %v5587_v48 }
0x1723   :  { %3887 = vmatprep.subr.bf16.mxu0 %v6479_v26  ;;  %2566 = vmatprep.subr.bf16.mxu1 %v5591_v49 }
0x1724   :  { %3901 = vmatprep.mubr.msk.bf16.mxu0 %vm4518_vm0, %v6479_v26  ;;  %2596 = vmatprep.mubr.bf16.mxu1 %v6480_v1 }
0x1726   :  { %3888 = vmatpush3.bf16.msra.mxu0 %v5827_v4  ;;  %2567 = vmatpush1.bf16.msra.mxu1 %v5598_v50 }
0x1727   :  { %3889 = vmatprep.subr.bf16.mxu0 %v6479_v26  ;;  %2568 = vmatprep.subr.bf16.mxu1 %v5602_v53 }
0x172a   :  { %3890 = vmatpush3.bf16.msra.mxu0 %v5833_v29  ;;  %2569 = vmatpush1.bf16.msra.mxu1 %v5606_v15 }
0x172b   :  { %3891 = vmatprep.subr.bf16.mxu0 %v6479_v26  ;;  %2570 = vmatprep.subr.bf16.mxu1 %v5610_v16 }
0x172e   :  { %3892 = vmatpush3.bf16.msra.mxu0 %v5839_v36  ;;  %2571 = vmatpush1.bf16.msra.mxu1 %v5614_v23 }
0x172f   :  { %3893 = vmatprep.subr.bf16.mxu0 %v6479_v26  ;;  %2572 = vmatprep.subr.bf16.mxu1 %v5618_v19 }
0x1732   :  { %3894 = vmatpush3.bf16.msra.mxu0 %v5845_v37  ;;  %2573 = vmatpush1.bf16.msra.mxu1 %v5622_v20 }
0x1733   :  { %3895 = vmatprep.subr.bf16.mxu0 %v6479_v26  ;;  %2574 = vmatprep.subr.bf16.mxu1 %v5626_v52 }
0x1736   :  { %3896 = vmatpush3.bf16.msra.mxu0 %v5851_v38  ;;  %2575 = vmatpush1.bf16.msra.mxu1 %v5630_v28 }
0x1737   :  { %3897 = vmatprep.subr.bf16.mxu0 %v6479_v26  ;;  %2576 = vmatprep.subr.bf16.mxu1 %v5634_v13 }
0x173a   :  { %3898 = vmatpush3.bf16.msra.mxu0 %v5857_v2  ;;  %2577 = vmatpush1.bf16.msra.mxu1 %v5638_v7 }
0x173b   :  { %3899 = vmatprep.subr.bf16.mxu0 %v6479_v26  ;;  %2578 = vmatprep.subr.bf16.mxu1 %v5642_v62 }
0x173e   :  { %3900 = vmatpush3.bf16.msra.mxu0 %v5863_v42  ;;  %2579 = vmatpush1.bf16.msra.mxu1 %v5646_v61 }
0x173f   :  { %2605 = vmatprep.subr.bf16.mxu0 %v5649_v21  ;;  %2646 = vmatprep.subr.bf16.mxu1 %v5652_v54 }
0x17f4   :  { %v2423_v44 = vpop.f32.mrb[64].mxu0  ;;  %v2464_v41 = vpop.f32.mrb[68].mxu1 }
0x17f5   :  { %v3475_v8 = vmul.f32 -1.442695, %v2423_v44  ;;  %v2465_v40 = vadd.f32 %v2464_v41, %v5806_v46  ;;  %v2425_v43 = vpop.f32.mrb[65].mxu0  ;;  %v2466_v39 = vpop.f32.mrb[69].mxu1 }
0x17f6   :  { %v2467_v7 = vadd.f32 %v2466_v39, %v5808_v60  ;;  %v2427_v62 = vpop.f32.mrb[66].mxu0  ;;  %v2468_v2 = vpop.f32.mrb[70].mxu1  ;;  %v3476_v28 = vmul.f32 -1.442695, %v2425_v43  ;;  %v6621_v43 = vld [vmem:[#allocation51_spill] sm:$0xff] }
0x17f7   :  { %4189 = vpow2.f32 %v3475_v8  ;;  %v2428_v13 = vpop.f32.mrb[67].mxu0  ;;  %v2469_v42 = vpop.f32.mrb[71].mxu1  ;;  %v6623_v2 = vld [vmem:[#allocation58_spill] sm:$0xff]  ;;  %v6625_v8 = vld [vmem:[#allocation60_spill] sm:$0xff] }
0x17f8   :  { %4191 = vpow2.f32 %v3476_v28  ;;  %v6624_v42 = vld [vmem:[#allocation59_spill] sm:$0xff] }
0x1801   :  { %v4190_v61 = vpop.eup %4189 }
0x1802   :  { %v2474_v21 = vadd.f32 1.0, %v4190_v61  ;;  %v4192_v54 = vpop.eup %4191  ;;  %v6617_v61 = vld [vmem:[#allocation49_spill] sm:$0xff] }
0x1803   :  { %v2480_v38 = vadd.f32 1.0, %v4192_v54  ;;  %v6619_v54 = vld [vmem:[#allocation50_spill] sm:$0xff] }
0x1804   :  { %4193 = vrcp.f32 %v2474_v21  ;;  %v6618_v21 = vld [vmem:[#allocation34_spill] sm:$0xff] }
0x1805   :  { %4195 = vrcp.f32 %v2480_v38  ;;  %v6622_v38 = vld [vmem:[#allocation55_spill] sm:$0xff] }
0x180e   :  { %v4194_v52 = vpop.eup %4193 }
0x180f   :  { %v2483_v44 = vmul.f32 %v4194_v52, %v2467_v7  ;;  %v4196_v41 = vpop.eup %4195  ;;  %v6615_v52 = vld [vmem:[#allocation47_spill] sm:$0xff]  ;;  %v6616_v7 = vld [vmem:[#allocation48_spill] sm:$0xff] }
0x1810   :  { %v2486_v20 = vsub.f32 1.0, %v4196_v41  ;;  %v2488_v60 = vmul.f32 %v4196_v41, %v5658_v45  ;;  %v6620_v45 = vld [vmem:[#allocation57_spill] sm:$0xff]  ;;  %v6629_v41 = vld [vmem:[#allocation64_spill] sm:$0xff] }
0x1811   :  { %v2484_v46 = vadd.f32 %v2483_v44, %v2465_v40  ;;  %v6626_v40 = vld [vmem:[#allocation61_spill] sm:$0xff]  ;;  %v6627_v44 = vld [vmem:[#allocation62_spill] sm:$0xff] }
0x1813   :  { %4197 = vtanh.f32 %v2484_v46  ;;  %v6628_v46 = vld [vmem:[#allocation63_spill] sm:$0xff] }
0x181d   :  { %v4198_v39 = vpop.eup %4197 }
0x181e   :  { %v2487_v62 = vmul.f32 %v4198_v39, %v2486_v20  ;;  %v6614_v20 = vld [vmem:[#allocation46_spill] sm:$0xff]  ;;  %v6630_v39 = vld [vmem:[#allocation65_spill] sm:$0xff] }
0x1820   :  { %v5872_v13 = vadd.f32 %v2488_v60, %v2487_v62  ;;  %v6631_v62 = vld [vmem:[#allocation68_spill] sm:$0xff]  ;;  %v6632_v60 = vld [vmem:[#allocation69_spill] sm:$0xff] }
0x1822   :  { %v2490_v28 = vpack.c.bf16 %v5872_v13, %v5872_v13 }
0x1824   :  { %3902 = vmatmul.mubr.bf16.vlgmr.msra.gmra.mrb[68].mxu0 %v2490_v28  ;;  %2597 = vmatmul.mubr.bf16.vlgmr.msra.gmra.mrb[72].mxu1 %v2490_v28 }
0x1825   :  { %2606 = vmatpush1.bf16.msra.mxu0 %v5509_v9  ;;  %2637 = vmatprep.mubr.bf16.mxu0 %v6480_v1 }
0x1826   :  { %2607 = vmatprep.subr.bf16.mxu0 %v5513_v57  ;;  %2647 = vmatpush1.bf16.msra.mxu1 %v5669_v31 }
0x1827   :  { %2648 = vmatprep.subr.bf16.mxu1 %v5672_v51  ;;  %2678 = vmatprep.mubr.bf16.mxu1 %v6480_v1 }
0x1829   :  { %2608 = vmatpush1.bf16.msra.mxu0 %v5519_v58 }
0x182a   :  { %2609 = vmatprep.subr.bf16.mxu0 %v5522_v56  ;;  %2649 = vmatpush1.bf16.msra.mxu1 %v5678_v32 }
0x182b   :  { %2650 = vmatprep.subr.bf16.mxu1 %v5681_v55 }
0x182d   :  { %2610 = vmatpush1.bf16.msra.mxu0 %v5684_v18 }
0x182e   :  { %2611 = vmatprep.subr.bf16.mxu0 %v5687_v24  ;;  %2651 = vmatpush1.bf16.msra.mxu1 %v5690_v59 }
0x182f   :  { %2652 = vmatprep.subr.bf16.mxu1 %v5693_v5 }
0x1831   :  { %2612 = vmatpush1.bf16.msra.mxu0 %v5696_v27 }
0x1832   :  { %2613 = vmatprep.subr.bf16.mxu0 %v5699_v25  ;;  %2653 = vmatpush1.bf16.msra.mxu1 %v5702_v33 }
0x1833   :  { %2654 = vmatprep.subr.bf16.mxu1 %v5705_v17 }
0x1835   :  { %2614 = vmatpush1.bf16.msra.mxu0 %v5708_v3 }
0x1836   :  { %2615 = vmatprep.subr.bf16.mxu0 %v5711_v11  ;;  %2655 = vmatpush1.bf16.msra.mxu1 %v5714_v0 }
0x1837   :  { %2656 = vmatprep.subr.bf16.mxu1 %v5717_v22 }
0x1839   :  { %2616 = vmatpush1.bf16.msra.mxu0 %v5720_v10 }
0x183a   :  { %2617 = vmatprep.subr.bf16.mxu0 %v5723_v12  ;;  %2657 = vmatpush1.bf16.msra.mxu1 %v5726_v14 }
0x183b   :  { %2658 = vmatprep.subr.bf16.mxu1 %v5729_v63 }
0x183d   :  { %2618 = vmatpush1.bf16.msra.mxu0 %v5732_v30 }
0x183e   :  { %2619 = vmatprep.subr.bf16.mxu0 %v5735_v35  ;;  %2659 = vmatpush1.bf16.msra.mxu1 %v6614_v20 }
0x183f   :  { %2660 = vmatprep.subr.bf16.mxu1 %v6615_v52 }
0x1841   :  { %2620 = vmatpush1.bf16.msra.mxu0 %v6616_v7 }
0x1842   :  { %2687 = vmatprep.subr.bf16.mxu0 %v6617_v61  ;;  %2661 = vmatpush1.bf16.msra.mxu1 %v6618_v21 }
0x1843   :  { %3905 = vmatprep.subr.bf16.mxu1 %v6479_v26 }
0x1844   :  { %2638 = vmatmul.mubr.bf16.vlgmr.msra.gmra.mrb[72].mxu0 %v2490_v28  ;;  %v6633_v28 = vld [vmem:[#allocation70_spill] sm:$0xff] }
0x1845   :  { %2688 = vmatpush1.bf16.msra.mxu0 %v6619_v54  ;;  %2719 = vmatprep.mubr.bf16.mxu0 %v6480_v1 }
0x1846   :  { %2689 = vmatprep.subr.bf16.mxu0 %v6620_v45 }
0x1849   :  { %2690 = vmatpush1.bf16.msra.mxu0 %v6621_v43 }
0x184a   :  { %2691 = vmatprep.subr.bf16.mxu0 %v6622_v38 }
0x184d   :  { %2692 = vmatpush1.bf16.msra.mxu0 %v6623_v2  ;;  %v6634_v2 = vld [vmem:[#allocation54_spill] sm:$0xff] }
0x184e   :  { %2693 = vmatprep.subr.bf16.mxu0 %v6624_v42 }
0x1851   :  { %2694 = vmatpush1.bf16.msra.mxu0 %v6625_v8 }
0x1852   :  { %2695 = vmatprep.subr.bf16.mxu0 %v6626_v40  ;;  %v5930_v40 = vld [vmem:[%s6270_s3] ss:$0 sm:$0xff]  ;;  %s4531_s3 = smov [#allocation12]  }
0x1853   :  { %6635 = vst [vmem:[#allocation46_spill] sm:$0xff] %v5930_v40  ;;  %s3334_s13 = sshll.u32 %s4531_s3, 4  ;;  %s3335_s13 = int_to_ptr.vmem [resolvable:$true] %s3334_s13 }
0x1854   :  { %s4404_s17 = scalar_lea.vmem %s3335_s13, 128  ;;  %p4409_p11 = scmp.lt.s32.totalorder %s3335_s13, %s3335_s13 }
0x1855   :  { %2696 = vmatpush1.bf16.msra.mxu0 %v6627_v44  ;;  %p4405_p10 = scmp.ne.s32.totalorder %s3335_s13, %s4404_s17  ;;  %p4410_p12 = scmp.lt.s32.totalorder %s4404_s17, %s4404_s17 }
0x1856   :  { %2697 = vmatprep.subr.bf16.mxu0 %v6628_v46 }
0x1857   :  { %p4411_p13 = por %p4410_p12, %p4409_p11 }
0x1859   :  { %2698 = vmatpush1.bf16.msra.mxu0 %v6629_v41  ;;  %p4412_p0 = pnand %p4411_p13, %p4405_p10 }
0x185a   :  { %2699 = vmatprep.subr.bf16.mxu0 %v6630_v39 }
0x185d   :  { %2700 = vmatpush1.bf16.msra.mxu0 %v6631_v62 }
0x185e   :  { %2701 = vmatprep.subr.bf16.mxu0 %v6632_v60 }
0x1861   :  { %2702 = vmatpush1.bf16.msra.mxu0 %v6633_v28 }
0x1862   :  { %2821 = vmatprep.subr.bf16.mxu0 %v6634_v2 }
0x18f7   :  { %v2525_v42 = vpop.f32.mrb[68].mxu0 }
0x18f8   :  { %v5933_v46 = vadd.f32 %v5930_v40, %v2525_v42  ;;  %v3903_v41 = vpop.f32.mrb[69].mxu0 }
0x18f9   :  { %v2528_v44 = vpop.f32.mrb[70].mxu0 }
0x18fa   :  { %6636 = vst [vmem:[#allocation47_spill] sm:$0xff] %v5933_v46  ;;  %2531 = vmax.xlane.f32.xlu0 %v5933_v46  ;;  %v3904_v62 = vpop.f32.mrb[71].mxu0 }
0x1917   :  { %v2639_v39 = vpop.f32.mrb[72].mxu0 }
0x1918   :  { %v5936_v60 = vpop.f32.mrb[73].mxu0 }
0x1919   :  { %v2643_v28 = vpop.f32.mrb[74].mxu0 }
0x191a   :  { %v2644_v8 = vpop.f32.mrb[75].mxu0 }
0x1987   :  { %v5938_v2 = vpop.xlane.xlu0 %2531 }
0x1988   :  { %6637 = vst [vmem:[#allocation48_spill] sm:$0xff] %v5938_v2  ;;  %vm2544_vm4 = vcmp.eq.f32.partialorder %v5933_v46, %v5938_v2 }
0x1989   :  { %v2545_v38 = vsel %vm2544_vm4, %v6566_v34, 128 }
0x198a   :  { %v2547_v43 = vshra.s32 %v2545_v38, 16  ;;  %v2546_v41 = vand.u32 65535, %v2545_v38  ;;  %v6642_v38 = vld [vmem:[#allocation40_spill] sm:$0xff] }
0x198c   :  { %v2549_v42 = vcvt.s32.f32 %v2547_v43  ;;  %v2548_v40 = vcvt.s32.f32 %v2546_v41  ;;  %v6641_v43 = vld [vmem:[#allocation39_spill] sm:$0xff]  ;;  %v6645_v41 = vld [vmem:[#allocation42_spill] sm:$0xff] }
0x198e   :  { %2550 = vmin.xlane.f32.xlu1 %v2549_v42 }
0x1a1b   :  { %v2551_v44 = vpop.xlane.xlu1 %2550 }
0x1a1c   :  { %vm2552_vm5 = vcmp.eq.f32.partialorder %v2549_v42, %v2551_v44  ;;  %v2557_v45 = vcvt.f32.s32 %v2551_v44  ;;  %v6644_v42 = vld [vmem:[#allocation41_spill] sm:$0xff] }
0x1a1d   :  { %v2553_v62 = vsel %vm2552_vm5, %v2548_v40, inf  ;;  %v6643_v40 = vld [vmem:[#allocation76_spill] sm:$0xff]  ;;  %v6646_v44 = vld [vmem:[#allocation77_spill] sm:$0xff] }
0x1a1e   :  { %2554 = vmin.xlane.f32.xlu0 %v2553_v62  ;;  %v2558_v28 = vshll.u32 %v2557_v45, 16  ;;  %v6640_v45 = vld [vmem:[#allocation75_spill] sm:$0xff] }
0x1a1f   :  { %v6647_v62 = vld [vmem:[#allocation43_spill] sm:$0xff] }
0x1aab   :  { %v2555_v54 = vpop.xlane.xlu0 %2554 }
0x1aac   :  { %v2556_v8 = vcvt.f32.s32 %v2555_v54  ;;  %v6639_v54 = vld [vmem:[#allocation38_spill] sm:$0xff] }
0x1aae   :  { %v2559_v21 = vadd.s32 %v2558_v28, %v2556_v8  ;;  %v6648_v28 = vld [vmem:[#allocation44_spill] sm:$0xff]  ;;  %v6649_v8 = vld [vmem:[#allocation45_spill] sm:$0xff] }
0x1ab0   :  { %vm2560_vm6 = vcmp.eq.s32.totalorder %v6566_v34, %v2559_v21  ;;  %v6638_v21 = vld [vmem:[#allocation37_spill] sm:$0xff] }
0x1ab1   :  { %vm3478_vm7 = vmpackc.low %vm2560_vm6, %vm2560_vm6 }
0x1ab2   :  { %3479 = vmatmul.mubr.msk.bf16.vlgmr.msra.gmra.mrb[72].mxu1 %vm3478_vm7, %v6567_v47  ;;  %3481 = vmatmul.mubr.msk.bf16.vlgmr.msra.gmra.mrb[76].mxu0 %vm3478_vm7, %v6567_v47 }
0x1ab3   :  { %3906 = vmatpush3.bf16.msra.mxu1 %v5818_v6  ;;  %2822 = vmatpush1.bf16.msra.mxu0 %v5587_v48 }
0x1ab4   :  { %3907 = vmatprep.subr.bf16.mxu1 %v6479_v26  ;;  %2823 = vmatprep.subr.bf16.mxu0 %v5591_v49 }
0x1ab5   :  { %3921 = vmatprep.mubr.msk.bf16.mxu1 %vm4518_vm0, %v6479_v26  ;;  %2853 = vmatprep.mubr.bf16.mxu0 %v6480_v1 }
0x1ab7   :  { %3908 = vmatpush3.bf16.msra.mxu1 %v5827_v4  ;;  %2824 = vmatpush1.bf16.msra.mxu0 %v5598_v50 }
0x1ab8   :  { %3909 = vmatprep.subr.bf16.mxu1 %v6479_v26  ;;  %2825 = vmatprep.subr.bf16.mxu0 %v5602_v53 }
0x1abb   :  { %3910 = vmatpush3.bf16.msra.mxu1 %v5833_v29  ;;  %2826 = vmatpush1.bf16.msra.mxu0 %v5606_v15 }
0x1abc   :  { %3911 = vmatprep.subr.bf16.mxu1 %v6479_v26  ;;  %2827 = vmatprep.subr.bf16.mxu0 %v5610_v16 }
0x1abf   :  { %3912 = vmatpush3.bf16.msra.mxu1 %v5839_v36  ;;  %2828 = vmatpush1.bf16.msra.mxu0 %v5614_v23 }
0x1ac0   :  { %3913 = vmatprep.subr.bf16.mxu1 %v6479_v26  ;;  %2829 = vmatprep.subr.bf16.mxu0 %v5618_v19 }
0x1ac3   :  { %3914 = vmatpush3.bf16.msra.mxu1 %v5845_v37  ;;  %2830 = vmatpush1.bf16.msra.mxu0 %v6638_v21 }
0x1ac4   :  { %3915 = vmatprep.subr.bf16.mxu1 %v6479_v26  ;;  %2831 = vmatprep.subr.bf16.mxu0 %v6639_v54 }
0x1ac7   :  { %3916 = vmatpush3.bf16.msra.mxu1 %v6640_v45  ;;  %2832 = vmatpush1.bf16.msra.mxu0 %v6641_v43 }
0x1ac8   :  { %3917 = vmatprep.subr.bf16.mxu1 %v6479_v26  ;;  %2833 = vmatprep.subr.bf16.mxu0 %v6642_v38 }
0x1acb   :  { %3918 = vmatpush3.bf16.msra.mxu1 %v6643_v40  ;;  %2834 = vmatpush1.bf16.msra.mxu0 %v6644_v42 }
0x1acc   :  { %3919 = vmatprep.subr.bf16.mxu1 %v6479_v26  ;;  %2835 = vmatprep.subr.bf16.mxu0 %v6645_v41 }
0x1acf   :  { %3920 = vmatpush3.bf16.msra.mxu1 %v6646_v44  ;;  %2836 = vmatpush1.bf16.msra.mxu0 %v6647_v62 }
0x1ad0   :  { %2862 = vmatprep.subr.bf16.mxu1 %v6648_v28  ;;  %2903 = vmatprep.subr.bf16.mxu0 %v6649_v8 }
0x1b85   :  { %v2680_v46 = vpop.f32.mrb[72].mxu1  ;;  %v2721_v2 = vpop.f32.mrb[76].mxu0 }
0x1b86   :  { %v3482_v43 = vmul.f32 -1.442695, %v2680_v46  ;;  %v2722_v38 = vadd.f32 %v2721_v2, %v2639_v39  ;;  %v2682_v45 = vpop.f32.mrb[73].mxu1  ;;  %v2723_v40 = vpop.f32.mrb[77].mxu0 }
0x1b87   :  { %v2724_v42 = vadd.f32 %v2723_v40, %v5936_v60  ;;  %v2684_v54 = vpop.f32.mrb[74].mxu1  ;;  %v2725_v21 = vpop.f32.mrb[78].mxu0  ;;  %v3483_v44 = vmul.f32 -1.442695, %v2682_v45  ;;  %v6658_v45 = vld [vmem:[#allocation61_spill] sm:$0xff]  ;;  %v6660_v40 = vld [vmem:[#allocation63_spill] sm:$0xff] }
0x1b88   :  { %4199 = vpow2.f32 %v3482_v43  ;;  %v2685_v41 = vpop.f32.mrb[75].mxu1  ;;  %v2726_v37 = vpop.f32.mrb[79].mxu0 }
0x1b89   :  { %4201 = vpow2.f32 %v3483_v44  ;;  %v6662_v41 = vld [vmem:[#allocation65_spill] sm:$0xff]  ;;  %v6663_v44 = vld [vmem:[#allocation68_spill] sm:$0xff] }
0x1b92   :  { %v4200_v62 = vpop.eup %4199 }
0x1b93   :  { %v2731_v19 = vadd.f32 1.0, %v4200_v62  ;;  %v4202_v28 = vpop.eup %4201  ;;  %v6664_v62 = vld [vmem:[#allocation69_spill] sm:$0xff] }
0x1b94   :  { %v2737_v8 = vadd.f32 1.0, %v4202_v28  ;;  %v6665_v28 = vld [vmem:[#allocation70_spill] sm:$0xff] }
0x1b95   :  { %4203 = vrcp.f32 %v2731_v19  ;;  %v6655_v19 = vld [vmem:[#allocation58_spill] sm:$0xff] }
0x1b96   :  { %4205 = vrcp.f32 %v2737_v8  ;;  %v6666_v8 = vld [vmem:[#allocation54_spill] sm:$0xff] }
0x1b9f   :  { %v4204_v23 = vpop.eup %4203 }
0x1ba0   :  { %v2740_v46 = vmul.f32 %v4204_v23, %v2724_v42  ;;  %v4206_v39 = vpop.eup %4205  ;;  %v6654_v23 = vld [vmem:[#allocation55_spill] sm:$0xff]  ;;  %v6661_v42 = vld [vmem:[#allocation64_spill] sm:$0xff] }
0x1ba1   :  { %v2743_v36 = vsub.f32 1.0, %v4206_v39  ;;  %v2745_v21 = vmul.f32 %v4206_v39, %v5872_v13  ;;  %v6657_v13 = vld [vmem:[#allocation60_spill] sm:$0xff] }
0x1ba2   :  { %v2741_v2 = vadd.f32 %v2740_v46, %v2722_v38  ;;  %v6659_v38 = vld [vmem:[#allocation62_spill] sm:$0xff] }
0x1ba4   :  { %4207 = vtanh.f32 %v2741_v2  ;;  %v6667_v2 = vld [vmem:[#allocation46_spill] sm:$0xff] }
0x1bae   :  { %v4208_v60 = vpop.eup %4207 }
0x1baf   :  { %v2744_v54 = vmul.f32 %v4208_v60, %v2743_v36  ;;  %v6656_v36 = vld [vmem:[#allocation59_spill] sm:$0xff] }
0x1bb1   :  { %v5983_v43 = vadd.f32 %v2745_v21, %v2744_v54 }
0x1bb3   :  { %v2747_v37 = vpack.c.bf16 %v5983_v43, %v5983_v43 }
0x1bb5   :  { %3922 = vmatmul.mubr.bf16.vlgmr.msra.gmra.mrb[76].mxu1 %v2747_v37  ;;  %2854 = vmatmul.mubr.bf16.vlgmr.msra.gmra.mrb[80].mxu0 %v2747_v37 }
0x1bb6   :  { %2863 = vmatpush1.bf16.msra.mxu1 %v5509_v9  ;;  %2894 = vmatprep.mubr.bf16.mxu1 %v6480_v1  ;;  %v6650_v9 = vld [vmem:[#allocation34_spill] sm:$0xff] }
0x1bb7   :  { %2864 = vmatprep.subr.bf16.mxu1 %v5513_v57  ;;  %2904 = vmatpush1.bf16.msra.mxu0 %v5669_v31  ;;  %v6651_v57 = vld [vmem:[#allocation50_spill] sm:$0xff] }
0x1bb8   :  { %2905 = vmatprep.subr.bf16.mxu0 %v5672_v51  ;;  %2935 = vmatprep.mubr.bf16.mxu0 %v6480_v1 }
0x1bba   :  { %2865 = vmatpush1.bf16.msra.mxu1 %v5519_v58  ;;  %v6652_v58 = vld [vmem:[#allocation57_spill] sm:$0xff] }
0x1bbb   :  { %2866 = vmatprep.subr.bf16.mxu1 %v5522_v56  ;;  %2906 = vmatpush1.bf16.msra.mxu0 %v5678_v32  ;;  %v6653_v56 = vld [vmem:[#allocation51_spill] sm:$0xff] }
0x1bbc   :  { %2907 = vmatprep.subr.bf16.mxu0 %v5681_v55 }
0x1bbe   :  { %2867 = vmatpush1.bf16.msra.mxu1 %v5684_v18 }
0x1bbf   :  { %2868 = vmatprep.subr.bf16.mxu1 %v5687_v24  ;;  %2908 = vmatpush1.bf16.msra.mxu0 %v5690_v59 }
0x1bc0   :  { %2909 = vmatprep.subr.bf16.mxu0 %v5693_v5 }
0x1bc2   :  { %2869 = vmatpush1.bf16.msra.mxu1 %v5696_v27 }
0x1bc3   :  { %2870 = vmatprep.subr.bf16.mxu1 %v5699_v25  ;;  %2910 = vmatpush1.bf16.msra.mxu0 %v5702_v33 }
0x1bc4   :  { %2911 = vmatprep.subr.bf16.mxu0 %v5705_v17 }
0x1bc6   :  { %2871 = vmatpush1.bf16.msra.mxu1 %v5708_v3 }
0x1bc7   :  { %2872 = vmatprep.subr.bf16.mxu1 %v5711_v11  ;;  %2912 = vmatpush1.bf16.msra.mxu0 %v5714_v0 }
0x1bc8   :  { %2913 = vmatprep.subr.bf16.mxu0 %v5717_v22 }
0x1bca   :  { %2873 = vmatpush1.bf16.msra.mxu1 %v5720_v10 }
0x1bcb   :  { %2874 = vmatprep.subr.bf16.mxu1 %v5723_v12  ;;  %2914 = vmatpush1.bf16.msra.mxu0 %v5726_v14 }
0x1bcc   :  { %2915 = vmatprep.subr.bf16.mxu0 %v5729_v63 }
0x1bce   :  { %2875 = vmatpush1.bf16.msra.mxu1 %v5732_v30 }
0x1bcf   :  { %2876 = vmatprep.subr.bf16.mxu1 %v5735_v35  ;;  %2916 = vmatpush1.bf16.msra.mxu0 %v6614_v20 }
0x1bd0   :  { %2917 = vmatprep.subr.bf16.mxu0 %v6615_v52 }
0x1bd2   :  { %2877 = vmatpush1.bf16.msra.mxu1 %v6616_v7 }
0x1bd3   :  { %2944 = vmatprep.subr.bf16.mxu1 %v6617_v61  ;;  %2918 = vmatpush1.bf16.msra.mxu0 %v6650_v9 }
0x1bd4   :  { %3925 = vmatprep.subr.bf16.mxu0 %v6479_v26 }
0x1bd5   :  { %2895 = vmatmul.mubr.bf16.vlgmr.msra.gmra.mrb[80].mxu1 %v2747_v37 }
0x1bd6   :  { %2945 = vmatpush1.bf16.msra.mxu1 %v6651_v57  ;;  %2976 = vmatprep.mubr.bf16.mxu1 %v6480_v1 }
0x1bd7   :  { %2946 = vmatprep.subr.bf16.mxu1 %v6652_v58 }
0x1bda   :  { %2947 = vmatpush1.bf16.msra.mxu1 %v6653_v56 }
0x1bdb   :  { %2948 = vmatprep.subr.bf16.mxu1 %v6654_v23 }
0x1bde   :  { %2949 = vmatpush1.bf16.msra.mxu1 %v6655_v19 }
0x1bdf   :  { %2950 = vmatprep.subr.bf16.mxu1 %v6656_v36 }
0x1be2   :  { %2951 = vmatpush1.bf16.msra.mxu1 %v6657_v13 }
0x1be3   :  { %2952 = vmatprep.subr.bf16.mxu1 %v6658_v45 }
0x1be6   :  { %2953 = vmatpush1.bf16.msra.mxu1 %v6659_v38 }
0x1be7   :  { %2954 = vmatprep.subr.bf16.mxu1 %v6660_v40 }
0x1bea   :  { %2955 = vmatpush1.bf16.msra.mxu1 %v6661_v42 }
0x1beb   :  { %2956 = vmatprep.subr.bf16.mxu1 %v6662_v41 }
0x1bee   :  { %2957 = vmatpush1.bf16.msra.mxu1 %v6663_v44 }
0x1bef   :  { %2958 = vmatprep.subr.bf16.mxu1 %v6664_v62 }
0x1bf2   :  { %2959 = vmatpush1.bf16.msra.mxu1 %v6665_v28 }
0x1bf3   :  { %3078 = vmatprep.subr.bf16.mxu1 %v6666_v8 }
0x1c88   :  { %v2782_v46 = vpop.f32.mrb[76].mxu1 }
0x1c89   :  { %v6039_v39 = vadd.f32 %v6667_v2, %v2782_v46  ;;  %v3923_v60 = vpop.f32.mrb[77].mxu1 }
0x1c8a   :  { %v2785_v54 = vpop.f32.mrb[78].mxu1 }
0x1c8b   :  { %6668 = vst [vmem:[#allocation49_spill] sm:$0xff] %v6039_v39  ;;  %2788 = vmax.xlane.f32.xlu1 %v6039_v39  ;;  %v3924_v21 = vpop.f32.mrb[79].mxu1 }
0x1ca8   :  { %v2896_v37 = vpop.f32.mrb[80].mxu1 }
0x1ca9   :  { %v6042_v42 = vpop.f32.mrb[81].mxu1 }
0x1caa   :  { %v2900_v41 = vpop.f32.mrb[82].mxu1 }
0x1cab   :  { %v2901_v44 = vpop.f32.mrb[83].mxu1 }
0x1d18   :  { %v6044_v40 = vpop.xlane.xlu1 %2788 }
0x1d19   :  { %6669 = vst [vmem:[#allocation34_spill] sm:$0xff] %v6044_v40  ;;  %vm2801_vm8 = vcmp.eq.f32.partialorder %v6039_v39, %v6044_v40 }
0x1d1a   :  { %v2802_v8 = vsel %vm2801_vm8, %v6566_v34, 128 }
0x1d1b   :  { %v2804_v28 = vshra.s32 %v2802_v8, 16  ;;  %v2803_v60 = vand.u32 65535, %v2802_v8  ;;  %v6681_v8 = vld [vmem:[#allocation42_spill] sm:$0xff] }
0x1d1d   :  { %v2806_v46 = vcvt.s32.f32 %v2804_v28  ;;  %v2805_v2 = vcvt.s32.f32 %v2803_v60  ;;  %v6679_v28 = vld [vmem:[#allocation76_spill] sm:$0xff]  ;;  %v6683_v60 = vld [vmem:[#allocation43_spill] sm:$0xff] }
0x1d1f   :  { %2807 = vmin.xlane.f32.xlu0 %v2806_v46 }
0x1dac   :  { %v2808_v54 = vpop.xlane.xlu0 %2807 }
0x1dad   :  { %vm2809_vm9 = vcmp.eq.f32.partialorder %v2806_v46, %v2808_v54  ;;  %v2814_v62 = vcvt.f32.s32 %v2808_v54  ;;  %v6682_v46 = vld [vmem:[#allocation77_spill] sm:$0xff]  ;;  %v6684_v54 = vld [vmem:[#allocation44_spill] sm:$0xff] }
0x1dae   :  { %v2810_v21 = vsel %vm2809_vm9, %v2805_v2, inf  ;;  %v6680_v2 = vld [vmem:[#allocation41_spill] sm:$0xff] }
0x1daf   :  { %2811 = vmin.xlane.f32.xlu1 %v2810_v21  ;;  %v2815_v41 = vshll.u32 %v2814_v62, 16  ;;  %v6677_v62 = vld [vmem:[#allocation39_spill] sm:$0xff]  ;;  %v6685_v21 = vld [vmem:[#allocation45_spill] sm:$0xff] }
0x1e3c   :  { %v2812_v38 = vpop.xlane.xlu1 %2811 }
0x1e3d   :  { %v2813_v44 = vcvt.f32.s32 %v2812_v38  ;;  %v6674_v38 = vld [vmem:[#allocation37_spill] sm:$0xff] }
0x1e3f   :  { %v2816_v45 = vadd.s32 %v2815_v41, %v2813_v44 }
0x1e41   :  { %vm2817_vm10 = vcmp.eq.s32.totalorder %v6566_v34, %v2816_v45  ;;  %v6672_v45 = vld [vmem:[#allocation36_spill] sm:$0xff] }
0x1e42   :  { %vm3485_vm11 = vmpackc.low %vm2817_vm10, %vm2817_vm10 }
0x1e43   :  { %3486 = vmatmul.mubr.msk.bf16.vlgmr.msra.gmra.mrb[80].mxu0 %vm3485_vm11, %v6567_v47  ;;  %3488 = vmatmul.mubr.msk.bf16.vlgmr.msra.gmra.mrb[84].mxu1 %vm3485_vm11, %v6567_v47 }
0x1e44   :  { %3926 = vmatpush3.bf16.msra.mxu0 %v5818_v6  ;;  %3079 = vmatpush1.bf16.msra.mxu1 %v5587_v48  ;;  %v6670_v48 = vld [vmem:[#allocation73_spill] sm:$0xff] }
0x1e45   :  { %3927 = vmatprep.subr.bf16.mxu0 %v6479_v26  ;;  %3080 = vmatprep.subr.bf16.mxu1 %v5591_v49  ;;  %v6671_v49 = vld [vmem:[#allocation35_spill] sm:$0xff] }
0x1e46   :  { %3941 = vmatprep.mubr.msk.bf16.mxu0 %vm4518_vm0, %v6479_v26  ;;  %3110 = vmatprep.mubr.bf16.mxu1 %v6480_v1 }
0x1e48   :  { %3928 = vmatpush3.bf16.msra.mxu0 %v5827_v4  ;;  %3081 = vmatpush1.bf16.msra.mxu1 %v5598_v50  ;;  %v6673_v50 = vld [vmem:[#allocation74_spill] sm:$0xff] }
0x1e49   :  { %3929 = vmatprep.subr.bf16.mxu0 %v6479_v26  ;;  %3082 = vmatprep.subr.bf16.mxu1 %v5602_v53  ;;  %v6675_v53 = vld [vmem:[#allocation38_spill] sm:$0xff] }
0x1e4c   :  { %3930 = vmatpush3.bf16.msra.mxu0 %v5833_v29  ;;  %3083 = vmatpush1.bf16.msra.mxu1 %v5606_v15  ;;  %v6676_v15 = vld [vmem:[#allocation75_spill] sm:$0xff] }
0x1e4d   :  { %3931 = vmatprep.subr.bf16.mxu0 %v6479_v26  ;;  %3084 = vmatprep.subr.bf16.mxu1 %v5610_v16  ;;  %v6678_v16 = vld [vmem:[#allocation40_spill] sm:$0xff] }
0x1e50   :  { %3932 = vmatpush3.bf16.msra.mxu0 %v6670_v48  ;;  %3085 = vmatpush1.bf16.msra.mxu1 %v6671_v49 }
0x1e51   :  { %3933 = vmatprep.subr.bf16.mxu0 %v6479_v26  ;;  %3086 = vmatprep.subr.bf16.mxu1 %v6672_v45 }
0x1e54   :  { %3934 = vmatpush3.bf16.msra.mxu0 %v6673_v50  ;;  %3087 = vmatpush1.bf16.msra.mxu1 %v6674_v38 }
0x1e55   :  { %3935 = vmatprep.subr.bf16.mxu0 %v6479_v26  ;;  %3088 = vmatprep.subr.bf16.mxu1 %v6675_v53 }
0x1e58   :  { %3936 = vmatpush3.bf16.msra.mxu0 %v6676_v15  ;;  %3089 = vmatpush1.bf16.msra.mxu1 %v6677_v62 }
0x1e59   :  { %3937 = vmatprep.subr.bf16.mxu0 %v6479_v26  ;;  %3090 = vmatprep.subr.bf16.mxu1 %v6678_v16 }
0x1e5c   :  { %3938 = vmatpush3.bf16.msra.mxu0 %v6679_v28  ;;  %3091 = vmatpush1.bf16.msra.mxu1 %v6680_v2 }
0x1e5d   :  { %3939 = vmatprep.subr.bf16.mxu0 %v6479_v26  ;;  %3092 = vmatprep.subr.bf16.mxu1 %v6681_v8 }
0x1e60   :  { %3940 = vmatpush3.bf16.msra.mxu0 %v6682_v46  ;;  %3093 = vmatpush1.bf16.msra.mxu1 %v6683_v60 }
0x1e61   :  { %3119 = vmatprep.subr.bf16.mxu0 %v6684_v54  ;;  %3160 = vmatprep.subr.bf16.mxu1 %v6685_v21 }
0x1f16   :  { %v2937_v41 = vpop.f32.mrb[80].mxu0  ;;  %v2978_v44 = vpop.f32.mrb[84].mxu1 }
0x1f17   :  { %v3489_v49 = vmul.f32 -1.442695, %v2937_v41  ;;  %v2979_v45 = vadd.f32 %v2978_v44, %v2896_v37  ;;  %v2939_v38 = vpop.f32.mrb[81].mxu0  ;;  %v2980_v53 = vpop.f32.mrb[85].mxu1 }
0x1f18   :  { %v2981_v62 = vadd.f32 %v2980_v53, %v6042_v42  ;;  %v2941_v16 = vpop.f32.mrb[82].mxu0  ;;  %v2982_v2 = vpop.f32.mrb[86].mxu1  ;;  %v3490_v40 = vmul.f32 -1.442695, %v2939_v38 }
0x1f19   :  { %4209 = vpow2.f32 %v3489_v49  ;;  %v2942_v8 = vpop.f32.mrb[83].mxu0  ;;  %v2983_v39 = vpop.f32.mrb[87].mxu1 }
0x1f1a   :  { %4211 = vpow2.f32 %v3490_v40  ;;  %v4334_v39 = vld [vmem:[#allocation3 + $0x10] sm:$0xff] }
0x1f23   :  { %v4210_v60 = vpop.eup %4209 }
0x1f24   :  { %v2988_v46 = vadd.f32 1.0, %v4210_v60  ;;  %v4212_v54 = vpop.eup %4211 }
0x1f25   :  { %v2994_v21 = vadd.f32 1.0, %v4212_v54 }
0x1f26   :  { %4213 = vrcp.f32 %v2988_v46 }
0x1f27   :  { %4215 = vrcp.f32 %v2994_v21 }
0x1f30   :  { %v4214_v28 = vpop.eup %4213 }
0x1f31   :  { %v2997_v41 = vmul.f32 %v4214_v28, %v2981_v62  ;;  %v4216_v44 = vpop.eup %4215  ;;  %v4335_v28 = vld [vmem:[#allocation3 + $0x38] sm:$0xff] }
0x1f32   :  { %v3000_v15 = vsub.f32 1.0, %v4216_v44  ;;  %v3002_v49 = vmul.f32 %v4216_v44, %v5983_v43  ;;  %v4336_v43 = vld [vmem:[#allocation3 + $0x30] sm:$0xff] }
0x1f33   :  { %v2998_v37 = vadd.f32 %v2997_v41, %v2979_v45 }
0x1f35   :  { %4217 = vtanh.f32 %v2998_v37 }
0x1f3f   :  { %v4218_v42 = vpop.eup %4217 }
0x1f40   :  { %v3001_v53 = vmul.f32 %v4218_v42, %v3000_v15  ;;  %v4337_v15 = vld [vmem:[#allocation3 + $0x58] sm:$0xff] }
0x1f42   :  { %v6089_v16 = vadd.f32 %v3002_v49, %v3001_v53 }
0x1f44   :  { %v3004_v40 = vpack.c.bf16 %v6089_v16, %v6089_v16 }
0x1f46   :  { %3942 = vmatmul.mubr.bf16.vlgmr.msra.gmra.mrb[84].mxu0 %v3004_v40  ;;  %3111 = vmatmul.mubr.bf16.vlgmr.msra.gmra.mrb[88].mxu1 %v3004_v40 }
0x1f47   :  { %3120 = vmatpush1.bf16.msra.mxu0 %v4334_v39  ;;  %3151 = vmatprep.mubr.bf16.mxu0 %v6480_v1 }
0x1f48   :  { %3121 = vmatprep.subr.bf16.mxu0 %v4335_v28  ;;  %3161 = vmatpush1.bf16.msra.mxu1 %v5669_v31  ;;  %v6686_v31 = vld [vmem:[#allocation61_spill] sm:$0xff] }
0x1f49   :  { %3162 = vmatprep.subr.bf16.mxu1 %v5672_v51  ;;  %3192 = vmatprep.mubr.bf16.mxu1 %v6480_v1  ;;  %v6687_v51 = vld [vmem:[#allocation62_spill] sm:$0xff] }
0x1f4b   :  { %3122 = vmatpush1.bf16.msra.mxu0 %v4336_v43 }
0x1f4c   :  { %3123 = vmatprep.subr.bf16.mxu0 %v4337_v15  ;;  %3163 = vmatpush1.bf16.msra.mxu1 %v5678_v32  ;;  %v6688_v32 = vld [vmem:[#allocation63_spill] sm:$0xff] }
0x1f4d   :  { %3164 = vmatprep.subr.bf16.mxu1 %v5681_v55  ;;  %v6689_v55 = vld [vmem:[#allocation64_spill] sm:$0xff] }
0x1f4f   :  { %3124 = vmatpush1.bf16.msra.mxu0 %v5684_v18  ;;  %v6691_v18 = vld [vmem:[#allocation68_spill] sm:$0xff] }
0x1f50   :  { %3125 = vmatprep.subr.bf16.mxu0 %v5687_v24  ;;  %3165 = vmatpush1.bf16.msra.mxu1 %v5690_v59  ;;  %v6692_v24 = vld [vmem:[#allocation69_spill] sm:$0xff]  ;;  %v6693_v59 = vld [vmem:[#allocation70_spill] sm:$0xff] }
0x1f51   :  { %3166 = vmatprep.subr.bf16.mxu1 %v5693_v5 }
0x1f53   :  { %3126 = vmatpush1.bf16.msra.mxu0 %v5696_v27  ;;  %v6694_v27 = vld [vmem:[#allocation46_spill] sm:$0xff] }
0x1f54   :  { %3127 = vmatprep.subr.bf16.mxu0 %v5699_v25  ;;  %3167 = vmatpush1.bf16.msra.mxu1 %v5702_v33 }
0x1f55   :  { %3168 = vmatprep.subr.bf16.mxu1 %v5705_v17 }
0x1f57   :  { %3128 = vmatpush1.bf16.msra.mxu0 %v5708_v3 }
0x1f58   :  { %3129 = vmatprep.subr.bf16.mxu0 %v5711_v11  ;;  %3169 = vmatpush1.bf16.msra.mxu1 %v5714_v0 }
0x1f59   :  { %3170 = vmatprep.subr.bf16.mxu1 %v5717_v22 }
0x1f5b   :  { %3130 = vmatpush1.bf16.msra.mxu0 %v5720_v10 }
0x1f5c   :  { %3131 = vmatprep.subr.bf16.mxu0 %v5723_v12  ;;  %3171 = vmatpush1.bf16.msra.mxu1 %v5726_v14 }
0x1f5d   :  { %3172 = vmatprep.subr.bf16.mxu1 %v5729_v63 }
0x1f5f   :  { %3132 = vmatpush1.bf16.msra.mxu0 %v5732_v30 }
0x1f60   :  { %3133 = vmatprep.subr.bf16.mxu0 %v5735_v35  ;;  %3173 = vmatpush1.bf16.msra.mxu1 %v6614_v20  ;;  %v6695_v35 = vld [vmem:[#allocation67_spill] sm:$0xff]  ;;  %v6696_v20 = vld [vmem:[#allocation66_spill] sm:$0xff] }
0x1f61   :  { %3174 = vmatprep.subr.bf16.mxu1 %v6615_v52  ;;  %v1506_v52 = vsub.f32 %v6696_v20, %v6695_v35 }
0x1f63   :  { %3134 = vmatpush1.bf16.msra.mxu0 %v6616_v7  ;;  %v1507_v7 = vmul.f32 1.442695, %v1506_v52 }
0x1f64   :  { %3201 = vmatprep.subr.bf16.mxu0 %v6617_v61  ;;  %3175 = vmatpush1.bf16.msra.mxu1 %v6650_v9  ;;  %v6697_v61 = vld [vmem:[#allocation33_spill] sm:$0xff]  ;;  %v6698_v9 = vld [vmem:[#allocation56_spill] sm:$0xff] }
0x1f65   :  { %3945 = vmatprep.subr.bf16.mxu1 %v6479_v26  ;;  %4219 = vpow2.f32 %v1507_v7 }
0x1f66   :  { %3152 = vmatmul.mubr.bf16.vlgmr.msra.gmra.mrb[88].mxu0 %v3004_v40 }
0x1f67   :  { %3202 = vmatpush1.bf16.msra.mxu0 %v6651_v57  ;;  %3233 = vmatprep.mubr.bf16.mxu0 %v6480_v1  ;;  %v6690_v1 = vld [vmem:[#allocation65_spill] sm:$0xff]  ;;  %v2019_v57 = vsub.f32 %v6698_v9, %v6697_v61 }
0x1f68   :  { %3203 = vmatprep.subr.bf16.mxu0 %v6652_v58 }
0x1f69   :  { %v2020_v58 = vmul.f32 1.442695, %v2019_v57 }
0x1f6b   :  { %3204 = vmatpush1.bf16.msra.mxu0 %v6653_v56  ;;  %v6699_v56 = vld [vmem:[#allocation48_spill] sm:$0xff]  ;;  %4221 = vpow2.f32 %v2020_v58 }
0x1f6c   :  { %3205 = vmatprep.subr.bf16.mxu0 %v6654_v23  ;;  %v6700_v23 = vld [vmem:[#allocation47_spill] sm:$0xff] }
0x1f6f   :  { %3206 = vmatpush1.bf16.msra.mxu0 %v6655_v19  ;;  %v2533_v19 = vsub.f32 %v6700_v23, %v6699_v56  ;;  %v4220_v8 = vpop.eup %4219 }
0x1f70   :  { %3207 = vmatprep.subr.bf16.mxu0 %v6656_v36 }
0x1f73   :  { %3208 = vmatpush1.bf16.msra.mxu0 %v6657_v13  ;;  %v2534_v13 = vmul.f32 1.442695, %v2533_v19 }
0x1f74   :  { %3209 = vmatprep.subr.bf16.mxu0 %v6686_v31 }
0x1f75   :  { %4223 = vpow2.f32 %v2534_v13  ;;  %v4222_v60 = vpop.eup %4221 }
0x1f77   :  { %3210 = vmatpush1.bf16.msra.mxu0 %v6687_v51 }
0x1f78   :  { %3211 = vmatprep.subr.bf16.mxu0 %v6688_v32 }
0x1f7b   :  { %3212 = vmatpush1.bf16.msra.mxu0 %v6689_v55 }
0x1f7c   :  { %3213 = vmatprep.subr.bf16.mxu0 %v6690_v1 }
0x1f7f   :  { %3214 = vmatpush1.bf16.msra.mxu0 %v6691_v18  ;;  %v4224_v54 = vpop.eup %4223 }
0x1f80   :  { %3215 = vmatprep.subr.bf16.mxu0 %v6692_v24  ;;  %v6701_v24 = vld [vmem:[#allocation75_spill] sm:$0xff] }
0x1f83   :  { %3216 = vmatpush1.bf16.msra.mxu0 %v6693_v59 }
0x2019   :  { %v3039_v5 = vpop.f32.mrb[84].mxu0 }
0x201a   :  { %v6140_v25 = vadd.f32 %v6694_v27, %v3039_v5  ;;  %v3943_v33 = vpop.f32.mrb[85].mxu0 }
0x201b   :  { %v3042_v17 = vpop.f32.mrb[86].mxu0  ;;  %v6702_v33 = vld [vmem:[#allocation76_spill] sm:$0xff] }
0x201c   :  { %3045 = vmax.xlane.f32.xlu0 %v6140_v25  ;;  %v3944_v3 = vpop.f32.mrb[87].mxu0 }
0x2039   :  { %v6143_v11 = vpop.f32.mrb[88].mxu0 }
0x203a   :  { %v6145_v0 = vpop.f32.mrb[89].mxu0 }
0x203b   :  { %v3157_v22 = vpop.f32.mrb[90].mxu0 }
0x203c   :  { %v3158_v10 = vpop.f32.mrb[91].mxu0 }
0x20a9   :  { %v6147_v12 = vpop.xlane.xlu0 %3045 }
0x20aa   :  { %vm3058_vm12 = vcmp.eq.f32.partialorder %v6140_v25, %v6147_v12  ;;  %v3047_v46 = vsub.f32 %v6140_v25, %v6147_v12 }
0x20ab   :  { %v3059_v14 = vsel %vm3058_vm12, %v6566_v34, 128 }
0x20ac   :  { %v3061_v63 = vshra.s32 %v3059_v14, 16  ;;  %v3060_v36 = vand.u32 65535, %v3059_v14  ;;  %v3048_v2 = vmul.f32 1.442695, %v3047_v46 }
0x20ae   :  { %v3063_v30 = vcvt.s32.f32 %v3061_v63  ;;  %v3062_v38 = vcvt.s32.f32 %v3060_v36  ;;  %4225 = vpow2.f32 %v3048_v2 }
0x20b0   :  { %3064 = vmin.xlane.f32.xlu1 %v3063_v30 }
0x20b8   :  { %v4226_v21 = vpop.eup %4225 }
0x213d   :  { %v3065_v45 = vpop.xlane.xlu1 %3064 }
0x213e   :  { %vm3066_vm13 = vcmp.eq.f32.partialorder %v3063_v30, %v3065_v45  ;;  %v3071_v41 = vcvt.f32.s32 %v3065_v45  ;;  %v6704_v45 = vld [vmem:[#allocation53_spill] sm:$0xff] }
0x213f   :  { %v3067_v62 = vsel %vm3066_vm13, %v3062_v38, inf  ;;  %v6705_v38 = vld [vmem:[#allocation52_spill] sm:$0xff] }
0x2140   :  { %3068 = vmin.xlane.f32.xlu0 %v3067_v62  ;;  %v3072_v44 = vshll.u32 %v3071_v41, 16  ;;  %v1762_v62 = vsub.f32 %v6705_v38, %v6704_v45  ;;  %v6708_v41 = vld [vmem:[#allocation34_spill] sm:$0xff] }
0x2142   :  { %v1763_v2 = vmul.f32 1.442695, %v1762_v62 }
0x2144   :  { %1509 = vadd.xlane.f32.xlu0 %v4220_v8  ;;  %v6706_v8 = vld [vmem:[#allocation72_spill] sm:$0xff] }
0x2148   :  { %2022 = vadd.xlane.f32.xlu0 %v4222_v60  ;;  %v6707_v60 = vld [vmem:[#allocation71_spill] sm:$0xff] }
0x214c   :  { %2536 = vadd.xlane.f32.xlu0 %v4224_v54  ;;  %v2276_v54 = vsub.f32 %v6707_v60, %v6706_v8 }
0x2150   :  { %3050 = vadd.xlane.f32.xlu0 %v4226_v21  ;;  %v2277_v21 = vmul.f32 1.442695, %v2276_v54 }
0x21cd   :  { %v3069_v37 = vpop.xlane.xlu0 %3068 }
0x21ce   :  { %v3070_v42 = vcvt.f32.s32 %v3069_v37  ;;  %v6709_v37 = vld [vmem:[#allocation49_spill] sm:$0xff] }
0x21d0   :  { %v3073_v53 = vadd.s32 %v3072_v44, %v3070_v42  ;;  %v2790_v44 = vsub.f32 %v6709_v37, %v6708_v41 }
0x21d1   :  { %v1510_v49 = vpop.xlane.xlu0 %1509 }
0x21d2   :  { %vm3074_vm14 = vcmp.eq.s32.totalorder %v6566_v34, %v3073_v53  ;;  %4227 = vlog2.f32 %v1510_v49  ;;  %v2791_v42 = vmul.f32 1.442695, %v2790_v44 }
0x21d3   :  { %vm3492_vm15 = vmpackc.low %vm3074_vm14, %vm3074_vm14 }
0x21d4   :  { %3493 = vmatmul.mubr.msk.bf16.vlgmr.msra.gmra.mrb[88].mxu1 %vm3492_vm15, %v6567_v47  ;;  %3495 = vmatmul.mubr.msk.bf16.vlgmr.msra.gmra.mrb[92].mxu0 %vm3492_vm15, %v6567_v47 }
0x21d5   :  { %v2023_v40 = vpop.xlane.xlu0 %2022  ;;  %3946 = vmatpush3.bf16.msra.mxu1 %v5818_v6  ;;  %3961 = vmatprep.mubr.msk.bf16.mxu1 %vm4518_vm0, %v6479_v26 }
0x21d6   :  { %4229 = vlog2.f32 %v2023_v40  ;;  %3947 = vmatprep.subr.bf16.mxu1 %v6479_v26 }
0x21d9   :  { %v2537_v39 = vpop.xlane.xlu0 %2536  ;;  %3948 = vmatpush3.bf16.msra.mxu1 %v5827_v4 }
0x21da   :  { %4231 = vlog2.f32 %v2537_v39  ;;  %3949 = vmatprep.subr.bf16.mxu1 %v6479_v26 }
0x21dc   :  { %v4228_v34 = vpop.eup %4227 }
0x21dd   :  { %v1512_v28 = vmul.f32 0.6931472, %v4228_v34  ;;  %v3051_v43 = vpop.xlane.xlu0 %3050  ;;  %3950 = vmatpush3.bf16.msra.mxu1 %v5833_v29 }
0x21de   :  { %4233 = vlog2.f32 %v3051_v43  ;;  %3951 = vmatprep.subr.bf16.mxu1 %v6479_v26 }
0x21df   :  { %v1513_v47 = vadd.f32 %v1512_v28, %v6695_v35 }
0x21e0   :  { %v4230_v6 = vpop.eup %4229 }
0x21e1   :  { %v1514_v15 = vsub.f32 %v6696_v20, %v1513_v47  ;;  %v2025_v31 = vmul.f32 0.6931472, %v4230_v6  ;;  %3952 = vmatpush3.bf16.msra.mxu1 %v6670_v48 }
0x21e2   :  { %3953 = vmatprep.subr.bf16.mxu1 %v6479_v26 }
0x21e3   :  { %1515 = vst [vmem:[#allocation14] sm:$0xff] %v1514_v15  ;;  %v2026_v4 = vadd.f32 %v2025_v31, %v6697_v61 }
0x21e4   :  { %v4232_v51 = vpop.eup %4231 }
0x21e5   :  { %v2027_v32 = vsub.f32 %v6698_v9, %v2026_v4  ;;  %v2539_v29 = vmul.f32 0.6931472, %v4232_v51  ;;  %3954 = vmatpush3.bf16.msra.mxu1 %v6673_v50  ;;  %v6703_v50 = vld [vmem:[#allocation77_spill] sm:$0xff] }
0x21e6   :  { %3955 = vmatprep.subr.bf16.mxu1 %v6479_v26 }
0x21e7   :  { %2029 = vst [vmem:[#allocation14 + $0x10] sm:$0xff] %v2027_v32  ;;  %v2540_v55 = vadd.f32 %v2539_v29, %v6699_v56 }
0x21e8   :  { %v4234_v1 = vpop.eup %4233 }
0x21e9   :  { %v2541_v18 = vsub.f32 %v6700_v23, %v2540_v55  ;;  %v3053_v48 = vmul.f32 0.6931472, %v4234_v1  ;;  %3956 = vmatpush3.bf16.msra.mxu1 %v6701_v24 }
0x21ea   :  { %3957 = vmatprep.subr.bf16.mxu1 %v6479_v26 }
0x21eb   :  { %2543 = vst [vmem:[#allocation14 + $0x20] sm:$0xff] %v2541_v18  ;;  %v3054_v59 = vadd.f32 %v3053_v48, %v6147_v12 }
0x21ed   :  { %v3055_v5 = vsub.f32 %v6140_v25, %v3054_v59  ;;  %3958 = vmatpush3.bf16.msra.mxu1 %v6702_v33 }
0x21ee   :  { %3959 = vmatprep.subr.bf16.mxu1 %v6479_v26 }
0x21ef   :  { %3057 = vst [vmem:[#allocation14 + $0x30] sm:$0xff] %v3055_v5 }
0x21f1   :  { %3960 = vmatpush3.bf16.msra.mxu1 %v6703_v50 }
0x22a7   :  { %v3194_v17 = vpop.f32.mrb[88].mxu1  ;;  %v3235_v3 = vpop.f32.mrb[92].mxu0 }
0x22a8   :  { %v3496_v22 = vmul.f32 -1.442695, %v3194_v17  ;;  %v3236_v10 = vadd.f32 %v3235_v3, %v6143_v11  ;;  %v3196_v14 = vpop.f32.mrb[89].mxu1  ;;  %v3237_v63 = vpop.f32.mrb[93].mxu0 }
0x22a9   :  { %v3238_v30 = vadd.f32 %v3237_v63, %v6145_v0  ;;  %v3198_v35 = vpop.f32.mrb[90].mxu1  ;;  %v3239_v12 = vpop.f32.mrb[94].mxu0  ;;  %v3497_v52 = vmul.f32 -1.442695, %v3196_v14 }
0x22aa   :  { %4235 = vpow2.f32 %v3496_v22  ;;  %v3199_v25 = vpop.f32.mrb[91].mxu1  ;;  %v3240_v20 = vpop.f32.mrb[95].mxu0 }
0x22ab   :  { %4237 = vpow2.f32 %v3497_v52 }
0x22b4   :  { %v4236_v26 = vpop.eup %4235 }
0x22b5   :  { %v3245_v7 = vadd.f32 1.0, %v4236_v26  ;;  %v4238_v61 = vpop.eup %4237 }
0x22b6   :  { %v3251_v9 = vadd.f32 1.0, %v4238_v61 }
0x22b7   :  { %4239 = vrcp.f32 %v3245_v7 }
0x22b8   :  { %4241 = vrcp.f32 %v3251_v9 }
0x22c1   :  { %v4240_v57 = vpop.eup %4239 }
0x22c2   :  { %v3254_v58 = vmul.f32 %v4240_v57, %v3238_v30  ;;  %v4242_v56 = vpop.eup %4241 }
0x22c3   :  { %v3257_v23 = vsub.f32 1.0, %v4242_v56  ;;  %v3259_v36 = vmul.f32 %v4242_v56, %v6089_v16 }
0x22c4   :  { %v3255_v11 = vadd.f32 %v3254_v58, %v3236_v10 }
0x22c6   :  { %4243 = vtanh.f32 %v3255_v11 }
0x22c7   :  { %4245 = vpow2.f32 %v1763_v2 }
0x22c8   :  { %4247 = vpow2.f32 %v2277_v21 }
0x22c9   :  { %4249 = vpow2.f32 %v2791_v42 }
0x22d0   :  { %v4244_v0 = vpop.eup %4243 }
0x22d1   :  { %v3258_v19 = vmul.f32 %v4244_v0, %v3257_v23  ;;  %v4246_v34 = vpop.eup %4245 }
0x22d2   :  { %v4248_v28 = vpop.eup %4247 }
0x22d3   :  { %v3260_v13 = vadd.f32 %v3259_v36, %v3258_v19  ;;  %v4250_v43 = vpop.eup %4249 }
0x22d5   :  { %v3261_v46 = vpack.c.bf16 %v3260_v13, %v3260_v13  ;;  %3315 = vst [vmem:[#allocation15] sm:$0xff] %v3260_v13 }
0x22d7   :  { %3962 = vmatmul.mubr.bf16.vlgmr.msra.gmra.mrb[92].mxu1 %v3261_v46 }
0x23aa   :  { %v3296_v53 = vpop.f32.mrb[92].mxu1 }
0x23ab   :  { %v6198_v16 = vadd.f32 %v6694_v27, %v3296_v53  ;;  %v3963_v49 = vpop.f32.mrb[93].mxu1 }
0x23ac   :  { %v3299_v40 = vpop.f32.mrb[94].mxu1 }
0x23ad   :  { %3302 = vmax.xlane.f32.xlu1 %v6198_v16  ;;  %v3964_v39 = vpop.f32.mrb[95].mxu1 }
0x23b1   :  { %1765 = vadd.xlane.f32.xlu1 %v4246_v34 }
0x23b5   :  { %2279 = vadd.xlane.f32.xlu1 %v4248_v28 }
0x23b9   :  { %2793 = vadd.xlane.f32.xlu1 %v4250_v43 }
0x243a   :  { %v6201_v47 = vpop.xlane.xlu1 %3302 }
0x243b   :  { %v3304_v6 = vsub.f32 %v6198_v16, %v6201_v47 }
0x243d   :  { %v3305_v15 = vmul.f32 1.442695, %v3304_v6 }
0x243e   :  { %v1766_v27 = vpop.xlane.xlu1 %1765 }
0x243f   :  { %4251 = vpow2.f32 %v3305_v15 }
0x2440   :  { %4253 = vlog2.f32 %v1766_v27 }
0x2442   :  { %v2280_v31 = vpop.xlane.xlu1 %2279 }
0x2443   :  { %4255 = vlog2.f32 %v2280_v31 }
0x2446   :  { %v2794_v4 = vpop.xlane.xlu1 %2793 }
0x2447   :  { %4257 = vlog2.f32 %v2794_v4 }
0x2449   :  { %v4252_v51 = vpop.eup %4251 }
0x244a   :  { %v4254_v32 = vpop.eup %4253  ;;  %3307 = vadd.xlane.f32.xlu1 %v4252_v51 }
0x244b   :  { %v1768_v29 = vmul.f32 0.6931472, %v4254_v32 }
0x244d   :  { %v4256_v55 = vpop.eup %4255  ;;  %v1769_v1 = vadd.f32 %v1768_v29, %v6704_v45 }
0x244e   :  { %v2282_v18 = vmul.f32 0.6931472, %v4256_v55 }
0x244f   :  { %v1770_v48 = vsub.f32 %v6705_v38, %v1769_v1 }
0x2450   :  { %v2283_v24 = vadd.f32 %v2282_v18, %v6706_v8 }
0x2451   :  { %v4258_v59 = vpop.eup %4257  ;;  %1772 = vst [vmem:[#allocation14 + $0x8] sm:$0xff] %v1770_v48 }
0x2452   :  { %v2284_v5 = vsub.f32 %v6707_v60, %v2283_v24  ;;  %v2796_v33 = vmul.f32 0.6931472, %v4258_v59 }
0x2454   :  { %2286 = vst [vmem:[#allocation14 + $0x18] sm:$0xff] %v2284_v5  ;;  %v2797_v50 = vadd.f32 %v2796_v33, %v6708_v41 }
0x2456   :  { %v2798_v17 = vsub.f32 %v6709_v37, %v2797_v50 }
0x2458   :  { %2800 = vst [vmem:[#allocation14 + $0x28] sm:$0xff] %v2798_v17 }
0x2459   :  { %4415 = shalt.err (!%p4412_p0)
}
0x245a   :  { %s4416_s18 = scalar_lea.hbm %s6275_s8, 128 }
0x245b   :  { %p4417_p1 = scmp.ne.s32.totalorder %s6275_s8, %s4416_s18  ;;  %p4420_p2 = scmp.lt.u32.totalorder %s4416_s18, %s6275_s8 }
0x245d   :  { %p4422_p3 = pnand %p4420_p2, %p4417_p1 }
0x245f   :  { %4425 = shalt.err (!%p4422_p3)
}
0x2460   :  { %3337 = dma.vmem_to_hbm [thread:$0]  %s3335_s13, 128, %s6275_s8, [#allocation13]  }
0x2461   :  { %s4426_s22 = scalar_lea.vmem %s3322_s16, 1024  ;;  %p4431_p5 = scmp.lt.s32.totalorder %s3322_s16, %s3322_s16 }
0x2462   :  { %p4427_p4 = scmp.ne.s32.totalorder %s3322_s16, %s4426_s22  ;;  %p4432_p6 = scmp.lt.s32.totalorder %s4426_s22, %s4426_s22 }
0x2464   :  { %p4433_p7 = por %p4432_p6, %p4431_p5 }
0x2466   :  { %p4434_p8 = pnand %p4433_p7, %p4427_p4 }
0x2468   :  { %4437 = shalt.err (!%p4434_p8)
}
0x2469   :  { %s4438_s24 = scalar_lea.hbm %s6274_s7, 1024 }
0x246a   :  { %p4439_p9 = scmp.ne.s32.totalorder %s6274_s7, %s4438_s24  ;;  %p4442_p10 = scmp.lt.u32.totalorder %s4438_s24, %s6274_s7 }
0x246c   :  { %p4444_p11 = pnand %p4442_p10, %p4439_p9 }
0x246e   :  { %4447 = shalt.err (!%p4444_p11)
}
0x246f   :  { %s4533_s8 = smov 8   ;;  %s4534_s11 = smov [#allocation15]  }
0x2470   :  { %3327 = dma.vmem_to_hbm [thread:$0]  %s3322_s16, 1024, %s6274_s7, [#allocation8], %s4521_s25, %s4521_s25, %s4533_s8  }
0x2471   :  { %s3356_s12 = sshll.u32 %s4534_s11, 4  ;;  %s3357_s12 = int_to_ptr.vmem [resolvable:$true] %s3356_s12 }
0x2472   :  { %s4448_s3 = scalar_lea.vmem %s3357_s12, 128  ;;  %p4453_p13 = scmp.lt.s32.totalorder %s3357_s12, %s3357_s12 }
0x2473   :  { %p4449_p12 = scmp.ne.s32.totalorder %s3357_s12, %s4448_s3  ;;  %p4454_p0 = scmp.lt.s32.totalorder %s4448_s3, %s4448_s3 }
0x2475   :  { %p4455_p1 = por %p4454_p0, %p4453_p13 }
0x2477   :  { %p4456_p2 = pnand %p4455_p1, %p4449_p12 }
0x2479   :  { %4459 = shalt.err (!%p4456_p2)
}
0x247a   :  { %s4460_s17 = scalar_lea.hbm %s6277_s10, 128 }
0x247b   :  { %p4461_p3 = scmp.ne.s32.totalorder %s6277_s10, %s4460_s17  ;;  %p4464_p4 = scmp.lt.u32.totalorder %s4460_s17, %s6277_s10 }
0x247d   :  { %p4466_p5 = pnand %p4464_p4, %p4461_p3 }
0x247f   :  { %4469 = shalt.err (!%p4466_p5)
}
0x2480   :  { %3359 = dma.vmem_to_hbm [thread:$0]  %s3357_s12, 128, %s6277_s10, [#allocation16]  }
0x2481   :  { %s4535_s5 = smov [#allocation14]  }
0x2482   :  { %s3343_s2 = sshll.u32 %s4535_s5, 4  ;;  %s3344_s2 = int_to_ptr.vmem [resolvable:$true] %s3343_s2 }
0x2483   :  { %s4470_s19 = scalar_lea.vmem %s3344_s2, 1024  ;;  %p4475_p7 = scmp.lt.s32.totalorder %s3344_s2, %s3344_s2 }
0x2484   :  { %p4471_p6 = scmp.ne.s32.totalorder %s3344_s2, %s4470_s19  ;;  %p4476_p8 = scmp.lt.s32.totalorder %s4470_s19, %s4470_s19 }
0x2486   :  { %p4477_p9 = por %p4476_p8, %p4475_p7 }
0x2488   :  { %p4478_p10 = pnand %p4477_p9, %p4471_p6 }
0x24d7   :  { %v3308_v3 = vpop.xlane.xlu1 %3307 }
0x24d8   :  { %4259 = vlog2.f32 %v3308_v3 }
0x24e2   :  { %v4260_v22 = vpop.eup %4259 }
0x24e3   :  { %v3310_v10 = vmul.f32 0.6931472, %v4260_v22 }
0x24e5   :  { %v3311_v14 = vadd.f32 %v3310_v10, %v6201_v47 }
0x24e7   :  { %v3312_v63 = vsub.f32 %v6198_v16, %v3311_v14 }
0x24e9   :  { %3314 = vst [vmem:[#allocation14 + $0x38] sm:$0xff] %v3312_v63 }
0x24ea   :  { %4481 = shalt.err (!%p4478_p10)
}
0x24eb   :  { %s4482_s21 = scalar_lea.hbm %s6276_s9, 1024 }
0x24ec   :  { %p4483_p11 = scmp.ne.s32.totalorder %s6276_s9, %s4482_s21  ;;  %p4486_p12 = scmp.lt.u32.totalorder %s4482_s21, %s6276_s9 }
0x24ee   :  { %p4488_p13 = pnand %p4486_p12, %p4483_p11 }
0x24f0   :  { %4491 = shalt.err (!%p4488_p13)
}
0x24f1   :  { %3349 = dma.vmem_to_hbm [thread:$0]  %s3344_s2, 1024, %s6276_s9, [#allocation13], %s4521_s25, %s4521_s25, %s4533_s8  }
0x24f2   :  { %4502 = dma.done.wait [#allocation8], 1024  }
0x24f3   :  { %4503 = vsyncadd [#allocation8], 4294966272 }
0x24f4   :  { %4504 = dma.done.wait [#allocation13], 1152  }
0x24f5   :  { %4505 = vsyncadd [#allocation13], 4294966144 }
0x24f6   :  { %4506 = dma.done.wait [#allocation16], 128  }
0x24f7   :  { %4507 = vsyncadd [#allocation16], 4294967168 }
0x24f8   :  { %3372 = vsyncpa [#allocation7], 1 }
0x24f9   :  { %3373 = vsyncpa [#allocation10], 1 }
0x24fa   :  { %3374 = vsyncpa [#allocation8], 1 }
0x24fb   :  { %3375 = vsyncpa [#allocation13], 1 }
0x24fc   :  { %3376 = vsyncpa [#allocation16], 1 }
0x24fd   :  { %3377 = vsyncmov [#allocation5] }
0x2500   :  { %s3378_s28 = vpop.sfrf %3377 }
0x2501   :  { %p3498_p0 = scmp.ne.s32.totalorder %s3378_s28, 0 }
0x2503   :  { %3382 = shalt.err (%p3498_p0)  }
0x2504   :  { %3384 = vsyncmov [#allocation5 + $0x1] }
0x2507   :  { %s3385_s29 = vpop.sfrf %3384 }
0x2508   :  { %p3499_p1 = scmp.ne.s32.totalorder %s3385_s29, 0 }
0x250a   :  { %3389 = shalt.err (%p3499_p1)  }
0x250b   :  { %3391 = vsyncmov [#allocation5 + $0x2] }
0x250e   :  { %s3392_s9 = vpop.sfrf %3391 }
0x250f   :  { %p3500_p2 = scmp.ne.s32.totalorder %s3392_s9, 0 }
0x2511   :  { %3396 = shalt.err (%p3500_p2)  }

</bundles_post_ra>
